<compile_context>
chip_gen: v7x
topology: tpu7x:2x2x1
jax: 0.10.0
libtpu: 0.0.40
codegen_flags: <defaults>
</compile_context>

<pallas_src>
import math

import jax
import jax.numpy as jnp
from jax.experimental import pallas as pl
from jax.experimental.pallas import tpu as pltpu

_BN_EPS = 0.8          # nn.BatchNorm1d(out_feat, 0.8): 2nd positional arg is eps
_LRELU_SLOPE = 0.2


def _leaky_relu(x, slope=_LRELU_SLOPE):
    return jnp.where(x > 0, x, slope * x)


def generator_kernel(z_ref,
                     w1_ref, b1_ref,
                     w2_ref, s2_ref, t2_ref,
                     w3_ref, s3_ref, t3_ref,
                     w4_ref, s4_ref, t4_ref,
                     w5_ref, b5_ref,
                     o_ref):
    # MXU matmuls in bf16 with f32 accumulation; bias / BN-affine / LeakyReLU /
    # Tanh stay in f32 (v5e's VPU has no bf16 elementwise support).
    z = z_ref[...].astype(jnp.bfloat16)

    # block(latent_dim, 128, normalize=False): Linear + LeakyReLU(0.2)
    h = jnp.dot(z, w1_ref[...], preferred_element_type=jnp.float32) + b1_ref[...]
    h = _leaky_relu(h)

    # block(128, 256): Linear + BatchNorm1d(eps=0.8) + LeakyReLU
    # (running stats + linear bias pre-folded into per-feature scale/shift)
    h = jnp.dot(h.astype(jnp.bfloat16), w2_ref[...],
                preferred_element_type=jnp.float32)
    h = _leaky_relu(h * s2_ref[...] + t2_ref[...])

    # block(256, 512)
    h = jnp.dot(h.astype(jnp.bfloat16), w3_ref[...],
                preferred_element_type=jnp.float32)
    h = _leaky_relu(h * s3_ref[...] + t3_ref[...])

    # block(512, 1024)
    h = jnp.dot(h.astype(jnp.bfloat16), w4_ref[...],
                preferred_element_type=jnp.float32)
    h = _leaky_relu(h * s4_ref[...] + t4_ref[...])

    # Linear(1024, prod(img_shape)) + Tanh (transcendental -> EUP slot)
    h = jnp.dot(h.astype(jnp.bfloat16), w5_ref[...],
                preferred_element_type=jnp.float32)
    o_ref[...] = jnp.tanh(h + b5_ref[...]).astype(o_ref.dtype)


def _round_up(x, m):
    return (x + m - 1) // m * m


def _fold_bn(b, gamma, beta, mean, var, eps=_BN_EPS):
    """Fold linear bias + inference-mode BN into y = (x@W) * scale + shift."""
    scale = gamma / jnp.sqrt(var + eps)
    shift = (b - mean) * scale + beta
    return scale.astype(jnp.float32), shift.astype(jnp.float32)


def generator_forward(z, params, img_shape):
    """z: (B, latent_dim) float32. Returns generated images (B, *img_shape) f32."""
    B, latent = z.shape
    d_out = int(math.prod(img_shape))

    w1, b1 = params["l1"]
    w2, b2, g2, be2, m2, v2 = params["l2"]
    w3, b3, g3, be3, m3, v3 = params["l3"]
    w4, b4, g4, be4, m4, v4 = params["l4"]
    w5, b5 = params["l5"]

    s2, t2 = _fold_bn(b2, g2, be2, m2, v2)
    s3, t3 = _fold_bn(b3, g3, be3, m3, v3)
    s4, t4 = _fold_bn(b4, g4, be4, m4, v4)

    h1, h2, h3, h4 = w1.shape[1], w2.shape[1], w3.shape[1], w4.shape[1]
    assert w5.shape == (h4, d_out)

    # Batch tile: 256 rows fills an MXU pass on v6e/v7x (and is a multiple of
    # v5e's 128); tiny batches fall back to the smallest 8-aligned tile.
    tb = min(256, _round_up(B, 8))
    b_pad = _round_up(B, tb)
    if b_pad != B:
        z = jnp.pad(z, ((0, b_pad - B), (0, 0)))

    # Constant index_map -> block never changes -> weights stay VMEM-resident.
    # (For production-sized w1 add pipeline_mode=pl.Buffered(1) to single-buffer.)
    resident = lambda shape: pl.BlockSpec(shape, lambda i: (0,) * len(shape))

    out_pad = pl.pallas_call(
        generator_kernel,
        out_shape=jax.ShapeDtypeStruct((b_pad, d_out), jnp.float32),
        grid=(b_pad // tb,),
        in_specs=[
            pl.BlockSpec((tb, latent), lambda i: (i, 0)),   # z streamed per tile
            resident((latent, h1)), resident((1, h1)),
            resident((h1, h2)), resident((1, h2)), resident((1, h2)),
            resident((h2, h3)), resident((1, h3)), resident((1, h3)),
            resident((h3, h4)), resident((1, h4)), resident((1, h4)),
            resident((h4, d_out)), resident((1, d_out)),
        ],
        out_specs=pl.BlockSpec((tb, d_out), lambda i: (i, 0)),
        compiler_params=pltpu.CompilerParams(
            # Independent batch tiles -> sharded across both TCs on v7x megacore.
            dimension_semantics=("parallel",),
        ),
    )(z, w1, b1, w2, s2, t2, w3, s3, t3, w4, s4, t4, w5, b5)

    return out_pad[:B].reshape(B, *img_shape)


def init_params(key, latent_dim, img_shape, hidden=(128, 256, 512, 1024)):
    """Deterministic init matching nn.Linear defaults; weights stored (in, out) bf16."""
    d_out = int(math.prod(img_shape))
    dims = (latent_dim,) + tuple(hidden) + (d_out,)
    keys = iter(jax.random.split(key, 32))

    def linear(fan_in, fan_out):
        bound = 1.0 / math.sqrt(fan_in)
        w = jax.random.uniform(next(keys), (fan_in, fan_out), jnp.float32, -bound, bound)
        b = jax.random.uniform(next(keys), (1, fan_out), jnp.float32, -bound, bound)
        return w.astype(jnp.bfloat16), b

    def bn(n):
        gamma = jax.random.uniform(next(keys), (1, n), jnp.float32, 0.5, 1.5)
        beta = jax.random.uniform(next(keys), (1, n), jnp.float32, -0.1, 0.1)
        mean = 0.1 * jax.random.normal(next(keys), (1, n), jnp.float32)
        var = jax.random.uniform(next(keys), (1, n), jnp.float32, 0.5, 1.5)
        return gamma, beta, mean, var

    w1, b1 = linear(dims[0], dims[1])
    w2, b2 = linear(dims[1], dims[2]); bn2 = bn(dims[2])
    w3, b3 = linear(dims[2], dims[3]); bn3 = bn(dims[3])
    w4, b4 = linear(dims[3], dims[4]); bn4 = bn(dims[4])
    w5, b5 = linear(dims[4], dims[5])

    return {
        "l1": (w1, b1),
        "l2": (w2, b2) + bn2,
        "l3": (w3, b3) + bn3,
        "l4": (w4, b4) + bn4,
        "l5": (w5, b5),
    }


def reference_forward(z, params, img_shape):
    """Pure-JAX reference with un-folded BatchNorm math (validates the folding)."""
    B = z.shape[0]
    w1, b1 = params["l1"]
    w5, b5 = params["l5"]

    def lin(x, w):
        return jnp.dot(x.astype(jnp.bfloat16), w, preferred_element_type=jnp.float32)

    h = _leaky_relu(lin(z, w1) + b1)
    for layer in ("l2", "l3", "l4"):
        w, b, g, be, m, v = params[layer]
        h = lin(h, w) + b
        h = (h - m) / jnp.sqrt(v + _BN_EPS) * g + be     # BatchNorm1d, eps=0.8
        h = _leaky_relu(h)
    out = jnp.tanh(lin(h, w5) + b5)
    return out.reshape(B, *img_shape)


if __name__ == "__main__":
    key = jax.random.PRNGKey(0)
    k_z, k_p = jax.random.split(key)

    # Small shapes consistent with the module: batch=2, channels=4, img_size=16,
    # latent_dim=100 (the GAN script's default).
    B, C, H, W = 2, 4, 16, 16
    latent_dim = 100
    img_shape = (C, H, W)

    z = jax.random.normal(k_z, (B, latent_dim), dtype=jnp.float32)
    params = init_params(k_p, latent_dim, img_shape)

    img = generator_forward(z, params, img_shape)
    jax.block_until_ready(img)

    ref = reference_forward(z, params, img_shape)
    assert img.shape == (B, C, H, W)
    err = float(jnp.max(jnp.abs(img - ref)))
    assert jnp.allclose(img, ref, atol=2e-2), f"mismatch vs reference, max err {err}"

    print("KERNEL_OK")
</pallas_src>

<mosaic_0001>
module attributes {stable_mosaic.version = 11 : i64} {
  func.func @generator_kernel(%arg0: i32, %arg1: memref<8x100xf32, #tpu.memory_space<vmem>>, %arg2: memref<100x128xbf16, #tpu.memory_space<vmem>>, %arg3: memref<1x128xf32, #tpu.memory_space<vmem>>, %arg4: memref<128x256xbf16, #tpu.memory_space<vmem>>, %arg5: memref<1x256xf32, #tpu.memory_space<vmem>>, %arg6: memref<1x256xf32, #tpu.memory_space<vmem>>, %arg7: memref<256x512xbf16, #tpu.memory_space<vmem>>, %arg8: memref<1x512xf32, #tpu.memory_space<vmem>>, %arg9: memref<1x512xf32, #tpu.memory_space<vmem>>, %arg10: memref<512x1024xbf16, #tpu.memory_space<vmem>>, %arg11: memref<1x1024xf32, #tpu.memory_space<vmem>>, %arg12: memref<1x1024xf32, #tpu.memory_space<vmem>>, %arg13: memref<1024x1024xbf16, #tpu.memory_space<vmem>>, %arg14: memref<1x1024xf32, #tpu.memory_space<vmem>>, %arg15: memref<8x1024xf32, #tpu.memory_space<vmem>>) attributes {dimension_semantics = [#tpu.dimension_semantics<parallel>], iteration_bounds = array<i64: 1>, scalar_prefetch = 0 : i64, scratch_operands = 0 : i64, tpu.core_type = #tpu.core_type<tc>, window_params = [{transform_indices = @transform_0, window_bounds = array<i64: 8, 100>}, {pipeline_mode = #tpu.pipeline_mode<synchronous>, transform_indices = @transform_1, window_bounds = array<i64: 100, 128>}, {pipeline_mode = #tpu.pipeline_mode<synchronous>, transform_indices = @transform_2, window_bounds = array<i64: 1, 128>}, {pipeline_mode = #tpu.pipeline_mode<synchronous>, transform_indices = @transform_3, window_bounds = array<i64: 128, 256>}, {pipeline_mode = #tpu.pipeline_mode<synchronous>, transform_indices = @transform_4, window_bounds = array<i64: 1, 256>}, {pipeline_mode = #tpu.pipeline_mode<synchronous>, transform_indices = @transform_5, window_bounds = array<i64: 1, 256>}, {pipeline_mode = #tpu.pipeline_mode<synchronous>, transform_indices = @transform_6, window_bounds = array<i64: 256, 512>}, {pipeline_mode = #tpu.pipeline_mode<synchronous>, transform_indices = @transform_7, window_bounds = array<i64: 1, 512>}, {pipeline_mode = #tpu.pipeline_mode<synchronous>, transform_indices = @transform_8, window_bounds = array<i64: 1, 512>}, {pipeline_mode = #tpu.pipeline_mode<synchronous>, transform_indices = @transform_9, window_bounds = array<i64: 512, 1024>}, {pipeline_mode = #tpu.pipeline_mode<synchronous>, transform_indices = @transform_10, window_bounds = array<i64: 1, 1024>}, {pipeline_mode = #tpu.pipeline_mode<synchronous>, transform_indices = @transform_11, window_bounds = array<i64: 1, 1024>}, {pipeline_mode = #tpu.pipeline_mode<synchronous>, transform_indices = @transform_12, window_bounds = array<i64: 1024, 1024>}, {pipeline_mode = #tpu.pipeline_mode<synchronous>, transform_indices = @transform_13, window_bounds = array<i64: 1, 1024>}, {transform_indices = @transform_14, window_bounds = array<i64: 8, 1024>}]} {
    %c0 = arith.constant 0 : index
    %c0_0 = arith.constant 0 : index
    %0 = vector.load %arg1[%c0, %c0_0] : memref<8x100xf32, #tpu.memory_space<vmem>>, vector<8x100xf32>
    %1 = arith.truncf %0 : vector<8x100xf32> to vector<8x100xbf16>
    %c0_1 = arith.constant 0 : index
    %c0_2 = arith.constant 0 : index
    %2 = vector.load %arg2[%c0_1, %c0_2] : memref<100x128xbf16, #tpu.memory_space<vmem>>, vector<100x128xbf16>
    %cst = arith.constant dense<0.000000e+00> : vector<8x128xf32>
    %3 = tpu.matmul %1, %2, %cst {dimension_numbers = #tpu.dot_dimension_numbers<[1], [0], [0], [1], [0, 0, 1, 1], [], []>} : vector<8x100xbf16>, vector<100x128xbf16>, vector<8x128xf32> -> vector<8x128xf32>
    %c0_3 = arith.constant 0 : index
    %c0_4 = arith.constant 0 : index
    %4 = vector.load %arg3[%c0_3, %c0_4] : memref<1x128xf32, #tpu.memory_space<vmem>>, vector<1x128xf32>
    %5 = vector.broadcast %4 : vector<1x128xf32> to vector<8x128xf32>
    %6 = arith.addf %3, %5 : vector<8x128xf32>
    %cst_5 = arith.constant 0.000000e+00 : f32
    %7 = vector.broadcast %cst_5 : f32 to vector<8x128xf32>
    %8 = arith.cmpf ogt, %6, %7 : vector<8x128xf32>
    %cst_6 = arith.constant 2.000000e-01 : f32
    %9 = vector.broadcast %cst_6 : f32 to vector<8x128xf32>
    %10 = arith.mulf %9, %6 : vector<8x128xf32>
    %11 = arith.select %8, %6, %10 : vector<8x128xi1>, vector<8x128xf32>
    %12 = arith.truncf %11 : vector<8x128xf32> to vector<8x128xbf16>
    %c0_7 = arith.constant 0 : index
    %c0_8 = arith.constant 0 : index
    %13 = vector.load %arg4[%c0_7, %c0_8] : memref<128x256xbf16, #tpu.memory_space<vmem>>, vector<128x256xbf16>
    %cst_9 = arith.constant dense<0.000000e+00> : vector<8x256xf32>
    %14 = tpu.matmul %12, %13, %cst_9 {dimension_numbers = #tpu.dot_dimension_numbers<[1], [0], [0], [1], [0, 0, 1, 1], [], []>} : vector<8x128xbf16>, vector<128x256xbf16>, vector<8x256xf32> -> vector<8x256xf32>
    %c0_10 = arith.constant 0 : index
    %c0_11 = arith.constant 0 : index
    %15 = vector.load %arg5[%c0_10, %c0_11] : memref<1x256xf32, #tpu.memory_space<vmem>>, vector<1x256xf32>
    %16 = vector.broadcast %15 : vector<1x256xf32> to vector<8x256xf32>
    %17 = arith.mulf %14, %16 : vector<8x256xf32>
    %c0_12 = arith.constant 0 : index
    %c0_13 = arith.constant 0 : index
    %18 = vector.load %arg6[%c0_12, %c0_13] : memref<1x256xf32, #tpu.memory_space<vmem>>, vector<1x256xf32>
    %19 = vector.broadcast %18 : vector<1x256xf32> to vector<8x256xf32>
    %20 = arith.addf %17, %19 : vector<8x256xf32>
    %cst_14 = arith.constant 0.000000e+00 : f32
    %21 = vector.broadcast %cst_14 : f32 to vector<8x256xf32>
    %22 = arith.cmpf ogt, %20, %21 : vector<8x256xf32>
    %cst_15 = arith.constant 2.000000e-01 : f32
    %23 = vector.broadcast %cst_15 : f32 to vector<8x256xf32>
    %24 = arith.mulf %23, %20 : vector<8x256xf32>
    %25 = arith.select %22, %20, %24 : vector<8x256xi1>, vector<8x256xf32>
    %26 = arith.truncf %25 : vector<8x256xf32> to vector<8x256xbf16>
    %c0_16 = arith.constant 0 : index
    %c0_17 = arith.constant 0 : index
    %27 = vector.load %arg7[%c0_16, %c0_17] : memref<256x512xbf16, #tpu.memory_space<vmem>>, vector<256x512xbf16>
    %cst_18 = arith.constant dense<0.000000e+00> : vector<8x512xf32>
    %28 = tpu.matmul %26, %27, %cst_18 {dimension_numbers = #tpu.dot_dimension_numbers<[1], [0], [0], [1], [0, 0, 1, 1], [], []>} : vector<8x256xbf16>, vector<256x512xbf16>, vector<8x512xf32> -> vector<8x512xf32>
    %c0_19 = arith.constant 0 : index
    %c0_20 = arith.constant 0 : index
    %29 = vector.load %arg8[%c0_19, %c0_20] : memref<1x512xf32, #tpu.memory_space<vmem>>, vector<1x512xf32>
    %30 = vector.broadcast %29 : vector<1x512xf32> to vector<8x512xf32>
    %31 = arith.mulf %28, %30 : vector<8x512xf32>
    %c0_21 = arith.constant 0 : index
    %c0_22 = arith.constant 0 : index
    %32 = vector.load %arg9[%c0_21, %c0_22] : memref<1x512xf32, #tpu.memory_space<vmem>>, vector<1x512xf32>
    %33 = vector.broadcast %32 : vector<1x512xf32> to vector<8x512xf32>
    %34 = arith.addf %31, %33 : vector<8x512xf32>
    %cst_23 = arith.constant 0.000000e+00 : f32
    %35 = vector.broadcast %cst_23 : f32 to vector<8x512xf32>
    %36 = arith.cmpf ogt, %34, %35 : vector<8x512xf32>
    %cst_24 = arith.constant 2.000000e-01 : f32
    %37 = vector.broadcast %cst_24 : f32 to vector<8x512xf32>
    %38 = arith.mulf %37, %34 : vector<8x512xf32>
    %39 = arith.select %36, %34, %38 : vector<8x512xi1>, vector<8x512xf32>
    %40 = arith.truncf %39 : vector<8x512xf32> to vector<8x512xbf16>
    %c0_25 = arith.constant 0 : index
    %c0_26 = arith.constant 0 : index
    %41 = vector.load %arg10[%c0_25, %c0_26] : memref<512x1024xbf16, #tpu.memory_space<vmem>>, vector<512x1024xbf16>
    %cst_27 = arith.constant dense<0.000000e+00> : vector<8x1024xf32>
    %42 = tpu.matmul %40, %41, %cst_27 {dimension_numbers = #tpu.dot_dimension_numbers<[1], [0], [0], [1], [0, 0, 1, 1], [], []>} : vector<8x512xbf16>, vector<512x1024xbf16>, vector<8x1024xf32> -> vector<8x1024xf32>
    %c0_28 = arith.constant 0 : index
    %c0_29 = arith.constant 0 : index
    %43 = vector.load %arg11[%c0_28, %c0_29] : memref<1x1024xf32, #tpu.memory_space<vmem>>, vector<1x1024xf32>
    %44 = vector.broadcast %43 : vector<1x1024xf32> to vector<8x1024xf32>
    %45 = arith.mulf %42, %44 : vector<8x1024xf32>
    %c0_30 = arith.constant 0 : index
    %c0_31 = arith.constant 0 : index
    %46 = vector.load %arg12[%c0_30, %c0_31] : memref<1x1024xf32, #tpu.memory_space<vmem>>, vector<1x1024xf32>
    %47 = vector.broadcast %46 : vector<1x1024xf32> to vector<8x1024xf32>
    %48 = arith.addf %45, %47 : vector<8x1024xf32>
    %cst_32 = arith.constant 0.000000e+00 : f32
    %49 = vector.broadcast %cst_32 : f32 to vector<8x1024xf32>
    %50 = arith.cmpf ogt, %48, %49 : vector<8x1024xf32>
    %cst_33 = arith.constant 2.000000e-01 : f32
    %51 = vector.broadcast %cst_33 : f32 to vector<8x1024xf32>
    %52 = arith.mulf %51, %48 : vector<8x1024xf32>
    %53 = arith.select %50, %48, %52 : vector<8x1024xi1>, vector<8x1024xf32>
    %54 = arith.truncf %53 : vector<8x1024xf32> to vector<8x1024xbf16>
    %c0_34 = arith.constant 0 : index
    %c0_35 = arith.constant 0 : index
    %55 = vector.load %arg13[%c0_34, %c0_35] : memref<1024x1024xbf16, #tpu.memory_space<vmem>>, vector<1024x1024xbf16>
    %cst_36 = arith.constant dense<0.000000e+00> : vector<8x1024xf32>
    %56 = tpu.matmul %54, %55, %cst_36 {dimension_numbers = #tpu.dot_dimension_numbers<[1], [0], [0], [1], [0, 0, 1, 1], [], []>} : vector<8x1024xbf16>, vector<1024x1024xbf16>, vector<8x1024xf32> -> vector<8x1024xf32>
    %c0_37 = arith.constant 0 : index
    %c0_38 = arith.constant 0 : index
    %57 = vector.load %arg14[%c0_37, %c0_38] : memref<1x1024xf32, #tpu.memory_space<vmem>>, vector<1x1024xf32>
    %58 = vector.broadcast %57 : vector<1x1024xf32> to vector<8x1024xf32>
    %59 = arith.addf %56, %58 : vector<8x1024xf32>
    %60 = math.tanh %59 : vector<8x1024xf32>
    %c0_39 = arith.constant 0 : index
    %c0_40 = arith.constant 0 : index
    %61 = vector.load %arg15[%c0_39, %c0_40] : memref<8x1024xf32, #tpu.memory_space<vmem>>, vector<8x1024xf32>
    tpu.vector_store %arg15[%c0_39, %c0_40], %60 {strides = array<i32>} : memref<8x1024xf32, #tpu.memory_space<vmem>>, vector<8x1024xf32>,
    return
  }
  func.func @transform_0(%arg0: i32) -> (i32, i32) {
    %c0_i32 = arith.constant 0 : i32
    %c0_i32_0 = arith.constant 0 : i32
    return %arg0, %c0_i32 : i32, i32
  }
  func.func @transform_1(%arg0: i32) -> (i32, i32) {
    %c0_i32 = arith.constant 0 : i32
    %c0_i32_0 = arith.constant 0 : i32
    %c0_i32_1 = arith.constant 0 : i32
    return %c0_i32, %c0_i32_0 : i32, i32
  }
  func.func @transform_2(%arg0: i32) -> (i32, i32) {
    %c0_i32 = arith.constant 0 : i32
    %c0_i32_0 = arith.constant 0 : i32
    %c0_i32_1 = arith.constant 0 : i32
    return %c0_i32, %c0_i32_0 : i32, i32
  }
  func.func @transform_3(%arg0: i32) -> (i32, i32) {
    %c0_i32 = arith.constant 0 : i32
    %c0_i32_0 = arith.constant 0 : i32
    %c0_i32_1 = arith.constant 0 : i32
    return %c0_i32, %c0_i32_0 : i32, i32
  }
  func.func @transform_4(%arg0: i32) -> (i32, i32) {
    %c0_i32 = arith.constant 0 : i32
    %c0_i32_0 = arith.constant 0 : i32
    %c0_i32_1 = arith.constant 0 : i32
    return %c0_i32, %c0_i32_0 : i32, i32
  }
  func.func @transform_5(%arg0: i32) -> (i32, i32) {
    %c0_i32 = arith.constant 0 : i32
    %c0_i32_0 = arith.constant 0 : i32
    %c0_i32_1 = arith.constant 0 : i32
    return %c0_i32, %c0_i32_0 : i32, i32
  }
  func.func @transform_6(%arg0: i32) -> (i32, i32) {
    %c0_i32 = arith.constant 0 : i32
    %c0_i32_0 = arith.constant 0 : i32
    %c0_i32_1 = arith.constant 0 : i32
    return %c0_i32, %c0_i32_0 : i32, i32
  }
  func.func @transform_7(%arg0: i32) -> (i32, i32) {
    %c0_i32 = arith.constant 0 : i32
    %c0_i32_0 = arith.constant 0 : i32
    %c0_i32_1 = arith.constant 0 : i32
    return %c0_i32, %c0_i32_0 : i32, i32
  }
  func.func @transform_8(%arg0: i32) -> (i32, i32) {
    %c0_i32 = arith.constant 0 : i32
    %c0_i32_0 = arith.constant 0 : i32
    %c0_i32_1 = arith.constant 0 : i32
    return %c0_i32, %c0_i32_0 : i32, i32
  }
  func.func @transform_9(%arg0: i32) -> (i32, i32) {
    %c0_i32 = arith.constant 0 : i32
    %c0_i32_0 = arith.constant 0 : i32
    %c0_i32_1 = arith.constant 0 : i32
    return %c0_i32, %c0_i32_0 : i32, i32
  }
  func.func @transform_10(%arg0: i32) -> (i32, i32) {
    %c0_i32 = arith.constant 0 : i32
    %c0_i32_0 = arith.constant 0 : i32
    %c0_i32_1 = arith.constant 0 : i32
    return %c0_i32, %c0_i32_0 : i32, i32
  }
  func.func @transform_11(%arg0: i32) -> (i32, i32) {
    %c0_i32 = arith.constant 0 : i32
    %c0_i32_0 = arith.constant 0 : i32
    %c0_i32_1 = arith.constant 0 : i32
    return %c0_i32, %c0_i32_0 : i32, i32
  }
  func.func @transform_12(%arg0: i32) -> (i32, i32) {
    %c0_i32 = arith.constant 0 : i32
    %c0_i32_0 = arith.constant 0 : i32
    %c0_i32_1 = arith.constant 0 : i32
    return %c0_i32, %c0_i32_0 : i32, i32
  }
  func.func @transform_13(%arg0: i32) -> (i32, i32) {
    %c0_i32 = arith.constant 0 : i32
    %c0_i32_0 = arith.constant 0 : i32
    %c0_i32_1 = arith.constant 0 : i32
    return %c0_i32, %c0_i32_0 : i32, i32
  }
  func.func @transform_14(%arg0: i32) -> (i32, i32) {
    %c0_i32 = arith.constant 0 : i32
    %c0_i32_0 = arith.constant 0 : i32
    return %arg0, %c0_i32 : i32, i32
  }
}

</mosaic_0001>

<bundles_post_ra>
// kernel: tpu_custom_call.1
= control target key start
LH: loop header
LB: loop body
LE: loop exit
PB: predicated region body
PF: predicated region fallthrough
CT: control target
= control target key end

     0   :  { %19 = vsyncpa [#allocation3], 0  ;;  %s8807_s0 = inlined_call_operand.hbm [shape: f32[8,100], index: 0, kind: input, shape index: {}]   ;;  %s8808_s1 = inlined_call_operand.hbm [shape: bf16[100,128], index: 1, kind: input, shape index: {}]   ;;  %s8809_s2 = inlined_call_operand.hbm [shape: f32[1,128], index: 2, kind: input, shape index: {}]   ;;  %s8810_s3 = inlined_call_operand.hbm [shape: bf16[128,256], index: 3, kind: input, shape index: {}]   ;;  %s8811_s4 = inlined_call_operand.hbm [shape: f32[1,256], index: 4, kind: input, shape index: {}]   ;;  %s8812_s5 = inlined_call_operand.hbm [shape: f32[1,256], index: 5, kind: input, shape index: {}]   ;;  %s8813_s6 = inlined_call_operand.hbm [shape: bf16[256,512], index: 6, kind: input, shape index: {}]   ;;  %s8814_s7 = inlined_call_operand.hbm [shape: f32[1,512], index: 7, kind: input, shape index: {}]   ;;  %s8815_s8 = inlined_call_operand.hbm [shape: f32[1,512], index: 8, kind: input, shape index: {}]   ;;  %s8816_s9 = inlined_call_operand.hbm [shape: bf16[512,1024], index: 9, kind: input, shape index: {}]   ;;  %s8817_s10 = inlined_call_operand.hbm [shape: f32[1,1024], index: 10, kind: input, shape index: {}]   ;;  %s8818_s11 = inlined_call_operand.hbm [shape: f32[1,1024], index: 11, kind: input, shape index: {}]   ;;  %s8819_s12 = inlined_call_operand.hbm [shape: bf16[1024,1024], index: 12, kind: input, shape index: {}]   ;;  %s8820_s13 = inlined_call_operand.hbm [shape: f32[1,1024], index: 13, kind: input, shape index: {}]   ;;  %s8821_s14 = inlined_call_operand.hbm [shape: f32[8,1024], index: 14, kind: output, shape index: {}]  }
   0x1   :  { %20 = vsyncpa [#allocation6], 0 }
   0x2   :  { %21 = vsyncpa [#allocation9], 0 }
   0x3   :  { %22 = vsyncpa [#allocation12], 0 }
   0x4   :  { %23 = vsyncpa [#allocation15], 0 }
   0x5   :  { %24 = vsyncpa [#allocation18], 0 }
   0x6   :  { %25 = vsyncpa [#allocation21], 0 }
   0x7   :  { %26 = vsyncpa [#allocation24], 0 }
   0x8   :  { %27 = vsyncpa [#allocation4], 0  ;;  %s8319_s29 = smov [#allocation5]   ;;  %s7971_s17 = scalar_lea.hbm %s8808_s1, 832 }
   0x9   :  { %s43_s30 = sshll.u32 %s8319_s29, 4  ;;  %p7972_p0 = scmp.ne.s32.totalorder %s8808_s1, %s7971_s17  ;;  %s44_s30 = int_to_ptr.vmem [resolvable:$true] %s43_s30 }
   0xa   :  { %p7975_p1 = scmp.lt.u32.totalorder %s7971_s17, %s8808_s1 }
   0xc   :  { %p7977_p2 = pnand %p7975_p1, %p7972_p0 }
   0xe   :  { %7980 = shalt.err (!%p7977_p2)
}
   0xf   :  { %s7981_s22 = scalar_lea.vmem %s44_s30, 832  ;;  %p7986_p4 = scmp.lt.s32.totalorder %s44_s30, %s44_s30 }
  0x10   :  { %p7982_p3 = scmp.ne.s32.totalorder %s44_s30, %s7981_s22  ;;  %p7987_p5 = scmp.lt.s32.totalorder %s7981_s22, %s7981_s22 }
  0x12   :  { %p7988_p6 = por %p7987_p5, %p7986_p4 }
  0x14   :  { %p7989_p7 = pnand %p7988_p6, %p7982_p3 }
  0x16   :  { %7992 = shalt.err (!%p7989_p7)
}
  0x17   :  { %s8320_s23 = smov 64   ;;  %s8321_s24 = smov 4  }
  0x18   :  { %49 = dma.hbm_to_vmem [thread:$0]  %s8808_s1, 832, %s44_s30, [#allocation6], %s8320_s23, %s8320_s23, %s8321_s24  }
  0x19   :  { %s8322_s27 = smov [#allocation8]   ;;  %s7993_s16 = scalar_lea.hbm %s8810_s3, 2048 }
  0x1a   :  { %s65_s28 = sshll.u32 %s8322_s27, 4  ;;  %p7994_p8 = scmp.ne.s32.totalorder %s8810_s3, %s7993_s16  ;;  %s66_s28 = int_to_ptr.vmem [resolvable:$true] %s65_s28 }
  0x1b   :  { %p7997_p9 = scmp.lt.u32.totalorder %s7993_s16, %s8810_s3 }
  0x1d   :  { %p7999_p10 = pnand %p7997_p9, %p7994_p8 }
  0x1f   :  { %8002 = shalt.err (!%p7999_p10)
}
  0x20   :  { %s8003_s21 = scalar_lea.vmem %s66_s28, 2048  ;;  %p8008_p12 = scmp.lt.s32.totalorder %s66_s28, %s66_s28 }
  0x21   :  { %p8004_p11 = scmp.ne.s32.totalorder %s66_s28, %s8003_s21  ;;  %p8009_p13 = scmp.lt.s32.totalorder %s8003_s21, %s8003_s21 }
  0x23   :  { %p8010_p0 = por %p8009_p13, %p8008_p12 }
  0x25   :  { %p8011_p1 = pnand %p8010_p0, %p8004_p11 }
  0x27   :  { %8014 = shalt.err (!%p8011_p1)
}
  0x28   :  { %s8323_s1 = smov 128   ;;  %s8324_s30 = smov 8  }
  0x29   :  { %71 = dma.hbm_to_vmem [thread:$0]  %s8810_s3, 2048, %s66_s28, [#allocation9], %s8323_s1, %s8323_s1, %s8324_s30  }
  0x2a   :  { %s8325_s24 = smov [#allocation11]   ;;  %s8326_s26 = smov [#allocation14]  }
  0x2b   :  { %s88_s25 = sshll.u32 %s8325_s24, 4  ;;  %s110_s27 = sshll.u32 %s8326_s26, 4  ;;  %s89_s25 = int_to_ptr.vmem [resolvable:$true] %s88_s25  ;;  %s111_s27 = int_to_ptr.vmem [resolvable:$true] %s110_s27 }
  0x2c   :  { %s8015_s16 = scalar_lea.hbm %s8812_s5, 32 }
  0x2d   :  { %p8016_p2 = scmp.ne.s32.totalorder %s8812_s5, %s8015_s16  ;;  %p8019_p3 = scmp.lt.u32.totalorder %s8015_s16, %s8812_s5 }
  0x2f   :  { %p8021_p4 = pnand %p8019_p3, %p8016_p2 }
  0x31   :  { %8024 = shalt.err (!%p8021_p4)
}
  0x32   :  { %s8025_s3 = scalar_lea.vmem %s89_s25, 32  ;;  %p8030_p6 = scmp.lt.s32.totalorder %s89_s25, %s89_s25 }
  0x33   :  { %p8026_p5 = scmp.ne.s32.totalorder %s89_s25, %s8025_s3  ;;  %p8031_p7 = scmp.lt.s32.totalorder %s8025_s3, %s8025_s3 }
  0x35   :  { %p8032_p8 = por %p8031_p7, %p8030_p6 }
  0x37   :  { %p8033_p9 = pnand %p8032_p8, %p8026_p5 }
  0x39   :  { %8036 = shalt.err (!%p8033_p9)
}
  0x3a   :  { %91 = dma.hbm_to_vmem [thread:$0]  %s8812_s5, 32, %s89_s25, [#allocation12]  }
  0x3b   :  { %s8037_s22 = scalar_lea.hbm %s8814_s7, 64 }
  0x3c   :  { %p8038_p10 = scmp.ne.s32.totalorder %s8814_s7, %s8037_s22  ;;  %p8041_p11 = scmp.lt.u32.totalorder %s8037_s22, %s8814_s7 }
  0x3e   :  { %p8043_p12 = pnand %p8041_p11, %p8038_p10 }
  0x40   :  { %8046 = shalt.err (!%p8043_p12)
}
  0x41   :  { %s8047_s15 = scalar_lea.vmem %s111_s27, 64  ;;  %p8052_p0 = scmp.lt.s32.totalorder %s111_s27, %s111_s27 }
  0x42   :  { %p8048_p13 = scmp.ne.s32.totalorder %s111_s27, %s8047_s15  ;;  %p8053_p1 = scmp.lt.s32.totalorder %s8047_s15, %s8047_s15 }
  0x44   :  { %p8054_p2 = por %p8053_p1, %p8052_p0 }
  0x46   :  { %p8055_p3 = pnand %p8054_p2, %p8048_p13 }
  0x48   :  { %8058 = shalt.err (!%p8055_p3)
}
  0x49   :  { %113 = dma.hbm_to_vmem [thread:$0]  %s8814_s7, 64, %s111_s27, [#allocation15]  }
  0x4a   :  { %s8327_s16 = smov [#allocation17]   ;;  %s8059_s20 = scalar_lea.hbm %s8816_s9, 32768 }
  0x4b   :  { %s129_s17 = sshll.u32 %s8327_s16, 4  ;;  %p8060_p4 = scmp.ne.s32.totalorder %s8816_s9, %s8059_s20  ;;  %s130_s17 = int_to_ptr.vmem [resolvable:$true] %s129_s17 }
  0x4c   :  { %p8063_p5 = scmp.lt.u32.totalorder %s8059_s20, %s8816_s9 }
  0x4e   :  { %p8065_p6 = pnand %p8063_p5, %p8060_p4 }
  0x50   :  { %8068 = shalt.err (!%p8065_p6)
}
  0x51   :  { %s8069_s30 = scalar_lea.vmem %s130_s17, 32768  ;;  %p8074_p8 = scmp.lt.s32.totalorder %s130_s17, %s130_s17 }
  0x52   :  { %p8070_p7 = scmp.ne.s32.totalorder %s130_s17, %s8069_s30  ;;  %p8075_p9 = scmp.lt.s32.totalorder %s8069_s30, %s8069_s30 }
  0x54   :  { %p8076_p10 = por %p8075_p9, %p8074_p8 }
  0x56   :  { %p8077_p11 = pnand %p8076_p10, %p8070_p7 }
  0x58   :  { %8080 = shalt.err (!%p8077_p11)
}
  0x59   :  { %s8328_s7 = smov 512   ;;  %s8329_s27 = smov 32  }
  0x5a   :  { %135 = dma.hbm_to_vmem [thread:$0]  %s8816_s9, 32768, %s130_s17, [#allocation18], %s8328_s7, %s8328_s7, %s8329_s27  }
  0x5b   :  { %s8330_s24 = smov [#allocation20]   ;;  %s8331_s29 = smov [#allocation2]  }
  0x5c   :  { %s152_s26 = sshll.u32 %s8330_s24, 4  ;;  %s34_s15 = sshll.u32 %s8331_s29, 4  ;;  %s153_s26 = int_to_ptr.vmem [resolvable:$true] %s152_s26  ;;  %s35_s15 = int_to_ptr.vmem [resolvable:$true] %s34_s15 }
  0x5d   :  { %s8081_s16 = scalar_lea.hbm %s8818_s11, 128 }
  0x5e   :  { %p8082_p12 = scmp.ne.s32.totalorder %s8818_s11, %s8081_s16  ;;  %p8085_p13 = scmp.lt.u32.totalorder %s8081_s16, %s8818_s11 }
  0x60   :  { %p8087_p0 = pnand %p8085_p13, %p8082_p12 }
  0x62   :  { %8090 = shalt.err (!%p8087_p0)
}
  0x63   :  { %s8091_s9 = scalar_lea.vmem %s153_s26, 128  ;;  %p8096_p2 = scmp.lt.s32.totalorder %s153_s26, %s153_s26 }
  0x64   :  { %p8092_p1 = scmp.ne.s32.totalorder %s153_s26, %s8091_s9  ;;  %p8097_p3 = scmp.lt.s32.totalorder %s8091_s9, %s8091_s9 }
  0x66   :  { %p8098_p4 = por %p8097_p3, %p8096_p2 }
  0x68   :  { %p8099_p5 = pnand %p8098_p4, %p8092_p1 }
  0x6a   :  { %8102 = shalt.err (!%p8099_p5)
}
  0x6b   :  { %155 = dma.hbm_to_vmem [thread:$0]  %s8818_s11, 128, %s153_s26, [#allocation21]  }
  0x6c   :  { %s8103_s30 = scalar_lea.hbm %s8807_s0, 128 }
  0x6d   :  { %p8104_p6 = scmp.ne.s32.totalorder %s8807_s0, %s8103_s30  ;;  %p8107_p7 = scmp.lt.u32.totalorder %s8103_s30, %s8807_s0 }
  0x6f   :  { %p8109_p8 = pnand %p8107_p7, %p8104_p6 }
  0x71   :  { %8112 = shalt.err (!%p8109_p8)
}
  0x72   :  { %s8113_s5 = scalar_lea.vmem %s35_s15, 128  ;;  %p8118_p10 = scmp.lt.s32.totalorder %s35_s15, %s35_s15 }
  0x73   :  { %p8114_p9 = scmp.ne.s32.totalorder %s35_s15, %s8113_s5  ;;  %p8119_p11 = scmp.lt.s32.totalorder %s8113_s5, %s8113_s5 }
  0x75   :  { %p8120_p12 = por %p8119_p11, %p8118_p10 }
  0x77   :  { %p8121_p13 = pnand %p8120_p12, %p8114_p9 }
  0x79   :  { %8124 = shalt.err (!%p8121_p13)
}
  0x7a   :  { %37 = dma.hbm_to_vmem [thread:$0]  %s8807_s0, 128, %s35_s15, [#allocation3]  }
  0x7b   :  { %s8332_s25 = smov [#allocation7]   ;;  %s8333_s18 = smov [#allocation10]  }
  0x7c   :  { %s56_s16 = sshll.u32 %s8332_s25, 4  ;;  %s78_s19 = sshll.u32 %s8333_s18, 4  ;;  %s57_s16 = int_to_ptr.vmem [resolvable:$true] %s56_s16  ;;  %s79_s19 = int_to_ptr.vmem [resolvable:$true] %s78_s19 }
  0x7d   :  { %s8125_s9 = scalar_lea.hbm %s8809_s2, 16 }
  0x7e   :  { %p8126_p0 = scmp.ne.s32.totalorder %s8809_s2, %s8125_s9  ;;  %p8129_p1 = scmp.lt.u32.totalorder %s8125_s9, %s8809_s2 }
  0x80   :  { %p8131_p2 = pnand %p8129_p1, %p8126_p0 }
  0x82   :  { %8134 = shalt.err (!%p8131_p2)
}
  0x83   :  { %s8135_s0 = scalar_lea.vmem %s57_s16, 16  ;;  %s8139_s15 = scalar_lea.vmem %s57_s16, 32 }
  0x84   :  { %p8136_p3 = scmp.ne.s32.totalorder %s57_s16, %s8135_s0  ;;  %p8140_p4 = scmp.lt.s32.totalorder %s57_s16, %s57_s16 }
  0x85   :  { %p8141_p5 = scmp.lt.s32.totalorder %s8139_s15, %s8135_s0 }
  0x87   :  { %p8142_p6 = por %p8141_p5, %p8140_p4 }
  0x89   :  { %p8143_p7 = pnand %p8142_p6, %p8136_p3 }
  0x8b   :  { %8146 = shalt.err (!%p8143_p7)
}
  0x8c   :  { %59 = dma.hbm_to_vmem [thread:$0]  %s8809_s2, 16, %s57_s16, [#allocation6]  }
  0x8d   :  { %s8147_s29 = scalar_lea.hbm %s8811_s4, 32 }
  0x8e   :  { %p8148_p8 = scmp.ne.s32.totalorder %s8811_s4, %s8147_s29  ;;  %p8151_p9 = scmp.lt.u32.totalorder %s8147_s29, %s8811_s4 }
  0x90   :  { %p8153_p10 = pnand %p8151_p9, %p8148_p8 }
  0x92   :  { %8156 = shalt.err (!%p8153_p10)
}
  0x93   :  { %s8157_s18 = scalar_lea.vmem %s79_s19, 32  ;;  %p8162_p12 = scmp.lt.s32.totalorder %s79_s19, %s79_s19 }
  0x94   :  { %p8158_p11 = scmp.ne.s32.totalorder %s79_s19, %s8157_s18  ;;  %p8163_p13 = scmp.lt.s32.totalorder %s8157_s18, %s8157_s18 }
  0x96   :  { %p8164_p0 = por %p8163_p13, %p8162_p12 }
  0x98   :  { %p8165_p1 = pnand %p8164_p0, %p8158_p11 }
  0x9a   :  { %8168 = shalt.err (!%p8165_p1)
}
  0x9b   :  { %81 = dma.hbm_to_vmem [thread:$0]  %s8811_s4, 32, %s79_s19, [#allocation9]  }
  0x9c   :  { %s8334_s20 = smov [#allocation13]   ;;  %s8169_s28 = scalar_lea.hbm %s8813_s6, 8192 }
  0x9d   :  { %s97_s3 = sshll.u32 %s8334_s20, 4  ;;  %p8170_p2 = scmp.ne.s32.totalorder %s8813_s6, %s8169_s28  ;;  %s98_s3 = int_to_ptr.vmem [resolvable:$true] %s97_s3 }
  0x9e   :  { %p8173_p3 = scmp.lt.u32.totalorder %s8169_s28, %s8813_s6 }
  0xa0   :  { %p8175_p4 = pnand %p8173_p3, %p8170_p2 }
  0xa2   :  { %8178 = shalt.err (!%p8175_p4)
}
  0xa3   :  { %s8179_s30 = scalar_lea.vmem %s98_s3, 8192  ;;  %p8184_p6 = scmp.lt.s32.totalorder %s98_s3, %s98_s3 }
  0xa4   :  { %p8180_p5 = scmp.ne.s32.totalorder %s98_s3, %s8179_s30  ;;  %p8185_p7 = scmp.lt.s32.totalorder %s8179_s30, %s8179_s30 }
  0xa6   :  { %p8186_p8 = por %p8185_p7, %p8184_p6 }
  0xa8   :  { %p8187_p9 = pnand %p8186_p8, %p8180_p5 }
  0xaa   :  { %8190 = shalt.err (!%p8187_p9)
}
  0xab   :  { %s8335_s4 = smov 256   ;;  %s8336_s19 = smov 16  }
  0xac   :  { %103 = dma.hbm_to_vmem [thread:$0]  %s8813_s6, 8192, %s98_s3, [#allocation12], %s8335_s4, %s8335_s4, %s8336_s19  }
  0xad   :  { %s8337_s24 = smov [#allocation16]   ;;  %s8338_s5 = smov [#allocation19]  }
  0xae   :  { %s120_s29 = sshll.u32 %s8337_s24, 4  ;;  %s142_s11 = sshll.u32 %s8338_s5, 4  ;;  %s121_s29 = int_to_ptr.vmem [resolvable:$true] %s120_s29  ;;  %s143_s11 = int_to_ptr.vmem [resolvable:$true] %s142_s11 }
  0xaf   :  { %s8191_s18 = scalar_lea.hbm %s8815_s8, 64 }
  0xb0   :  { %p8192_p10 = scmp.ne.s32.totalorder %s8815_s8, %s8191_s18  ;;  %p8195_p11 = scmp.lt.u32.totalorder %s8191_s18, %s8815_s8 }
  0xb2   :  { %p8197_p12 = pnand %p8195_p11, %p8192_p10 }
  0xb4   :  { %8200 = shalt.err (!%p8197_p12)
}
  0xb5   :  { %s8201_s6 = scalar_lea.vmem %s121_s29, 64  ;;  %p8206_p0 = scmp.lt.s32.totalorder %s121_s29, %s121_s29 }
  0xb6   :  { %p8202_p13 = scmp.ne.s32.totalorder %s121_s29, %s8201_s6  ;;  %p8207_p1 = scmp.lt.s32.totalorder %s8201_s6, %s8201_s6 }
  0xb8   :  { %p8208_p2 = por %p8207_p1, %p8206_p0 }
  0xba   :  { %p8209_p3 = pnand %p8208_p2, %p8202_p13 }
  0xbc   :  { %8212 = shalt.err (!%p8209_p3)
}
  0xbd   :  { %123 = dma.hbm_to_vmem [thread:$0]  %s8815_s8, 64, %s121_s29, [#allocation15]  }
  0xbe   :  { %s8213_s1 = scalar_lea.hbm %s8817_s10, 128 }
  0xbf   :  { %p8214_p4 = scmp.ne.s32.totalorder %s8817_s10, %s8213_s1  ;;  %p8217_p5 = scmp.lt.u32.totalorder %s8213_s1, %s8817_s10 }
  0xc1   :  { %p8219_p6 = pnand %p8217_p5, %p8214_p4 }
  0xc3   :  { %8222 = shalt.err (!%p8219_p6)
}
  0xc4   :  { %s8223_s19 = scalar_lea.vmem %s143_s11, 128  ;;  %p8228_p8 = scmp.lt.s32.totalorder %s143_s11, %s143_s11 }
  0xc5   :  { %p8224_p7 = scmp.ne.s32.totalorder %s143_s11, %s8223_s19  ;;  %p8229_p9 = scmp.lt.s32.totalorder %s8223_s19, %s8223_s19 }
  0xc7   :  { %p8230_p10 = por %p8229_p9, %p8228_p8 }
  0xc9   :  { %p8231_p11 = pnand %p8230_p10, %p8224_p7 }
  0xcb   :  { %8234 = shalt.err (!%p8231_p11)
}
  0xcc   :  { %145 = dma.hbm_to_vmem [thread:$0]  %s8817_s10, 128, %s143_s11, [#allocation18]  }
  0xcd   :  { %s8339_s23 = smov [#allocation22]   ;;  %s8340_s29 = smov [#allocation23]  }
  0xce   :  { %s161_s24 = sshll.u32 %s8339_s23, 4  ;;  %s174_s5 = sshll.u32 %s8340_s29, 4  ;;  %s162_s24 = int_to_ptr.vmem [resolvable:$true] %s161_s24  ;;  %s175_s5 = int_to_ptr.vmem [resolvable:$true] %s174_s5 }
  0xcf   :  { %s8235_s18 = scalar_lea.hbm %s8819_s12, 65536 }
  0xd0   :  { %p8236_p12 = scmp.ne.s32.totalorder %s8819_s12, %s8235_s18  ;;  %p8239_p13 = scmp.lt.u32.totalorder %s8235_s18, %s8819_s12 }
  0xd2   :  { %p8241_p0 = pnand %p8239_p13, %p8236_p12 }
  0xd4   :  { %8244 = shalt.err (!%p8241_p0)
}
  0xd5   :  { %s8245_s10 = scalar_lea.vmem %s162_s24, 65536  ;;  %p8250_p2 = scmp.lt.s32.totalorder %s162_s24, %s162_s24 }
  0xd6   :  { %p8246_p1 = scmp.ne.s32.totalorder %s162_s24, %s8245_s10  ;;  %p8251_p3 = scmp.lt.s32.totalorder %s8245_s10, %s8245_s10 }
  0xd8   :  { %p8252_p4 = por %p8251_p3, %p8250_p2 }
  0xda   :  { %p8253_p5 = pnand %p8252_p4, %p8246_p1 }
  0xdc   :  { %8256 = shalt.err (!%p8253_p5)
}
  0xdd   :  { %167 = dma.hbm_to_vmem [thread:$0]  %s8819_s12, 65536, %s162_s24, [#allocation21], %s8328_s7, %s8328_s7, %s8329_s27  }
  0xde   :  { %s8257_s28 = scalar_lea.hbm %s8820_s13, 128 }
  0xdf   :  { %p8258_p6 = scmp.ne.s32.totalorder %s8820_s13, %s8257_s28  ;;  %p8261_p7 = scmp.lt.u32.totalorder %s8257_s28, %s8820_s13 }
  0xe1   :  { %p8263_p8 = pnand %p8261_p7, %p8258_p6 }
  0xe3   :  { %8266 = shalt.err (!%p8263_p8)
}
  0xe4   :  { %s8267_s30 = scalar_lea.vmem %s175_s5, 128  ;;  %p8272_p10 = scmp.lt.s32.totalorder %s175_s5, %s175_s5 }
  0xe5   :  { %p8268_p9 = scmp.ne.s32.totalorder %s175_s5, %s8267_s30  ;;  %p8273_p11 = scmp.lt.s32.totalorder %s8267_s30, %s8267_s30 }
  0xe7   :  { %p8274_p12 = por %p8273_p11, %p8272_p10 }
  0xe9   :  { %p8275_p13 = pnand %p8274_p12, %p8268_p9 }
  0xeb   :  { %8278 = shalt.err (!%p8275_p13)
}
  0xec   :  { %177 = dma.hbm_to_vmem [thread:$0]  %s8820_s13, 128, %s175_s5, [#allocation24]  }
  0xed   :  { %8301 = dma.done.wait [#allocation3], 128  }
  0xee   :  { %8302 = vsyncadd [#allocation3], 4294967168 }
  0xef   :  { %8303 = dma.done.wait [#allocation6], 848  }
  0xf0   :  { %8304 = vsyncadd [#allocation6], 4294966448 }
  0xf1   :  { %8305 = dma.done.wait [#allocation9], 2080  }
  0xf2   :  { %8306 = vsyncadd [#allocation9], 4294965216 }
  0xf3   :  { %8307 = dma.done.wait [#allocation12], 8224  }
  0xf4   :  { %8308 = vsyncadd [#allocation12], 4294959072 }
  0xf5   :  { %8309 = dma.done.wait [#allocation15], 128  }
  0xf6   :  { %8310 = vsyncadd [#allocation15], 4294967168 }
  0xf7   :  { %8311 = dma.done.wait [#allocation18], 32896  }
  0xf8   :  { %8312 = vsyncadd [#allocation18], 4294934400 }
  0xf9   :  { %8313 = dma.done.wait [#allocation21], 65664  }
  0xfa   :  { %8314 = vsyncadd [#allocation21], 4294901632 }
  0xfb   :  { %8315 = dma.done.wait [#allocation24], 128  }
  0xfc   :  { %8316 = vsyncadd [#allocation24], 4294967168  ;;  %v8341_v0 = vmov 0.0   ;;  %vm8342_vm0 = vmmov 0   ;;  %v7826_v1 = vld [vmem:[#allocation5] sm:$0xff]   ;;  %v7827_v2 = vld [vmem:[#allocation5 + $0x8] sm:$0xff]  }
  0xfd   :  { %7710 = vmatprep.subr.bf16.mxu0 %v8341_v0  ;;  %7724 = vmatprep.mubr.msk.bf16.mxu0 %vm8342_vm0, %v8341_v0  ;;  %v7828_v3 = vld [vmem:[#allocation5 + $0x10] sm:$0xff]   ;;  %v7833_v4 = vld [vmem:[#allocation8 + $0x4] ss:$8 sps:$4 sm:$0xff]   ;;  %v7831_v13 = vld [vmem:[#allocation5 + $0x28] sm:$0xff]   ;;  %vm286_vm1 = vcmask 1041408   ;;  %vm282_vm2 = vcmask 818176  }
  0xfe   :  { %7711 = vmatpush3.bf16.msra.mxu0 %v7826_v1  ;;  %v7835_v5 = vld [vmem:[#allocation8] ss:$8 sps:$4 sm:$0xff]   ;;  %430 = vmatprep.subr.bf16.mxu1 %v7833_v4  ;;  %v7836_v6 = vld [vmem:[#allocation8 + $0x14] ss:$8 sps:$4 sm:$0xff]   ;;  %v7838_v8 = vld [vmem:[#allocation8 + $0x10] ss:$8 sps:$4 sm:$0xff]  }
  0xff   :  { %7712 = vmatprep.subr.bf16.mxu0 %v8341_v0  ;;  %v7829_v7 = vld [vmem:[#allocation5 + $0x18] sm:$0xff]   ;;  %431 = vmatpush1.bf16.msra.mxu1 %v7835_v5  ;;  %v7830_v10 = vld [vmem:[#allocation5 + $0x20] sm:$0xff]   ;;  %v7842_v12 = vld [vmem:[#allocation8 + $0x34] ss:$8 sps:$4 sm:$0xff]   ;;  %v8343_v27 = vmov 0   ;;  %s8344_s13 = smov [#allocation25]  }
 0x100   :  { %432 = vmatprep.subr.bf16.mxu1 %v7836_v6  ;;  %v7839_v9 = vld [vmem:[#allocation8 + $0x24] ss:$8 sps:$4 sm:$0xff]   ;;  %v7841_v11 = vld [vmem:[#allocation8 + $0x20] ss:$8 sps:$4 sm:$0xff]   ;;  %v7844_v14 = vld [vmem:[#allocation8 + $0x30] ss:$8 sps:$4 sm:$0xff]   ;;  %462 = vmatprep.mubr.bf16.mxu1 %v8343_v27 }
 0x101   :  { %v7832_v15 = vld [vmem:[#allocation5 + $0x30] ss:$0 sps:$4 sm:$0x33]   ;;  %v7845_v16 = vld [vmem:[#allocation8 + $0x44] ss:$8 sps:$4 sm:$0xff]   ;;  %s6829_s27 = sshll.u32 %s8344_s13, 4  ;;  %s6830_s27 = int_to_ptr.vmem [resolvable:$true] %s6829_s27 }
 0x102   :  { %7713 = vmatpush3.bf16.msra.mxu0 %v7827_v2  ;;  %v221_v17 = vld [vmem:[#allocation2] sm:$0xff]  ;;  %v7848_v19 = vld [vmem:[#allocation8 + $0x54] ss:$8 sps:$4 sm:$0xff]   ;;  %v288_v20 = vsel %vm286_vm1, %v7832_v15, 0  ;;  %v7850_v21 = vld [vmem:[#allocation8 + $0x50] ss:$8 sps:$4 sm:$0xff]   ;;  %p8284_p1 = scmp.lt.s32.totalorder %s6830_s27, %s6830_s27 }
 0x103   :  { %7714 = vmatprep.subr.bf16.mxu0 %v8341_v0  ;;  %433 = vmatpush1.bf16.msra.mxu1 %v7838_v8  ;;  %v7847_v18 = vld [vmem:[#allocation8 + $0x40] ss:$8 sps:$4 sm:$0xff]   ;;  %v222_v22 = vpack.c.bf16 %v221_v17, %v221_v17  ;;  %v7851_v23 = vld [vmem:[#allocation8 + $0x64] ss:$8 sps:$4 sm:$0xff]   ;;  %v7854_v25 = vld [vmem:[#allocation8 + $0x74] ss:$8 sps:$4 sm:$0xff]  }
 0x104   :  { %434 = vmatprep.subr.bf16.mxu1 %v7839_v9  ;;  %v7853_v24 = vld [vmem:[#allocation8 + $0x60] ss:$8 sps:$4 sm:$0xff]   ;;  %v7856_v26 = vld [vmem:[#allocation8 + $0x70] ss:$8 sps:$4 sm:$0xff]   ;;  %v7857_v28 = vld [vmem:[#allocation13] ss:$16 sps:$4 sm:$0xff]  }
 0x105   :  { %v7859_v29 = vld [vmem:[#allocation13 + $0x4] ss:$16 sps:$4 sm:$0xff]   ;;  %v7862_v30 = vld [vmem:[#allocation13 + $0xc] ss:$16 sps:$4 sm:$0xff]   ;;  %v7863_v32 = vld [vmem:[#allocation13 + $0x20] ss:$16 sps:$4 sm:$0xff]  }
 0x106   :  { %7715 = vmatpush3.bf16.msra.mxu0 %v7828_v3  ;;  %v7865_v31 = vld [vmem:[#allocation13 + $0x24] ss:$16 sps:$4 sm:$0xff]   ;;  %v7869_v34 = vld [vmem:[#allocation13 + $0x40] ss:$16 sps:$4 sm:$0xff]   ;;  %v6845_v55 = vld [vmem:[#allocation7] ss:$0 sm:$0xff] }
 0x107   :  { %7716 = vmatprep.subr.bf16.mxu0 %v8341_v0  ;;  %435 = vmatpush1.bf16.msra.mxu1 %v7841_v11  ;;  %v7871_v33 = vld [vmem:[#allocation13 + $0x44] ss:$16 sps:$4 sm:$0xff]   ;;  %v7875_v36 = vld [vmem:[#allocation13 + $0x60] ss:$16 sps:$4 sm:$0xff]   ;;  %v7860_v63 = vld [vmem:[#allocation13 + $0x8] ss:$16 sps:$4 sm:$0xff]  }
 0x108   :  { %436 = vmatprep.subr.bf16.mxu1 %v7842_v12  ;;  %v7877_v35 = vld [vmem:[#allocation13 + $0x64] ss:$16 sps:$4 sm:$0xff]   ;;  %v7881_v38 = vld [vmem:[#allocation13 + $0x80] ss:$16 sps:$4 sm:$0xff]   ;;  %v7868_v1 = vld [vmem:[#allocation13 + $0x2c] ss:$16 sps:$4 sm:$0xff]  }
 0x109   :  { %v7883_v37 = vld [vmem:[#allocation13 + $0x84] ss:$16 sps:$4 sm:$0xff]   ;;  %v7887_v40 = vld [vmem:[#allocation13 + $0xa0] ss:$16 sps:$4 sm:$0xff]   ;;  %v7866_v2 = vld [vmem:[#allocation13 + $0x28] ss:$16 sps:$4 sm:$0xff]  }
 0x10a   :  { %7717 = vmatpush3.bf16.msra.mxu0 %v7829_v7  ;;  %v7889_v39 = vld [vmem:[#allocation13 + $0xa4] ss:$16 sps:$4 sm:$0xff]   ;;  %v7893_v42 = vld [vmem:[#allocation13 + $0xc0] ss:$16 sps:$4 sm:$0xff]   ;;  %v7874_v3 = vld [vmem:[#allocation13 + $0x4c] ss:$16 sps:$4 sm:$0xff]  }
 0x10b   :  { %7718 = vmatprep.subr.bf16.mxu0 %v8341_v0  ;;  %437 = vmatpush1.bf16.msra.mxu1 %v7844_v14  ;;  %v7895_v41 = vld [vmem:[#allocation13 + $0xc4] ss:$16 sps:$4 sm:$0xff]   ;;  %v7899_v44 = vld [vmem:[#allocation13 + $0xe0] ss:$16 sps:$4 sm:$0xff]   ;;  %v7872_v4 = vld [vmem:[#allocation13 + $0x48] ss:$16 sps:$4 sm:$0xff]  }
 0x10c   :  { %438 = vmatprep.subr.bf16.mxu1 %v7845_v16  ;;  %v7901_v43 = vld [vmem:[#allocation13 + $0xe4] ss:$16 sps:$4 sm:$0xff]   ;;  %v7905_v46 = vld [vmem:[#allocation13 + $0x100] ss:$16 sps:$4 sm:$0xff]   ;;  %v7880_v5 = vld [vmem:[#allocation13 + $0x6c] ss:$16 sps:$4 sm:$0xff]  }
 0x10d   :  { %v7907_v45 = vld [vmem:[#allocation13 + $0x104] ss:$16 sps:$4 sm:$0xff]   ;;  %v7911_v48 = vld [vmem:[#allocation13 + $0x120] ss:$16 sps:$4 sm:$0xff]   ;;  %v7878_v6 = vld [vmem:[#allocation13 + $0x68] ss:$16 sps:$4 sm:$0xff]  }
 0x10e   :  { %7719 = vmatpush3.bf16.msra.mxu0 %v7830_v10  ;;  %v7913_v47 = vld [vmem:[#allocation13 + $0x124] ss:$16 sps:$4 sm:$0xff]   ;;  %v7917_v50 = vld [vmem:[#allocation13 + $0x140] ss:$16 sps:$4 sm:$0xff]   ;;  %v7886_v7 = vld [vmem:[#allocation13 + $0x8c] ss:$16 sps:$4 sm:$0xff]  }
 0x10f   :  { %7720 = vmatprep.subr.bf16.mxu0 %v8341_v0  ;;  %439 = vmatpush1.bf16.msra.mxu1 %v7847_v18  ;;  %v7919_v49 = vld [vmem:[#allocation13 + $0x144] ss:$16 sps:$4 sm:$0xff]   ;;  %v7923_v52 = vld [vmem:[#allocation13 + $0x160] ss:$16 sps:$4 sm:$0xff]   ;;  %v7884_v8 = vld [vmem:[#allocation13 + $0x88] ss:$16 sps:$4 sm:$0xff]  }
 0x110   :  { %440 = vmatprep.subr.bf16.mxu1 %v7848_v19  ;;  %v7925_v51 = vld [vmem:[#allocation13 + $0x164] ss:$16 sps:$4 sm:$0xff]   ;;  %v7929_v54 = vld [vmem:[#allocation13 + $0x180] ss:$16 sps:$4 sm:$0xff]   ;;  %v7892_v9 = vld [vmem:[#allocation13 + $0xac] ss:$16 sps:$4 sm:$0xff]  }
 0x111   :  { %v7931_v53 = vld [vmem:[#allocation13 + $0x184] ss:$16 sps:$4 sm:$0xff]   ;;  %v7890_v10 = vld [vmem:[#allocation13 + $0xa8] ss:$16 sps:$4 sm:$0xff]   ;;  %v7898_v11 = vld [vmem:[#allocation13 + $0xcc] ss:$16 sps:$4 sm:$0xff]  }
 0x112   :  { %7721 = vmatpush3.bf16.msra.mxu0 %v7831_v13  ;;  %v7896_v12 = vld [vmem:[#allocation13 + $0xc8] ss:$16 sps:$4 sm:$0xff]   ;;  %v7904_v13 = vld [vmem:[#allocation13 + $0xec] ss:$16 sps:$4 sm:$0xff]   ;;  %v7935_v27 = vld [vmem:[#allocation13 + $0x1a0] ss:$16 sps:$4 sm:$0xff]  }
 0x113   :  { %7722 = vmatprep.subr.bf16.mxu0 %v8341_v0  ;;  %441 = vmatpush1.bf16.msra.mxu1 %v7850_v21  ;;  %v7902_v14 = vld [vmem:[#allocation13 + $0xe8] ss:$16 sps:$4 sm:$0xff]   ;;  %v7910_v15 = vld [vmem:[#allocation13 + $0x10c] ss:$16 sps:$4 sm:$0xff]   ;;  %s8279_s4 = scalar_lea.vmem %s6830_s27, 1024 }
 0x114   :  { %442 = vmatprep.subr.bf16.mxu1 %v7851_v23  ;;  %v7908_v16 = vld [vmem:[#allocation13 + $0x108] ss:$16 sps:$4 sm:$0xff]   ;;  %v7916_v17 = vld [vmem:[#allocation13 + $0x12c] ss:$16 sps:$4 sm:$0xff]   ;;  %p8280_p0 = scmp.ne.s32.totalorder %s6830_s27, %s8279_s4  ;;  %p8285_p2 = scmp.lt.s32.totalorder %s8279_s4, %s8279_s4 }
 0x115   :  { %v7914_v18 = vld [vmem:[#allocation13 + $0x128] ss:$16 sps:$4 sm:$0xff]   ;;  %v7922_v19 = vld [vmem:[#allocation13 + $0x14c] ss:$16 sps:$4 sm:$0xff]  }
 0x116   :  { %7723 = vmatpush3.bf16.msra.mxu0 %v288_v20  ;;  %v7920_v20 = vld [vmem:[#allocation13 + $0x148] ss:$16 sps:$4 sm:$0xff]   ;;  %v7928_v21 = vld [vmem:[#allocation13 + $0x16c] ss:$16 sps:$4 sm:$0xff]   ;;  %p8286_p3 = por %p8285_p2, %p8284_p1 }
 0x117   :  { %443 = vmatpush1.bf16.msra.mxu1 %v7853_v24  ;;  %891 = vmatprep.subr.bf16.mxu0 %v7859_v29  ;;  %v7934_v23 = vld [vmem:[#allocation13 + $0x18c] ss:$16 sps:$4 sm:$0xff]   ;;  %v7932_v24 = vld [vmem:[#allocation13 + $0x188] ss:$16 sps:$4 sm:$0xff]   ;;  %v7943_v29 = vld [vmem:[#allocation13 + $0x1c4] ss:$16 sps:$4 sm:$0xff]  }
 0x118   :  { %444 = vmatprep.subr.bf16.mxu1 %v7854_v25  ;;  %v7937_v25 = vld [vmem:[#allocation13 + $0x1a4] ss:$16 sps:$4 sm:$0xff]   ;;  %p8287_p4 = pnand %p8286_p3, %p8280_p0 }
 0x119   :  { %7725 = vmatmul.mubr.msk.bf16.vlgmr.msra.gmra.mrb[0].mxu0 %vm282_vm2, %v222_v22  ;;  %v7926_v22 = vld [vmem:[#allocation13 + $0x168] ss:$16 sps:$4 sm:$0xff]  }
 0x11a   :  { %892 = vmatpush1.bf16.msra.mxu0 %v7857_v28  ;;  %v7938_v28 = vld [vmem:[#allocation13 + $0x1a8] ss:$16 sps:$4 sm:$0xff]  }
 0x11b   :  { %445 = vmatpush1.bf16.msra.mxu1 %v7856_v26  ;;  %893 = vmatprep.subr.bf16.mxu0 %v7865_v31  ;;  %v7940_v26 = vld [vmem:[#allocation13 + $0x1ac] ss:$16 sps:$4 sm:$0xff]   ;;  %v7941_v31 = vld [vmem:[#allocation13 + $0x1c0] ss:$16 sps:$4 sm:$0xff]  }
 0x11c   :  { %932 = vmatprep.subr.bf16.mxu1 %v7862_v30  ;;  %v7946_v30 = vld [vmem:[#allocation13 + $0x1cc] ss:$16 sps:$4 sm:$0xff]  }
 0x11e   :  { %894 = vmatpush1.bf16.msra.mxu0 %v7863_v32  ;;  %v7944_v32 = vld [vmem:[#allocation13 + $0x1c8] ss:$16 sps:$4 sm:$0xff]  }
 0x11f   :  { %895 = vmatprep.subr.bf16.mxu0 %v7871_v33  ;;  %v7949_v33 = vld [vmem:[#allocation13 + $0x1e4] ss:$16 sps:$4 sm:$0xff]  }
 0x122   :  { %896 = vmatpush1.bf16.msra.mxu0 %v7869_v34  ;;  %v7952_v34 = vld [vmem:[#allocation13 + $0x1ec] ss:$16 sps:$4 sm:$0xff]  }
 0x123   :  { %897 = vmatprep.subr.bf16.mxu0 %v7877_v35  ;;  %v7947_v35 = vld [vmem:[#allocation13 + $0x1e0] ss:$16 sps:$4 sm:$0xff]  }
 0x126   :  { %898 = vmatpush1.bf16.msra.mxu0 %v7875_v36  ;;  %v7950_v36 = vld [vmem:[#allocation13 + $0x1e8] ss:$16 sps:$4 sm:$0xff]  }
 0x127   :  { %899 = vmatprep.subr.bf16.mxu0 %v7883_v37  ;;  %v1041_v37 = vld [vmem:[#allocation17] sm:$0xff] }
 0x12a   :  { %900 = vmatpush1.bf16.msra.mxu0 %v7881_v38  ;;  %v1045_v38 = vld [vmem:[#allocation17 + $0x20] sm:$0xff] }
 0x12b   :  { %901 = vmatprep.subr.bf16.mxu0 %v7889_v39  ;;  %v1042_v39 = vld [vmem:[#allocation17 + $0x8] sm:$0xff] }
 0x12e   :  { %902 = vmatpush1.bf16.msra.mxu0 %v7887_v40  ;;  %v6934_v40 = vcombine.low %v1041_v37, %v1045_v38 }
 0x12f   :  { %903 = vmatprep.subr.bf16.mxu0 %v7895_v41  ;;  %v6935_v41 = vcombine.high %v1041_v37, %v1045_v38  ;;  %v1082_v37 = vld [vmem:[#allocation17 + $0x148] sm:$0xff] }
 0x130   :  { %v1086_v38 = vld [vmem:[#allocation17 + $0x168] sm:$0xff] }
 0x132   :  { %904 = vmatpush1.bf16.msra.mxu0 %v7893_v42  ;;  %v1046_v42 = vld [vmem:[#allocation17 + $0x28] sm:$0xff] }
 0x133   :  { %905 = vmatprep.subr.bf16.mxu0 %v7901_v43  ;;  %v6936_v43 = vcombine.low %v1042_v39, %v1046_v42 }
 0x136   :  { %906 = vmatpush1.bf16.msra.mxu0 %v7899_v44  ;;  %v6937_v44 = vcombine.high %v1042_v39, %v1046_v42  ;;  %v6977_v42 = vcombine.high %v1082_v37, %v1086_v38 }
 0x137   :  { %907 = vmatprep.subr.bf16.mxu0 %v7907_v45  ;;  %v473_v45 = vlaneseq }
 0x13a   :  { %908 = vmatpush1.bf16.msra.mxu0 %v7905_v46  ;;  %v8594_v46 = vshrl.u32 %v473_v45, 7  ;;  %v1090_v45 = vld [vmem:[#allocation17 + $0x188] sm:$0xff] }
 0x13b   :  { %909 = vmatprep.subr.bf16.mxu0 %v7913_v47 }
 0x13c   :  { %v8597_v47 = vsub.s32 0, %v8594_v46 }
 0x13e   :  { %910 = vmatpush1.bf16.msra.mxu0 %v7911_v48  ;;  %v471_v48 = vld [vmem:[#allocation10] sm:$0x3] }
 0x13f   :  { %911 = vmatprep.subr.bf16.mxu0 %v7919_v49  ;;  %v8600_v49 = vsub.s32 1, %v8594_v46 }
 0x142   :  { %912 = vmatpush1.bf16.msra.mxu0 %v7917_v50  ;;  %v485_v50 = vld [vmem:[#allocation11] sm:$0x3] }
 0x143   :  { %913 = vmatprep.subr.bf16.mxu0 %v7925_v51  ;;  %v476_v51 = vrot.slane %v471_v48, %v8597_v47 }
 0x146   :  { %914 = vmatpush1.bf16.msra.mxu0 %v7923_v52  ;;  %v480_v52 = vrot.slane %v471_v48, %v8600_v49  ;;  %v1094_v48 = vld [vmem:[#allocation17 + $0x1a8] sm:$0xff] }
 0x147   :  { %915 = vmatprep.subr.bf16.mxu0 %v7931_v53  ;;  %v490_v53 = vrot.slane %v485_v50, %v8597_v47 }
 0x14a   :  { %916 = vmatpush1.bf16.msra.mxu0 %v7929_v54 }
 0x14b   :  { %917 = vmatprep.subr.bf16.mxu0 %v7937_v25 }
 0x14e   :  { %918 = vmatpush1.bf16.msra.mxu0 %v7935_v27  ;;  %v1073_v27 = vld [vmem:[#allocation17 + $0x100] sm:$0xff] }
 0x14f   :  { %919 = vmatprep.subr.bf16.mxu0 %v7943_v29  ;;  %v1074_v29 = vld [vmem:[#allocation17 + $0x108] sm:$0xff] }
 0x152   :  { %920 = vmatpush1.bf16.msra.mxu0 %v7941_v31 }
 0x153   :  { %921 = vmatprep.subr.bf16.mxu0 %v7949_v33 }
 0x156   :  { %922 = vmatpush1.bf16.msra.mxu0 %v7947_v35  ;;  %v1081_v35 = vld [vmem:[#allocation17 + $0x140] sm:$0xff] }
 0x157   :  { %2577 = vmatprep.subr.bf16.mxu0 %v6935_v41 }
 0x1ec   :  { %v324_v56 = vpop.f32.mrb[0].mxu0 }
 0x1ed   :  { %v325_v57 = vadd.f32 %v6845_v55, %v324_v56  ;;  %v7726_v58 = vpop.f32.mrb[1].mxu0  ;;  %v494_v55 = vrot.slane %v485_v50, %v8600_v49 }
 0x1ee   :  { %v327_v59 = vpop.f32.mrb[2].mxu0 }
 0x1ef   :  { %vm330_vm3 = vcmp.gt.f32.partialorder %v325_v57, 0.0  ;;  %v331_v60 = vmul.f32 0.2, %v325_v57  ;;  %v7727_v61 = vpop.f32.mrb[3].mxu0 }
 0x1f1   :  { %v332_v62 = vsel %vm330_vm3, %v325_v57, %v331_v60 }
 0x1f2   :  { %v333_v0 = vpack.c.bf16 %v332_v62, %v332_v62 }
 0x1f4   :  { %463 = vmatmul.mubr.bf16.vlgmr.msra.gmra.mrb[0].mxu1 %v333_v0 }
 0x1f5   :  { %933 = vmatpush1.bf16.msra.mxu1 %v7860_v63 }
 0x1f6   :  { %934 = vmatprep.subr.bf16.mxu1 %v7868_v1  ;;  %v1049_v1 = vld [vmem:[#allocation17 + $0x40] sm:$0xff] }
 0x1f9   :  { %935 = vmatpush1.bf16.msra.mxu1 %v7866_v2 }
 0x1fa   :  { %936 = vmatprep.subr.bf16.mxu1 %v7874_v3  ;;  %v1053_v3 = vld [vmem:[#allocation17 + $0x60] sm:$0xff] }
 0x1fd   :  { %937 = vmatpush1.bf16.msra.mxu1 %v7872_v4  ;;  %v1050_v4 = vld [vmem:[#allocation17 + $0x48] sm:$0xff] }
 0x1fe   :  { %938 = vmatprep.subr.bf16.mxu1 %v7880_v5  ;;  %v1054_v5 = vld [vmem:[#allocation17 + $0x68] sm:$0xff] }
 0x201   :  { %939 = vmatpush1.bf16.msra.mxu1 %v7878_v6 }
 0x202   :  { %940 = vmatprep.subr.bf16.mxu1 %v7886_v7 }
 0x205   :  { %941 = vmatpush1.bf16.msra.mxu1 %v7884_v8 }
 0x206   :  { %942 = vmatprep.subr.bf16.mxu1 %v7892_v9  ;;  %v6943_v9 = vcombine.high %v1049_v1, %v1053_v3 }
 0x209   :  { %943 = vmatpush1.bf16.msra.mxu1 %v7890_v10  ;;  %v6945_v10 = vcombine.high %v1050_v4, %v1054_v5 }
 0x20a   :  { %944 = vmatprep.subr.bf16.mxu1 %v7898_v11  ;;  %v1057_v11 = vld [vmem:[#allocation17 + $0x80] sm:$0xff] }
 0x20d   :  { %945 = vmatpush1.bf16.msra.mxu1 %v7896_v12  ;;  %v1061_v12 = vld [vmem:[#allocation17 + $0xa0] sm:$0xff] }
 0x20e   :  { %946 = vmatprep.subr.bf16.mxu1 %v7904_v13  ;;  %v1058_v13 = vld [vmem:[#allocation17 + $0x88] sm:$0xff] }
 0x211   :  { %947 = vmatpush1.bf16.msra.mxu1 %v7902_v14  ;;  %v1062_v14 = vld [vmem:[#allocation17 + $0xa8] sm:$0xff] }
 0x212   :  { %948 = vmatprep.subr.bf16.mxu1 %v7910_v15  ;;  %v6942_v15 = vcombine.low %v1049_v1, %v1053_v3  ;;  %v1110_v1 = vld [vmem:[#allocation17 + $0x228] sm:$0xff] }
 0x215   :  { %949 = vmatpush1.bf16.msra.mxu1 %v7908_v16  ;;  %v6944_v16 = vcombine.low %v1050_v4, %v1054_v5 }
 0x216   :  { %950 = vmatprep.subr.bf16.mxu1 %v7916_v17  ;;  %v6951_v17 = vcombine.high %v1057_v11, %v1061_v12 }
 0x219   :  { %951 = vmatpush1.bf16.msra.mxu1 %v7914_v18  ;;  %v6953_v18 = vcombine.high %v1058_v13, %v1062_v14 }
 0x21a   :  { %952 = vmatprep.subr.bf16.mxu1 %v7922_v19  ;;  %v1065_v19 = vld [vmem:[#allocation17 + $0xc0] sm:$0xff] }
 0x21d   :  { %953 = vmatpush1.bf16.msra.mxu1 %v7920_v20  ;;  %v1069_v20 = vld [vmem:[#allocation17 + $0xe0] sm:$0xff] }
 0x21e   :  { %954 = vmatprep.subr.bf16.mxu1 %v7928_v21  ;;  %v1066_v21 = vld [vmem:[#allocation17 + $0xc8] sm:$0xff]  ;;  %v6959_v25 = vcombine.high %v1065_v19, %v1069_v20  ;;  %v6958_v31 = vcombine.low %v1065_v19, %v1069_v20 }
 0x221   :  { %955 = vmatpush1.bf16.msra.mxu1 %v7926_v22  ;;  %v1070_v22 = vld [vmem:[#allocation17 + $0xe8] sm:$0xff] }
 0x222   :  { %956 = vmatprep.subr.bf16.mxu1 %v7934_v23  ;;  %v6950_v23 = vcombine.low %v1057_v11, %v1061_v12 }
 0x225   :  { %957 = vmatpush1.bf16.msra.mxu1 %v7932_v24  ;;  %v6952_v24 = vcombine.low %v1058_v13, %v1062_v14  ;;  %v1121_v14 = vld [vmem:[#allocation17 + $0x280] sm:$0xff] }
 0x226   :  { %958 = vmatprep.subr.bf16.mxu1 %v7940_v26  ;;  %v6961_v26 = vcombine.high %v1066_v21, %v1070_v22 }
 0x229   :  { %959 = vmatpush1.bf16.msra.mxu1 %v7938_v28  ;;  %v1077_v28 = vld [vmem:[#allocation17 + $0x120] sm:$0xff] }
 0x22a   :  { %960 = vmatprep.subr.bf16.mxu1 %v7946_v30  ;;  %v1078_v30 = vld [vmem:[#allocation17 + $0x128] sm:$0xff]  ;;  %v6967_v33 = vcombine.high %v1073_v27, %v1077_v28  ;;  %v6966_v39 = vcombine.low %v1073_v27, %v1077_v28 }
 0x22d   :  { %961 = vmatpush1.bf16.msra.mxu1 %v7944_v32  ;;  %v6960_v32 = vcombine.low %v1066_v21, %v1070_v22  ;;  %v1129_v22 = vld [vmem:[#allocation17 + $0x2c0] sm:$0xff] }
 0x22e   :  { %962 = vmatprep.subr.bf16.mxu1 %v7952_v34  ;;  %v6969_v34 = vcombine.high %v1074_v29, %v1078_v30 }
 0x231   :  { %963 = vmatpush1.bf16.msra.mxu1 %v7950_v36  ;;  %v1085_v36 = vld [vmem:[#allocation17 + $0x160] sm:$0xff] }
 0x232   :  { %2659 = vmatprep.subr.bf16.mxu1 %v6937_v44  ;;  %v6975_v41 = vcombine.high %v1081_v35, %v1085_v36  ;;  %v1093_v44 = vld [vmem:[#allocation17 + $0x1a0] sm:$0xff]  ;;  %v6974_v50 = vcombine.low %v1081_v35, %v1085_v36 }
 0x2c7   :  { %v464_v54 = vpop.f32.mrb[0].mxu1 }
 0x2c8   :  { %v483_v56 = vmul.f32 %v476_v51, %v464_v54  ;;  %v466_v57 = vpop.f32.mrb[1].mxu1  ;;  %v6976_v51 = vcombine.low %v1082_v37, %v1086_v38  ;;  %v1097_v54 = vld [vmem:[#allocation17 + $0x1c0] sm:$0xff] }
 0x2c9   :  { %v484_v58 = vmul.f32 %v480_v52, %v466_v57  ;;  %v468_v59 = vpop.f32.mrb[2].mxu1  ;;  %v1102_v57 = vld [vmem:[#allocation17 + $0x1e8] sm:$0xff]  ;;  %v1145_v38 = vld [vmem:[#allocation17 + $0x340] sm:$0xff] }
 0x2ca   :  { %v497_v60 = vadd.f32 %v490_v53, %v483_v56  ;;  %v469_v61 = vpop.f32.mrb[3].mxu1  ;;  %v6985_v53 = vcombine.high %v1090_v45, %v1094_v48  ;;  %v1098_v56 = vld [vmem:[#allocation17 + $0x1c8] sm:$0xff]  ;;  %v6984_v59 = vcombine.low %v1090_v45, %v1094_v48 }
 0x2cb   :  { %v498_v62 = vadd.f32 %v494_v55, %v484_v58  ;;  %v1101_v55 = vld [vmem:[#allocation17 + $0x1e0] sm:$0xff]  ;;  %v6993_v61 = vcombine.high %v1098_v56, %v1102_v57  ;;  %v6992_v3 = vcombine.low %v1098_v56, %v1102_v57 }
 0x2cc   :  { %vm499_vm4 = vcmp.gt.f32.partialorder %v497_v60, 0.0  ;;  %v501_v63 = vmul.f32 0.2, %v497_v60 }
 0x2cd   :  { %v502_v0 = vmul.f32 0.2, %v498_v62  ;;  %vm500_vm5 = vcmp.gt.f32.partialorder %v498_v62, 0.0 }
 0x2ce   :  { %v503_v2 = vsel %vm499_vm4, %v497_v60, %v501_v63  ;;  %v6991_v60 = vcombine.high %v1097_v54, %v1101_v55  ;;  %v1109_v63 = vld [vmem:[#allocation17 + $0x220] sm:$0xff] }
 0x2cf   :  { %v504_v6 = vsel %vm500_vm5, %v498_v62, %v502_v0  ;;  %v505_v8 = vpack.c.bf16 %v503_v2, %v503_v2  ;;  %v1105_v62 = vld [vmem:[#allocation17 + $0x200] sm:$0xff]  ;;  %v1106_v0 = vld [vmem:[#allocation17 + $0x208] sm:$0xff]  ;;  %v6990_v2 = vcombine.low %v1097_v54, %v1101_v55 }
 0x2d0   :  { %v506_v7 = vpack.c.bf16 %v504_v6, %v504_v6  ;;  %v6999_v4 = vcombine.high %v1105_v62, %v1109_v63  ;;  %v7001_v5 = vcombine.high %v1106_v0, %v1110_v1  ;;  %v1113_v6 = vld [vmem:[#allocation17 + $0x240] sm:$0xff]  ;;  %v7000_v11 = vcombine.low %v1106_v0, %v1110_v1  ;;  %v1154_v54 = vld [vmem:[#allocation17 + $0x388] sm:$0xff] }
 0x2d1   :  { %v1158_v55 = vld [vmem:[#allocation17 + $0x3a8] sm:$0xff] }
 0x2d2   :  { %923 = vmatprep.mubr.bf16.mxu0 %v506_v7  ;;  %964 = vmatprep.mubr.bf16.mxu1 %v506_v7  ;;  %v1117_v7 = vld [vmem:[#allocation17 + $0x260] sm:$0xff]  ;;  %v7048_v57 = vcombine.low %v1154_v54, %v1158_v55 }
 0x2d3   :  { %924 = vmatmul.mubr.bf16.vlgmr.msra.gmra.mrb[4].mxu0 %v505_v8  ;;  %965 = vmatmul.mubr.bf16.vlgmr.msra.gmra.mrb[4].mxu1 %v505_v8  ;;  %v1114_v8 = vld [vmem:[#allocation17 + $0x248] sm:$0xff]  ;;  %v7007_v12 = vcombine.high %v1113_v6, %v1117_v7 }
 0x2d4   :  { %2578 = vmatpush1.bf16.msra.mxu0 %v6934_v40  ;;  %2660 = vmatpush1.bf16.msra.mxu1 %v6936_v43  ;;  %v6968_v40 = vcombine.low %v1074_v29, %v1078_v30  ;;  %v1089_v43 = vld [vmem:[#allocation17 + $0x180] sm:$0xff] }
 0x2d5   :  { %2579 = vmatprep.subr.bf16.mxu0 %v6943_v9  ;;  %2661 = vmatprep.subr.bf16.mxu1 %v6945_v10  ;;  %v6983_v52 = vcombine.high %v1089_v43, %v1093_v44  ;;  %v6982_v58 = vcombine.low %v1089_v43, %v1093_v44  ;;  %v1118_v9 = vld [vmem:[#allocation17 + $0x268] sm:$0xff]  ;;  %v6998_v10 = vcombine.low %v1105_v62, %v1109_v63  ;;  %v1137_v30 = vld [vmem:[#allocation17 + $0x300] sm:$0xff] }
 0x2d6   :  { %v7009_v13 = vcombine.high %v1114_v8, %v1118_v9  ;;  %v7008_v19 = vcombine.low %v1114_v8, %v1118_v9  ;;  %v1166_v63 = vld [vmem:[#allocation17 + $0x3e8] sm:$0xff] }
 0x2d8   :  { %2580 = vmatpush1.bf16.msra.mxu0 %v6942_v15  ;;  %2662 = vmatpush1.bf16.msra.mxu1 %v6944_v16  ;;  %v1125_v15 = vld [vmem:[#allocation17 + $0x2a0] sm:$0xff]  ;;  %v1122_v16 = vld [vmem:[#allocation17 + $0x288] sm:$0xff] }
 0x2d9   :  { %2581 = vmatprep.subr.bf16.mxu0 %v6951_v17  ;;  %2663 = vmatprep.subr.bf16.mxu1 %v6953_v18  ;;  %v1126_v17 = vld [vmem:[#allocation17 + $0x2a8] sm:$0xff]  ;;  %v7006_v18 = vcombine.low %v1113_v6, %v1117_v7  ;;  %v7015_v20 = vcombine.high %v1121_v14, %v1125_v15 }
 0x2da   :  { %v7017_v21 = vcombine.high %v1122_v16, %v1126_v17  ;;  %v7016_v27 = vcombine.low %v1122_v16, %v1126_v17  ;;  %v1174_v7 = vld [vmem:[#allocation17 + $0x428] sm:$0xff] }
 0x2dc   :  { %2582 = vmatpush1.bf16.msra.mxu0 %v6950_v23  ;;  %2664 = vmatpush1.bf16.msra.mxu1 %v6952_v24  ;;  %v1133_v23 = vld [vmem:[#allocation17 + $0x2e0] sm:$0xff]  ;;  %v1130_v24 = vld [vmem:[#allocation17 + $0x2c8] sm:$0xff] }
 0x2dd   :  { %2583 = vmatprep.subr.bf16.mxu0 %v6959_v25  ;;  %2665 = vmatprep.subr.bf16.mxu1 %v6961_v26  ;;  %v1134_v25 = vld [vmem:[#allocation17 + $0x2e8] sm:$0xff]  ;;  %v7014_v26 = vcombine.low %v1121_v14, %v1125_v15  ;;  %v7023_v28 = vcombine.high %v1129_v22, %v1133_v23  ;;  %v999_v14 = vld [vmem:[#allocation16] sm:$0xf] }
 0x2de   :  { %v7025_v29 = vcombine.high %v1130_v24, %v1134_v25  ;;  %v7024_v35 = vcombine.low %v1130_v24, %v1134_v25 }
 0x2e0   :  { %2584 = vmatpush1.bf16.msra.mxu0 %v6958_v31  ;;  %2666 = vmatpush1.bf16.msra.mxu1 %v6960_v32  ;;  %v1141_v31 = vld [vmem:[#allocation17 + $0x320] sm:$0xff]  ;;  %v1138_v32 = vld [vmem:[#allocation17 + $0x308] sm:$0xff] }
 0x2e1   :  { %2585 = vmatprep.subr.bf16.mxu0 %v6967_v33  ;;  %2667 = vmatprep.subr.bf16.mxu1 %v6969_v34  ;;  %v1142_v33 = vld [vmem:[#allocation17 + $0x328] sm:$0xff]  ;;  %v7022_v34 = vcombine.low %v1129_v22, %v1133_v23  ;;  %v7031_v36 = vcombine.high %v1137_v30, %v1141_v31  ;;  %v1008_v23 = vrot.slane %v999_v14, %v8600_v49 }
 0x2e2   :  { %v7033_v37 = vcombine.high %v1138_v32, %v1142_v33  ;;  %v7032_v43 = vcombine.low %v1138_v32, %v1142_v33 }
 0x2e4   :  { %2586 = vmatpush1.bf16.msra.mxu0 %v6966_v39  ;;  %2668 = vmatpush1.bf16.msra.mxu1 %v6968_v40  ;;  %v1149_v39 = vld [vmem:[#allocation17 + $0x360] sm:$0xff]  ;;  %v1146_v40 = vld [vmem:[#allocation17 + $0x348] sm:$0xff] }
 0x2e5   :  { %2587 = vmatprep.subr.bf16.mxu0 %v6975_v41  ;;  %2669 = vmatprep.subr.bf16.mxu1 %v6977_v42  ;;  %v1150_v41 = vld [vmem:[#allocation17 + $0x368] sm:$0xff]  ;;  %v7030_v42 = vcombine.low %v1137_v30, %v1141_v31  ;;  %v7039_v44 = vcombine.high %v1145_v38, %v1149_v39  ;;  %v7038_v48 = vcombine.low %v1145_v38, %v1149_v39 }
 0x2e6   :  { %v7041_v45 = vcombine.high %v1146_v40, %v1150_v41 }
 0x2e8   :  { %2588 = vmatpush1.bf16.msra.mxu0 %v6974_v50  ;;  %2670 = vmatpush1.bf16.msra.mxu1 %v6976_v51  ;;  %v7040_v50 = vcombine.low %v1146_v40, %v1150_v41  ;;  %v1153_v51 = vld [vmem:[#allocation17 + $0x380] sm:$0xff] }
 0x2e9   :  { %2589 = vmatprep.subr.bf16.mxu0 %v6983_v52  ;;  %2671 = vmatprep.subr.bf16.mxu1 %v6985_v53  ;;  %v1157_v52 = vld [vmem:[#allocation17 + $0x3a0] sm:$0xff] }
 0x2ea   :  { %v7047_v53 = vcombine.high %v1153_v51, %v1157_v52  ;;  %v7046_v56 = vcombine.low %v1153_v51, %v1157_v52 }
 0x2ec   :  { %2590 = vmatpush1.bf16.msra.mxu0 %v6982_v58  ;;  %2672 = vmatpush1.bf16.msra.mxu1 %v6984_v59  ;;  %v7049_v58 = vcombine.high %v1154_v54, %v1158_v55  ;;  %v1161_v59 = vld [vmem:[#allocation17 + $0x3c0] sm:$0xff] }
 0x2ed   :  { %2591 = vmatprep.subr.bf16.mxu0 %v6991_v60  ;;  %2673 = vmatprep.subr.bf16.mxu1 %v6993_v61  ;;  %v1165_v60 = vld [vmem:[#allocation17 + $0x3e0] sm:$0xff]  ;;  %v1162_v61 = vld [vmem:[#allocation17 + $0x3c8] sm:$0xff] }
 0x2ee   :  { %v7055_v62 = vcombine.high %v1161_v59, %v1165_v60  ;;  %v7054_v0 = vcombine.low %v1161_v59, %v1165_v60  ;;  %v7056_v1 = vcombine.low %v1162_v61, %v1166_v63  ;;  %v1185_v54 = vld [vmem:[#allocation17 + $0x480] sm:$0xff]  ;;  %v1190_v59 = vld [vmem:[#allocation17 + $0x4a8] sm:$0xff] }
 0x2f0   :  { %2592 = vmatpush1.bf16.msra.mxu0 %v6990_v2  ;;  %2674 = vmatpush1.bf16.msra.mxu1 %v6992_v3  ;;  %v7057_v2 = vcombine.high %v1162_v61, %v1166_v63  ;;  %v8606_v3 = vld [vmem:[#allocation17 + $0x400] sm:$0xff] }
 0x2f1   :  { %2593 = vmatprep.subr.bf16.mxu0 %v6999_v4  ;;  %2675 = vmatprep.subr.bf16.mxu1 %v7001_v5  ;;  %v8608_v4 = vld [vmem:[#allocation17 + $0x420] sm:$0xff]  ;;  %v8610_v5 = vld [vmem:[#allocation17 + $0x408] sm:$0xff] }
 0x2f2   :  { %v7063_v6 = vcombine.high %v8606_v3, %v8608_v4  ;;  %v7062_v8 = vcombine.low %v8606_v3, %v8608_v4  ;;  %v7064_v9 = vcombine.low %v8610_v5, %v1174_v7  ;;  %v1194_v3 = vld [vmem:[#allocation17 + $0x4c8] sm:$0xff] }
 0x2f3   :  { %v1198_v4 = vld [vmem:[#allocation17 + $0x4e8] sm:$0xff] }
 0x2f4   :  { %2594 = vmatpush1.bf16.msra.mxu0 %v6998_v10  ;;  %2676 = vmatpush1.bf16.msra.mxu1 %v7000_v11  ;;  %v7065_v10 = vcombine.high %v8610_v5, %v1174_v7  ;;  %v8619_v11 = vsub.s32 2, %v8594_v46 }
 0x2f5   :  { %2595 = vmatprep.subr.bf16.mxu0 %v7007_v12  ;;  %2677 = vmatprep.subr.bf16.mxu1 %v7009_v13  ;;  %v973_v12 = vld [vmem:[#allocation14] sm:$0xf]  ;;  %v8622_v13 = vsub.s32 3, %v8594_v46 }
 0x2f6   :  { %v978_v15 = vrot.slane %v973_v12, %v8597_v47  ;;  %v986_v16 = vrot.slane %v973_v12, %v8619_v11  ;;  %v982_v17 = vrot.slane %v973_v12, %v8600_v49 }
 0x2f7   :  { %v1016_v24 = vrot.slane %v999_v14, %v8622_v13 }
 0x2f8   :  { %2596 = vmatpush1.bf16.msra.mxu0 %v7006_v18  ;;  %2678 = vmatpush1.bf16.msra.mxu1 %v7008_v19  ;;  %v990_v18 = vrot.slane %v973_v12, %v8622_v13  ;;  %v1004_v19 = vrot.slane %v999_v14, %v8597_v47  ;;  %v1202_v12 = vld [vmem:[#allocation17 + $0x508] sm:$0xff] }
 0x2f9   :  { %2597 = vmatprep.subr.bf16.mxu0 %v7015_v20  ;;  %2679 = vmatprep.subr.bf16.mxu1 %v7017_v21  ;;  %v1012_v20 = vrot.slane %v999_v14, %v8619_v11  ;;  %v1206_v14 = vld [vmem:[#allocation17 + $0x528] sm:$0xff] }
 0x2fc   :  { %2598 = vmatpush1.bf16.msra.mxu0 %v7014_v26  ;;  %2680 = vmatpush1.bf16.msra.mxu1 %v7016_v27 }
 0x2fd   :  { %2599 = vmatprep.subr.bf16.mxu0 %v7023_v28  ;;  %2681 = vmatprep.subr.bf16.mxu1 %v7025_v29 }
 0x300   :  { %2600 = vmatpush1.bf16.msra.mxu0 %v7022_v34  ;;  %2682 = vmatpush1.bf16.msra.mxu1 %v7024_v35 }
 0x301   :  { %2601 = vmatprep.subr.bf16.mxu0 %v7031_v36  ;;  %2683 = vmatprep.subr.bf16.mxu1 %v7033_v37 }
 0x304   :  { %2602 = vmatpush1.bf16.msra.mxu0 %v7030_v42  ;;  %2684 = vmatpush1.bf16.msra.mxu1 %v7032_v43  ;;  %v1177_v43 = vld [vmem:[#allocation17 + $0x440] sm:$0xff] }
 0x305   :  { %2603 = vmatprep.subr.bf16.mxu0 %v7039_v44  ;;  %2685 = vmatprep.subr.bf16.mxu1 %v7041_v45  ;;  %v1181_v45 = vld [vmem:[#allocation17 + $0x460] sm:$0xff] }
 0x306   :  { %v7071_v55 = vcombine.high %v1177_v43, %v1181_v45  ;;  %v7070_v61 = vcombine.low %v1177_v43, %v1181_v45  ;;  %v1237_v45 = vld [vmem:[#allocation17 + $0x620] sm:$0xff] }
 0x308   :  { %2604 = vmatpush1.bf16.msra.mxu0 %v7038_v48  ;;  %2686 = vmatpush1.bf16.msra.mxu1 %v7040_v50  ;;  %v1178_v48 = vld [vmem:[#allocation17 + $0x448] sm:$0xff] }
 0x309   :  { %2605 = vmatprep.subr.bf16.mxu0 %v7047_v53  ;;  %2687 = vmatprep.subr.bf16.mxu1 %v7049_v58  ;;  %v1182_v50 = vld [vmem:[#allocation17 + $0x468] sm:$0xff] }
 0x30a   :  { %v1186_v58 = vld [vmem:[#allocation17 + $0x488] sm:$0xff] }
 0x30c   :  { %2606 = vmatpush1.bf16.msra.mxu0 %v7046_v56  ;;  %2688 = vmatpush1.bf16.msra.mxu1 %v7048_v57  ;;  %v7073_v56 = vcombine.high %v1178_v48, %v1182_v50  ;;  %v1189_v57 = vld [vmem:[#allocation17 + $0x4a0] sm:$0xff] }
 0x30d   :  { %2607 = vmatprep.subr.bf16.mxu0 %v7055_v62  ;;  %2689 = vmatprep.subr.bf16.mxu1 %v7057_v2  ;;  %v7072_v62 = vcombine.low %v1178_v48, %v1182_v50  ;;  %v7079_v63 = vcombine.high %v1185_v54, %v1189_v57  ;;  %v1197_v2 = vld [vmem:[#allocation17 + $0x4e0] sm:$0xff]  ;;  %v7078_v5 = vcombine.low %v1185_v54, %v1189_v57  ;;  %v1234_v48 = vld [vmem:[#allocation17 + $0x608] sm:$0xff] }
 0x30e   :  { %v1238_v50 = vld [vmem:[#allocation17 + $0x628] sm:$0xff]  ;;  %v1241_v57 = vld [vmem:[#allocation17 + $0x640] sm:$0xff] }
 0x310   :  { %2608 = vmatpush1.bf16.msra.mxu0 %v7054_v0  ;;  %2690 = vmatpush1.bf16.msra.mxu1 %v7056_v1  ;;  %v7081_v0 = vcombine.high %v1186_v58, %v1190_v59  ;;  %v1193_v1 = vld [vmem:[#allocation17 + $0x4c0] sm:$0xff] }
 0x311   :  { %2618 = vmatprep.subr.bf16.mxu0 %v7063_v6  ;;  %2700 = vmatprep.subr.bf16.mxu1 %v7065_v10  ;;  %v7080_v6 = vcombine.low %v1186_v58, %v1190_v59  ;;  %v7087_v7 = vcombine.high %v1193_v1, %v1197_v2  ;;  %v1205_v10 = vld [vmem:[#allocation17 + $0x520] sm:$0xff]  ;;  %v1242_v59 = vld [vmem:[#allocation17 + $0x648] sm:$0xff] }
 0x312   :  { %v1245_v58 = vld [vmem:[#allocation17 + $0x660] sm:$0xff] }
 0x3a6   :  { %v925_v21 = vpop.f32.mrb[4].mxu0  ;;  %v966_v22 = vpop.f32.mrb[4].mxu1 }
 0x3a7   :  { %v995_v25 = vmul.f32 %v978_v15, %v925_v21  ;;  %v997_v26 = vmul.f32 %v986_v16, %v966_v22  ;;  %v927_v27 = vpop.f32.mrb[5].mxu0  ;;  %v968_v28 = vpop.f32.mrb[5].mxu1  ;;  %v7086_v15 = vcombine.low %v1193_v1, %v1197_v2  ;;  %v7088_v16 = vcombine.low %v1194_v3, %v1198_v4  ;;  %v1210_v21 = vld [vmem:[#allocation17 + $0x548] sm:$0xff]  ;;  %v1249_v2 = vld [vmem:[#allocation17 + $0x680] sm:$0xff] }
 0x3a8   :  { %v996_v29 = vmul.f32 %v982_v17, %v927_v27  ;;  %v998_v30 = vmul.f32 %v990_v18, %v968_v28  ;;  %v929_v31 = vpop.f32.mrb[6].mxu0  ;;  %v970_v32 = vpop.f32.mrb[6].mxu1  ;;  %v7097_v18 = vcombine.high %v1202_v12, %v1206_v14  ;;  %v1214_v22 = vld [vmem:[#allocation17 + $0x568] sm:$0xff]  ;;  %v1217_v27 = vld [vmem:[#allocation17 + $0x580] sm:$0xff] }
 0x3a9   :  { %v1021_v33 = vadd.f32 %v1004_v19, %v995_v25  ;;  %v8632_v34 = vadd.f32 %v1012_v20, %v997_v26  ;;  %v930_v35 = vpop.f32.mrb[7].mxu0  ;;  %v971_v36 = vpop.f32.mrb[7].mxu1  ;;  %v1209_v19 = vld [vmem:[#allocation17 + $0x540] sm:$0xff]  ;;  %v7105_v26 = vcombine.high %v1210_v21, %v1214_v22  ;;  %v7104_v32 = vcombine.low %v1210_v21, %v1214_v22  ;;  %v1266_v22 = vld [vmem:[#allocation17 + $0x708] sm:$0xff] }
 0x3aa   :  { %v1022_v37 = vadd.f32 %v1008_v23, %v996_v29  ;;  %v1024_v38 = vadd.f32 %v1016_v24, %v998_v30  ;;  %v1213_v20 = vld [vmem:[#allocation17 + $0x560] sm:$0xff]  ;;  %v7096_v24 = vcombine.low %v1202_v12, %v1206_v14  ;;  %v1218_v29 = vld [vmem:[#allocation17 + $0x588] sm:$0xff] }
 0x3ab   :  { %vm1025_vm6 = vcmp.gt.f32.partialorder %v1021_v33, 0.0  ;;  %v1029_v39 = vmul.f32 0.2, %v1021_v33  ;;  %v7103_v25 = vcombine.high %v1209_v19, %v1213_v20  ;;  %v1221_v28 = vld [vmem:[#allocation17 + $0x5a0] sm:$0xff]  ;;  %v1222_v30 = vld [vmem:[#allocation17 + $0x5a8] sm:$0xff]  ;;  %v7102_v31 = vcombine.low %v1209_v19, %v1213_v20 }
 0x3ac   :  { %vm1026_vm7 = vcmp.gt.f32.partialorder %v1022_v37, 0.0  ;;  %v1030_v40 = vmul.f32 0.2, %v1022_v37  ;;  %vm1028_vm8 = vcmp.gt.f32.partialorder %v1024_v38, 0.0  ;;  %v1032_v41 = vmul.f32 0.2, %v1024_v38 }
 0x3ad   :  { %v1033_v42 = vsel %vm1025_vm6, %v1021_v33, %v1029_v39  ;;  %v7111_v33 = vcombine.high %v1217_v27, %v1221_v28  ;;  %v7113_v35 = vcombine.high %v1218_v29, %v1222_v30  ;;  %v1225_v36 = vld [vmem:[#allocation17 + $0x5c0] sm:$0xff]  ;;  %v1230_v39 = vld [vmem:[#allocation17 + $0x5e8] sm:$0xff]  ;;  %vm1027_vm9 = vcmp.gt.f32.partialorder %v8632_v34, 0.0 }
 0x3ae   :  { %v1034_v44 = vsel %vm1026_vm7, %v1022_v37, %v1030_v40  ;;  %v1036_v52 = vsel %vm1028_vm8, %v1024_v38, %v1032_v41  ;;  %v8636_v53 = vpack.c.bf16 %v1033_v42, %v1033_v42  ;;  %v1229_v37 = vld [vmem:[#allocation17 + $0x5e0] sm:$0xff]  ;;  %v1226_v38 = vld [vmem:[#allocation17 + $0x5c8] sm:$0xff]  ;;  %v7110_v40 = vcombine.low %v1217_v27, %v1221_v28 }
 0x3af   :  { %v8634_v51 = vpack.c.bf16 %v1034_v44, %v1034_v44  ;;  %v8640_v60 = vpack.c.bf16 %v1036_v52, %v1036_v52  ;;  %v7112_v41 = vcombine.low %v1218_v29, %v1222_v30  ;;  %v7119_v42 = vcombine.high %v1225_v36, %v1229_v37  ;;  %v1233_v44 = vld [vmem:[#allocation17 + $0x600] sm:$0xff]  ;;  %v1258_v14 = vld [vmem:[#allocation17 + $0x6c8] sm:$0xff] }
 0x3b0   :  { %v7121_v43 = vcombine.high %v1226_v38, %v1230_v39  ;;  %v7118_v52 = vcombine.low %v1225_v36, %v1229_v37  ;;  %v7120_v54 = vcombine.low %v1226_v38, %v1230_v39  ;;  %v1261_v12 = vld [vmem:[#allocation17 + $0x6e0] sm:$0xff]  ;;  %v1274_v30 = vld [vmem:[#allocation17 + $0x748] sm:$0xff] }
 0x3b1   :  { %2609 = vmatprep.mubr.bf16.mxu0 %v8634_v51  ;;  %2691 = vmatprep.mubr.bf16.mxu1 %v8634_v51  ;;  %v1265_v20 = vld [vmem:[#allocation17 + $0x700] sm:$0xff]  ;;  %v1282_v39 = vld [vmem:[#allocation17 + $0x788] sm:$0xff] }
 0x3b2   :  { %2610 = vmatmul.mubr.bf16.vlgmr.msra.gmra.mrb[8].mxu0 %v8636_v53  ;;  %2692 = vmatmul.mubr.bf16.vlgmr.msra.gmra.mrb[8].mxu1 %v8636_v53  ;;  %v1269_v21 = vld [vmem:[#allocation17 + $0x720] sm:$0xff] }
 0x3b3   :  { %2619 = vmatpush1.bf16.msra.mxu0 %v7062_v8  ;;  %2701 = vmatpush1.bf16.msra.mxu1 %v7064_v9  ;;  %v7089_v8 = vcombine.high %v1194_v3, %v1198_v4  ;;  %v1201_v9 = vld [vmem:[#allocation17 + $0x500] sm:$0xff]  ;;  %v1250_v4 = vld [vmem:[#allocation17 + $0x688] sm:$0xff] }
 0x3b4   :  { %2650 = vmatprep.mubr.bf16.mxu0 %v8640_v60  ;;  %2732 = vmatprep.mubr.bf16.mxu1 %v8640_v60  ;;  %v7095_v17 = vcombine.high %v1201_v9, %v1205_v10  ;;  %v7094_v23 = vcombine.low %v1201_v9, %v1205_v10  ;;  %v1253_v3 = vld [vmem:[#allocation17 + $0x6a0] sm:$0xff] }
 0x3b5   :  { %2620 = vmatprep.subr.bf16.mxu0 %v7071_v55  ;;  %2702 = vmatprep.subr.bf16.mxu1 %v7073_v56  ;;  %v7127_v55 = vcombine.high %v1233_v44, %v1237_v45  ;;  %v7129_v56 = vcombine.high %v1234_v48, %v1238_v50  ;;  %v1257_v10 = vld [vmem:[#allocation17 + $0x6c0] sm:$0xff] }
 0x3b6   :  { %v1273_v28 = vld [vmem:[#allocation17 + $0x740] sm:$0xff] }
 0x3b7   :  { %2621 = vmatpush1.bf16.msra.mxu0 %v7070_v61  ;;  %2703 = vmatpush1.bf16.msra.mxu1 %v7072_v62  ;;  %v1246_v61 = vld [vmem:[#allocation17 + $0x668] sm:$0xff]  ;;  %v7126_v62 = vcombine.low %v1233_v44, %v1237_v45  ;;  %v1277_v29 = vld [vmem:[#allocation17 + $0x760] sm:$0xff] }
 0x3b8   :  { %2622 = vmatprep.subr.bf16.mxu0 %v7079_v63  ;;  %2704 = vmatprep.subr.bf16.mxu1 %v7081_v0  ;;  %v7128_v63 = vcombine.low %v1234_v48, %v1238_v50  ;;  %v7135_v0 = vcombine.high %v1241_v57, %v1245_v58  ;;  %v7137_v1 = vcombine.high %v1242_v59, %v1246_v61  ;;  %v1281_v37 = vld [vmem:[#allocation17 + $0x780] sm:$0xff]  ;;  %v1290_v50 = vld [vmem:[#allocation17 + $0x7c8] sm:$0xff] }
 0x3b9   :  { %v1285_v38 = vld [vmem:[#allocation17 + $0x7a0] sm:$0xff] }
 0x3ba   :  { %v1289_v45 = vld [vmem:[#allocation17 + $0x7c0] sm:$0xff] }
 0x3bb   :  { %2623 = vmatpush1.bf16.msra.mxu0 %v7078_v5  ;;  %2705 = vmatpush1.bf16.msra.mxu1 %v7080_v6  ;;  %v1254_v5 = vld [vmem:[#allocation17 + $0x6a8] sm:$0xff]  ;;  %v7134_v6 = vcombine.low %v1241_v57, %v1245_v58  ;;  %v1293_v48 = vld [vmem:[#allocation17 + $0x7e0] sm:$0xff]  ;;  %v1043_v58 = vld [vmem:[#allocation17 + $0x10] sm:$0xff] }
 0x3bc   :  { %2624 = vmatprep.subr.bf16.mxu0 %v7087_v7  ;;  %2706 = vmatprep.subr.bf16.mxu1 %v7089_v8  ;;  %v7136_v7 = vcombine.low %v1242_v59, %v1246_v61  ;;  %v7143_v8 = vcombine.high %v1249_v2, %v1253_v3  ;;  %v7145_v9 = vcombine.high %v1250_v4, %v1254_v5  ;;  %v1031_v59 = vmul.f32 0.2, %v8632_v34  ;;  %v1047_v61 = vld [vmem:[#allocation17 + $0x30] sm:$0xff] }
 0x3bf   :  { %2625 = vmatpush1.bf16.msra.mxu0 %v7086_v15  ;;  %2707 = vmatpush1.bf16.msra.mxu1 %v7088_v16  ;;  %v1262_v15 = vld [vmem:[#allocation17 + $0x6e8] sm:$0xff]  ;;  %v7142_v16 = vcombine.low %v1249_v2, %v1253_v3  ;;  %v6939_v2 = vcombine.high %v1043_v58, %v1047_v61 }
 0x3c0   :  { %2626 = vmatprep.subr.bf16.mxu0 %v7095_v17  ;;  %2708 = vmatprep.subr.bf16.mxu1 %v7097_v18  ;;  %v7144_v17 = vcombine.low %v1250_v4, %v1254_v5  ;;  %v7151_v18 = vcombine.high %v1257_v10, %v1261_v12  ;;  %v7153_v19 = vcombine.high %v1258_v14, %v1262_v15  ;;  %v1051_v5 = vld [vmem:[#allocation17 + $0x50] sm:$0xff] }
 0x3c1   :  { %v1035_v4 = vsel %vm1027_vm9, %v8632_v34, %v1031_v59  ;;  %v1060_v34 = vld [vmem:[#allocation17 + $0x98] sm:$0xff] }
 0x3c3   :  { %2627 = vmatpush1.bf16.msra.mxu0 %v7094_v23  ;;  %2709 = vmatpush1.bf16.msra.mxu1 %v7096_v24  ;;  %v1270_v23 = vld [vmem:[#allocation17 + $0x728] sm:$0xff]  ;;  %v7150_v24 = vcombine.low %v1257_v10, %v1261_v12  ;;  %v8649_v10 = vpack.c.bf16 %v1035_v4, %v1035_v4 }
 0x3c4   :  { %2628 = vmatprep.subr.bf16.mxu0 %v7103_v25  ;;  %2710 = vmatprep.subr.bf16.mxu1 %v7105_v26  ;;  %v7152_v25 = vcombine.low %v1258_v14, %v1262_v15  ;;  %v7159_v26 = vcombine.high %v1265_v20, %v1269_v21  ;;  %v7161_v27 = vcombine.high %v1266_v22, %v1270_v23 }
 0x3c7   :  { %2629 = vmatpush1.bf16.msra.mxu0 %v7102_v31  ;;  %2711 = vmatpush1.bf16.msra.mxu1 %v7104_v32  ;;  %v1278_v31 = vld [vmem:[#allocation17 + $0x768] sm:$0xff]  ;;  %v7158_v32 = vcombine.low %v1265_v20, %v1269_v21 }
 0x3c8   :  { %2630 = vmatprep.subr.bf16.mxu0 %v7111_v33  ;;  %2712 = vmatprep.subr.bf16.mxu1 %v7113_v35  ;;  %v7160_v33 = vcombine.low %v1266_v22, %v1270_v23  ;;  %v7167_v35 = vcombine.high %v1273_v28, %v1277_v29  ;;  %v7169_v36 = vcombine.high %v1274_v30, %v1278_v31  ;;  %v1067_v23 = vld [vmem:[#allocation17 + $0xd0] sm:$0xff] }
 0x3cb   :  { %2631 = vmatpush1.bf16.msra.mxu0 %v7110_v40  ;;  %2713 = vmatpush1.bf16.msra.mxu1 %v7112_v41  ;;  %v1286_v40 = vld [vmem:[#allocation17 + $0x7a8] sm:$0xff]  ;;  %v7166_v41 = vcombine.low %v1273_v28, %v1277_v29 }
 0x3cc   :  { %2632 = vmatprep.subr.bf16.mxu0 %v7119_v42  ;;  %2714 = vmatprep.subr.bf16.mxu1 %v7121_v43  ;;  %v7168_v42 = vcombine.low %v1274_v30, %v1278_v31  ;;  %v7175_v43 = vcombine.high %v1281_v37, %v1285_v38  ;;  %v7177_v44 = vcombine.high %v1282_v39, %v1286_v40  ;;  %v1075_v31 = vld [vmem:[#allocation17 + $0x110] sm:$0xff] }
 0x3cf   :  { %2633 = vmatpush1.bf16.msra.mxu0 %v7118_v52  ;;  %2715 = vmatpush1.bf16.msra.mxu1 %v7120_v54  ;;  %v1294_v52 = vld [vmem:[#allocation17 + $0x7e8] sm:$0xff]  ;;  %v7174_v54 = vcombine.low %v1281_v37, %v1285_v38 }
 0x3d0   :  { %2634 = vmatprep.subr.bf16.mxu0 %v7127_v55  ;;  %2716 = vmatprep.subr.bf16.mxu1 %v7129_v56  ;;  %v7176_v55 = vcombine.low %v1282_v39, %v1286_v40  ;;  %v7183_v56 = vcombine.high %v1289_v45, %v1293_v48  ;;  %v7185_v57 = vcombine.high %v1290_v50, %v1294_v52  ;;  %v1083_v39 = vld [vmem:[#allocation17 + $0x150] sm:$0xff] }
 0x3d1   :  { %v1087_v40 = vld [vmem:[#allocation17 + $0x170] sm:$0xff] }
 0x3d3   :  { %2635 = vmatpush1.bf16.msra.mxu0 %v7126_v62  ;;  %2717 = vmatpush1.bf16.msra.mxu1 %v7128_v63  ;;  %v1044_v62 = vld [vmem:[#allocation17 + $0x18] sm:$0xff] }
 0x3d4   :  { %2636 = vmatprep.subr.bf16.mxu0 %v7135_v0  ;;  %2718 = vmatprep.subr.bf16.mxu1 %v7137_v1  ;;  %v1048_v63 = vld [vmem:[#allocation17 + $0x38] sm:$0xff]  ;;  %v7182_v0 = vcombine.low %v1289_v45, %v1293_v48  ;;  %v7184_v1 = vcombine.low %v1290_v50, %v1294_v52  ;;  %v6979_v45 = vcombine.high %v1083_v39, %v1087_v40  ;;  %v1091_v50 = vld [vmem:[#allocation17 + $0x190] sm:$0xff] }
 0x3d5   :  { %v6941_v3 = vcombine.high %v1044_v62, %v1048_v63  ;;  %v6940_v12 = vcombine.low %v1044_v62, %v1048_v63  ;;  %v1095_v52 = vld [vmem:[#allocation17 + $0x1b0] sm:$0xff]  ;;  %v1100_v63 = vld [vmem:[#allocation17 + $0x1d8] sm:$0xff] }
 0x3d6   :  { %v1103_v62 = vld [vmem:[#allocation17 + $0x1f0] sm:$0xff] }
 0x3d7   :  { %2637 = vmatpush1.bf16.msra.mxu0 %v7134_v6  ;;  %2719 = vmatpush1.bf16.msra.mxu1 %v7136_v7  ;;  %v1055_v6 = vld [vmem:[#allocation17 + $0x70] sm:$0xff]  ;;  %v1052_v7 = vld [vmem:[#allocation17 + $0x58] sm:$0xff] }
 0x3d8   :  { %2638 = vmatprep.subr.bf16.mxu0 %v7143_v8  ;;  %2720 = vmatprep.subr.bf16.mxu1 %v7145_v9  ;;  %v1056_v8 = vld [vmem:[#allocation17 + $0x78] sm:$0xff]  ;;  %v6938_v9 = vcombine.low %v1043_v58, %v1047_v61  ;;  %v6947_v14 = vcombine.high %v1051_v5, %v1055_v6  ;;  %v6987_v58 = vcombine.high %v1091_v50, %v1095_v52  ;;  %v1099_v61 = vld [vmem:[#allocation17 + $0x1d0] sm:$0xff] }
 0x3d9   :  { %v6949_v15 = vcombine.high %v1052_v7, %v1056_v8  ;;  %v6948_v20 = vcombine.low %v1052_v7, %v1056_v8  ;;  %v1108_v7 = vld [vmem:[#allocation17 + $0x218] sm:$0xff] }
 0x3da   :  { %v1112_v8 = vld [vmem:[#allocation17 + $0x238] sm:$0xff] }
 0x3db   :  { %2639 = vmatpush1.bf16.msra.mxu0 %v7142_v16  ;;  %2721 = vmatpush1.bf16.msra.mxu1 %v7144_v17  ;;  %v1059_v16 = vld [vmem:[#allocation17 + $0x90] sm:$0xff] }
 0x3dc   :  { %2640 = vmatprep.subr.bf16.mxu0 %v7151_v18  ;;  %2722 = vmatprep.subr.bf16.mxu1 %v7153_v19  ;;  %v1063_v17 = vld [vmem:[#allocation17 + $0xb0] sm:$0xff]  ;;  %v1064_v18 = vld [vmem:[#allocation17 + $0xb8] sm:$0xff]  ;;  %v6946_v19 = vcombine.low %v1051_v5, %v1055_v6 }
 0x3dd   :  { %v6955_v21 = vcombine.high %v1059_v16, %v1063_v17  ;;  %v6957_v22 = vcombine.high %v1060_v34, %v1064_v18  ;;  %v6956_v28 = vcombine.low %v1060_v34, %v1064_v18  ;;  %v1107_v5 = vld [vmem:[#allocation17 + $0x210] sm:$0xff]  ;;  %v1116_v34 = vld [vmem:[#allocation17 + $0x258] sm:$0xff] }
 0x3de   :  { %v1111_v6 = vld [vmem:[#allocation17 + $0x230] sm:$0xff]  ;;  %v1120_v18 = vld [vmem:[#allocation17 + $0x278] sm:$0xff] }
 0x3df   :  { %2641 = vmatpush1.bf16.msra.mxu0 %v7150_v24  ;;  %2723 = vmatpush1.bf16.msra.mxu1 %v7152_v25  ;;  %v1071_v24 = vld [vmem:[#allocation17 + $0xf0] sm:$0xff]  ;;  %v1068_v25 = vld [vmem:[#allocation17 + $0xd8] sm:$0xff] }
 0x3e0   :  { %2642 = vmatprep.subr.bf16.mxu0 %v7159_v26  ;;  %2724 = vmatprep.subr.bf16.mxu1 %v7161_v27  ;;  %v1072_v26 = vld [vmem:[#allocation17 + $0xf8] sm:$0xff]  ;;  %v6954_v27 = vcombine.low %v1059_v16, %v1063_v17  ;;  %v6963_v29 = vcombine.high %v1067_v23, %v1071_v24  ;;  %v1115_v16 = vld [vmem:[#allocation17 + $0x250] sm:$0xff] }
 0x3e1   :  { %v6965_v30 = vcombine.high %v1068_v25, %v1072_v26  ;;  %v1119_v17 = vld [vmem:[#allocation17 + $0x270] sm:$0xff] }
 0x3e3   :  { %2643 = vmatpush1.bf16.msra.mxu0 %v7158_v32  ;;  %2725 = vmatpush1.bf16.msra.mxu1 %v7160_v33  ;;  %v1079_v32 = vld [vmem:[#allocation17 + $0x130] sm:$0xff]  ;;  %v1080_v33 = vld [vmem:[#allocation17 + $0x138] sm:$0xff] }
 0x3e4   :  { %2644 = vmatprep.subr.bf16.mxu0 %v7167_v35  ;;  %2726 = vmatprep.subr.bf16.mxu1 %v7169_v36  ;;  %v6962_v35 = vcombine.low %v1067_v23, %v1071_v24  ;;  %v6964_v36 = vcombine.low %v1068_v25, %v1072_v26  ;;  %v6971_v37 = vcombine.high %v1075_v31, %v1079_v32  ;;  %v1123_v23 = vld [vmem:[#allocation17 + $0x290] sm:$0xff]  ;;  %v1124_v25 = vld [vmem:[#allocation17 + $0x298] sm:$0xff] }
 0x3e5   :  { %v1127_v24 = vld [vmem:[#allocation17 + $0x2b0] sm:$0xff]  ;;  %v1128_v26 = vld [vmem:[#allocation17 + $0x2b8] sm:$0xff] }
 0x3e7   :  { %2645 = vmatpush1.bf16.msra.mxu0 %v7166_v41  ;;  %2727 = vmatpush1.bf16.msra.mxu1 %v7168_v42  ;;  %v1084_v41 = vld [vmem:[#allocation17 + $0x158] sm:$0xff] }
 0x3e8   :  { %2646 = vmatprep.subr.bf16.mxu0 %v7175_v43  ;;  %2728 = vmatprep.subr.bf16.mxu1 %v7177_v44  ;;  %v1088_v42 = vld [vmem:[#allocation17 + $0x178] sm:$0xff]  ;;  %v6970_v43 = vcombine.low %v1075_v31, %v1079_v32  ;;  %v1131_v31 = vld [vmem:[#allocation17 + $0x2d0] sm:$0xff] }
 0x3e9   :  { %v6981_v48 = vcombine.high %v1084_v41, %v1088_v42  ;;  %v1135_v32 = vld [vmem:[#allocation17 + $0x2f0] sm:$0xff] }
 0x3eb   :  { %2647 = vmatpush1.bf16.msra.mxu0 %v7174_v54  ;;  %2729 = vmatpush1.bf16.msra.mxu1 %v7176_v55  ;;  %v1092_v54 = vld [vmem:[#allocation17 + $0x198] sm:$0xff] }
 0x3ec   :  { %2648 = vmatprep.subr.bf16.mxu0 %v7183_v56  ;;  %2730 = vmatprep.subr.bf16.mxu1 %v7185_v57  ;;  %v1096_v55 = vld [vmem:[#allocation17 + $0x1b8] sm:$0xff]  ;;  %v6978_v56 = vcombine.low %v1083_v39, %v1087_v40  ;;  %v6980_v57 = vcombine.low %v1084_v41, %v1088_v42  ;;  %v1139_v39 = vld [vmem:[#allocation17 + $0x310] sm:$0xff] }
 0x3ed   :  { %v6989_v59 = vcombine.high %v1092_v54, %v1096_v55  ;;  %v1143_v40 = vld [vmem:[#allocation17 + $0x330] sm:$0xff]  ;;  %v1140_v41 = vld [vmem:[#allocation17 + $0x318] sm:$0xff] }
 0x3ee   :  { %v1144_v42 = vld [vmem:[#allocation17 + $0x338] sm:$0xff] }
 0x3ef   :  { %2649 = vmatpush1.bf16.msra.mxu0 %v7182_v0  ;;  %2731 = vmatpush1.bf16.msra.mxu1 %v7184_v1  ;;  %v1104_v0 = vld [vmem:[#allocation17 + $0x1f8] sm:$0xff]  ;;  %v6986_v1 = vcombine.low %v1091_v50, %v1095_v52  ;;  %v1147_v50 = vld [vmem:[#allocation17 + $0x350] sm:$0xff] }
 0x3f0   :  { %2741 = vmatprep.subr.bf16.mxu0 %v6939_v2  ;;  %2823 = vmatprep.subr.bf16.mxu1 %v6941_v3  ;;  %v6988_v2 = vcombine.low %v1092_v54, %v1096_v55  ;;  %v6995_v3 = vcombine.high %v1099_v61, %v1103_v62  ;;  %v6997_v4 = vcombine.high %v1100_v63, %v1104_v0  ;;  %v1151_v52 = vld [vmem:[#allocation17 + $0x370] sm:$0xff]  ;;  %v1148_v54 = vld [vmem:[#allocation17 + $0x358] sm:$0xff] }
 0x3f1   :  { %v1152_v55 = vld [vmem:[#allocation17 + $0x378] sm:$0xff] }
 0x3f2   :  { %2651 = vmatmul.mubr.bf16.vlgmr.msra.gmra.mrb[8].mxu0 %v8649_v10  ;;  %2733 = vmatmul.mubr.bf16.vlgmr.msra.gmra.mrb[8].mxu1 %v8649_v10 }
 0x3f3   :  { %2742 = vmatpush1.bf16.msra.mxu0 %v6938_v9  ;;  %2773 = vmatprep.mubr.bf16.mxu0 %v8634_v51  ;;  %v6994_v9 = vcombine.low %v1099_v61, %v1103_v62  ;;  %v1155_v61 = vld [vmem:[#allocation17 + $0x390] sm:$0xff] }
 0x3f4   :  { %2824 = vmatpush1.bf16.msra.mxu1 %v6940_v12  ;;  %2855 = vmatprep.mubr.bf16.mxu1 %v8634_v51  ;;  %v1076_v51 = vld [vmem:[#allocation17 + $0x118] sm:$0xff]  ;;  %v6996_v12 = vcombine.low %v1100_v63, %v1104_v0  ;;  %v1159_v62 = vld [vmem:[#allocation17 + $0x3b0] sm:$0xff] }
 0x3f5   :  { %2743 = vmatprep.subr.bf16.mxu0 %v6947_v14  ;;  %2825 = vmatprep.subr.bf16.mxu1 %v6949_v15  ;;  %v6973_v38 = vcombine.high %v1076_v51, %v1080_v33  ;;  %v6972_v44 = vcombine.low %v1076_v51, %v1080_v33  ;;  %v7003_v14 = vcombine.high %v1107_v5, %v1111_v6  ;;  %v1132_v51 = vld [vmem:[#allocation17 + $0x2d8] sm:$0xff] }
 0x3f6   :  { %v7005_v15 = vcombine.high %v1108_v7, %v1112_v8  ;;  %v1136_v33 = vld [vmem:[#allocation17 + $0x2f8] sm:$0xff] }
 0x3f7   :  { %2744 = vmatpush1.bf16.msra.mxu0 %v6946_v19  ;;  %v7002_v19 = vcombine.low %v1107_v5, %v1111_v6  ;;  %v1156_v63 = vld [vmem:[#allocation17 + $0x398] sm:$0xff]  ;;  %v1163_v5 = vld [vmem:[#allocation17 + $0x3d0] sm:$0xff] }
 0x3f8   :  { %2826 = vmatpush1.bf16.msra.mxu1 %v6948_v20  ;;  %2745 = vmatprep.subr.bf16.mxu0 %v6955_v21  ;;  %v7004_v20 = vcombine.low %v1108_v7, %v1112_v8  ;;  %v7011_v21 = vcombine.high %v1115_v16, %v1119_v17  ;;  %v1160_v0 = vld [vmem:[#allocation17 + $0x3b8] sm:$0xff]  ;;  %v1167_v6 = vld [vmem:[#allocation17 + $0x3f0] sm:$0xff] }
 0x3f9   :  { %2827 = vmatprep.subr.bf16.mxu1 %v6957_v22  ;;  %v7013_v22 = vcombine.high %v1116_v34, %v1120_v18  ;;  %v1164_v7 = vld [vmem:[#allocation17 + $0x3d8] sm:$0xff] }
 0x3fa   :  { %v1168_v8 = vld [vmem:[#allocation17 + $0x3f8] sm:$0xff] }
 0x3fb   :  { %2746 = vmatpush1.bf16.msra.mxu0 %v6954_v27  ;;  %v7010_v27 = vcombine.low %v1115_v16, %v1119_v17  ;;  %v1171_v16 = vld [vmem:[#allocation17 + $0x410] sm:$0xff] }
 0x3fc   :  { %2828 = vmatpush1.bf16.msra.mxu1 %v6956_v28  ;;  %2747 = vmatprep.subr.bf16.mxu0 %v6963_v29  ;;  %v7012_v28 = vcombine.low %v1116_v34, %v1120_v18  ;;  %v7019_v29 = vcombine.high %v1123_v23, %v1127_v24  ;;  %v1175_v17 = vld [vmem:[#allocation17 + $0x430] sm:$0xff]  ;;  %v1172_v34 = vld [vmem:[#allocation17 + $0x418] sm:$0xff] }
 0x3fd   :  { %2829 = vmatprep.subr.bf16.mxu1 %v6965_v30  ;;  %v7021_v30 = vcombine.high %v1124_v25, %v1128_v26  ;;  %v1176_v18 = vld [vmem:[#allocation17 + $0x438] sm:$0xff] }
 0x3ff   :  { %2748 = vmatpush1.bf16.msra.mxu0 %v6962_v35  ;;  %v7018_v35 = vcombine.low %v1123_v23, %v1127_v24  ;;  %v1179_v23 = vld [vmem:[#allocation17 + $0x450] sm:$0xff] }
 0x400   :  { %2830 = vmatpush1.bf16.msra.mxu1 %v6964_v36  ;;  %2749 = vmatprep.subr.bf16.mxu0 %v6971_v37  ;;  %v7020_v36 = vcombine.low %v1124_v25, %v1128_v26  ;;  %v7027_v37 = vcombine.high %v1131_v31, %v1135_v32  ;;  %v1183_v24 = vld [vmem:[#allocation17 + $0x470] sm:$0xff]  ;;  %v7066_v25 = vcombine.low %v1171_v16, %v1175_v17  ;;  %v1180_v26 = vld [vmem:[#allocation17 + $0x458] sm:$0xff] }
 0x401   :  { %2831 = vmatprep.subr.bf16.mxu1 %v6973_v38  ;;  %v7029_v38 = vcombine.high %v1132_v51, %v1136_v33 }
 0x403   :  { %2750 = vmatpush1.bf16.msra.mxu0 %v6970_v43  ;;  %v7026_v43 = vcombine.low %v1131_v31, %v1135_v32  ;;  %v1191_v31 = vld [vmem:[#allocation17 + $0x4b0] sm:$0xff] }
 0x404   :  { %2832 = vmatpush1.bf16.msra.mxu1 %v6972_v44  ;;  %2751 = vmatprep.subr.bf16.mxu0 %v6979_v45  ;;  %v7028_v44 = vcombine.low %v1132_v51, %v1136_v33  ;;  %v7035_v45 = vcombine.high %v1139_v39, %v1143_v40  ;;  %v1188_v51 = vld [vmem:[#allocation17 + $0x498] sm:$0xff] }
 0x405   :  { %2833 = vmatprep.subr.bf16.mxu1 %v6981_v48  ;;  %v7037_v48 = vcombine.high %v1140_v41, %v1144_v42  ;;  %v1192_v33 = vld [vmem:[#allocation17 + $0x4b8] sm:$0xff] }
 0x407   :  { %2752 = vmatpush1.bf16.msra.mxu0 %v6978_v56  ;;  %v7034_v56 = vcombine.low %v1139_v39, %v1143_v40  ;;  %v1195_v39 = vld [vmem:[#allocation17 + $0x4d0] sm:$0xff] }
 0x408   :  { %2834 = vmatpush1.bf16.msra.mxu1 %v6980_v57  ;;  %2753 = vmatprep.subr.bf16.mxu0 %v6987_v58  ;;  %v7036_v57 = vcombine.low %v1140_v41, %v1144_v42  ;;  %v7043_v58 = vcombine.high %v1147_v50, %v1151_v52  ;;  %v1199_v40 = vld [vmem:[#allocation17 + $0x4f0] sm:$0xff]  ;;  %v1196_v41 = vld [vmem:[#allocation17 + $0x4d8] sm:$0xff] }
 0x409   :  { %2835 = vmatprep.subr.bf16.mxu1 %v6989_v59  ;;  %v7045_v59 = vcombine.high %v1148_v54, %v1152_v55  ;;  %v1200_v42 = vld [vmem:[#allocation17 + $0x4f8] sm:$0xff] }
 0x40b   :  { %2754 = vmatpush1.bf16.msra.mxu0 %v6986_v1  ;;  %v7042_v1 = vcombine.low %v1147_v50, %v1151_v52  ;;  %v1207_v50 = vld [vmem:[#allocation17 + $0x530] sm:$0xff]  ;;  %v1204_v52 = vld [vmem:[#allocation17 + $0x518] sm:$0xff] }
 0x40c   :  { %2836 = vmatpush1.bf16.msra.mxu1 %v6988_v2  ;;  %2755 = vmatprep.subr.bf16.mxu0 %v6995_v3  ;;  %v7044_v2 = vcombine.low %v1148_v54, %v1152_v55  ;;  %v7051_v3 = vcombine.high %v1155_v61, %v1159_v62  ;;  %v1208_v54 = vld [vmem:[#allocation17 + $0x538] sm:$0xff]  ;;  %v7092_v55 = vcombine.low %v1196_v41, %v1200_v42 }
 0x40d   :  { %2837 = vmatprep.subr.bf16.mxu1 %v6997_v4  ;;  %v7053_v4 = vcombine.high %v1156_v63, %v1160_v0 }
 0x40f   :  { %2756 = vmatpush1.bf16.msra.mxu0 %v6994_v9  ;;  %v7050_v9 = vcombine.low %v1155_v61, %v1159_v62  ;;  %v1212_v61 = vld [vmem:[#allocation17 + $0x558] sm:$0xff] }
 0x410   :  { %2838 = vmatpush1.bf16.msra.mxu1 %v6996_v12  ;;  %2757 = vmatprep.subr.bf16.mxu0 %v7003_v14  ;;  %v7052_v12 = vcombine.low %v1156_v63, %v1160_v0  ;;  %v7059_v14 = vcombine.high %v1163_v5, %v1167_v6  ;;  %v1216_v62 = vld [vmem:[#allocation17 + $0x578] sm:$0xff]  ;;  %v7100_v0 = vcombine.low %v1204_v52, %v1208_v54 }
 0x411   :  { %2839 = vmatprep.subr.bf16.mxu1 %v7005_v15  ;;  %v7061_v15 = vcombine.high %v1164_v7, %v1168_v8 }
 0x413   :  { %2758 = vmatpush1.bf16.msra.mxu0 %v7002_v19  ;;  %v7058_v19 = vcombine.low %v1163_v5, %v1167_v6  ;;  %v1220_v5 = vld [vmem:[#allocation17 + $0x598] sm:$0xff] }
 0x414   :  { %2840 = vmatpush1.bf16.msra.mxu1 %v7004_v20  ;;  %2759 = vmatprep.subr.bf16.mxu0 %v7011_v21  ;;  %v7060_v20 = vcombine.low %v1164_v7, %v1168_v8  ;;  %v7067_v21 = vcombine.high %v1171_v16, %v1175_v17  ;;  %v1224_v6 = vld [vmem:[#allocation17 + $0x5b8] sm:$0xff]  ;;  %v7108_v8 = vcombine.low %v1212_v61, %v1216_v62 }
 0x415   :  { %2841 = vmatprep.subr.bf16.mxu1 %v7013_v22  ;;  %v7069_v22 = vcombine.high %v1172_v34, %v1176_v18  ;;  %v1228_v16 = vld [vmem:[#allocation17 + $0x5d8] sm:$0xff] }
 0x416   :  { %v1232_v17 = vld [vmem:[#allocation17 + $0x5f8] sm:$0xff] }
 0x417   :  { %2760 = vmatpush1.bf16.msra.mxu0 %v7010_v27  ;;  %v1184_v27 = vld [vmem:[#allocation17 + $0x478] sm:$0xff] }
 0x418   :  { %2842 = vmatpush1.bf16.msra.mxu1 %v7012_v28  ;;  %2761 = vmatprep.subr.bf16.mxu0 %v7019_v29  ;;  %v7068_v28 = vcombine.low %v1172_v34, %v1176_v18  ;;  %v7075_v29 = vcombine.high %v1179_v23, %v1183_v24  ;;  %v7077_v32 = vcombine.high %v1180_v26, %v1184_v27 }
 0x419   :  { %2843 = vmatprep.subr.bf16.mxu1 %v7021_v30  ;;  %v1187_v30 = vld [vmem:[#allocation17 + $0x490] sm:$0xff]  ;;  %v7116_v18 = vcombine.low %v1220_v5, %v1224_v6 }
 0x41b   :  { %2762 = vmatpush1.bf16.msra.mxu0 %v7018_v35  ;;  %v7074_v35 = vcombine.low %v1179_v23, %v1183_v24  ;;  %v1236_v23 = vld [vmem:[#allocation17 + $0x618] sm:$0xff] }
 0x41c   :  { %2844 = vmatpush1.bf16.msra.mxu1 %v7020_v36  ;;  %2763 = vmatprep.subr.bf16.mxu0 %v7027_v37  ;;  %v7076_v36 = vcombine.low %v1180_v26, %v1184_v27  ;;  %v7083_v37 = vcombine.high %v1187_v30, %v1191_v31  ;;  %v1240_v24 = vld [vmem:[#allocation17 + $0x638] sm:$0xff]  ;;  %v7124_v26 = vcombine.low %v1228_v16, %v1232_v17 }
 0x41d   :  { %2845 = vmatprep.subr.bf16.mxu1 %v7029_v38  ;;  %v7085_v38 = vcombine.high %v1188_v51, %v1192_v33 }
 0x41f   :  { %2764 = vmatpush1.bf16.msra.mxu0 %v7026_v43  ;;  %v7082_v43 = vcombine.low %v1187_v30, %v1191_v31  ;;  %v1247_v30 = vld [vmem:[#allocation17 + $0x670] sm:$0xff]  ;;  %v1244_v31 = vld [vmem:[#allocation17 + $0x658] sm:$0xff] }
 0x420   :  { %2846 = vmatpush1.bf16.msra.mxu1 %v7028_v44  ;;  %2765 = vmatprep.subr.bf16.mxu0 %v7035_v45  ;;  %v7091_v44 = vcombine.high %v1195_v39, %v1199_v40  ;;  %v7093_v45 = vcombine.high %v1196_v41, %v1200_v42 }
 0x421   :  { %2847 = vmatprep.subr.bf16.mxu1 %v7037_v48  ;;  %v1203_v48 = vld [vmem:[#allocation17 + $0x510] sm:$0xff] }
 0x422   :  { %v7098_v63 = vcombine.low %v1203_v48, %v1207_v50 }
 0x423   :  { %2766 = vmatpush1.bf16.msra.mxu0 %v7034_v56  ;;  %v7099_v56 = vcombine.high %v1203_v48, %v1207_v50  ;;  %v1260_v48 = vld [vmem:[#allocation17 + $0x6d8] sm:$0xff] }
 0x424   :  { %2848 = vmatpush1.bf16.msra.mxu1 %v7036_v57  ;;  %2767 = vmatprep.subr.bf16.mxu0 %v7043_v58  ;;  %v7101_v57 = vcombine.high %v1204_v52, %v1208_v54  ;;  %v1211_v58 = vld [vmem:[#allocation17 + $0x550] sm:$0xff]  ;;  %v1264_v50 = vld [vmem:[#allocation17 + $0x6f8] sm:$0xff] }
 0x425   :  { %2849 = vmatprep.subr.bf16.mxu1 %v7045_v59  ;;  %v1215_v59 = vld [vmem:[#allocation17 + $0x570] sm:$0xff] }
 0x426   :  { %v7106_v7 = vcombine.low %v1211_v58, %v1215_v59 }
 0x427   :  { %2768 = vmatpush1.bf16.msra.mxu0 %v7042_v1  ;;  %v7107_v1 = vcombine.high %v1211_v58, %v1215_v59  ;;  %v1268_v58 = vld [vmem:[#allocation17 + $0x718] sm:$0xff] }
 0x428   :  { %2850 = vmatpush1.bf16.msra.mxu1 %v7044_v2  ;;  %2769 = vmatprep.subr.bf16.mxu0 %v7051_v3  ;;  %v7109_v2 = vcombine.high %v1212_v61, %v1216_v62  ;;  %v1219_v3 = vld [vmem:[#allocation17 + $0x590] sm:$0xff]  ;;  %v1272_v59 = vld [vmem:[#allocation17 + $0x738] sm:$0xff]  ;;  %v7156_v62 = vcombine.low %v1260_v48, %v1264_v50 }
 0x429   :  { %2851 = vmatprep.subr.bf16.mxu1 %v7053_v4  ;;  %v1223_v4 = vld [vmem:[#allocation17 + $0x5b0] sm:$0xff] }
 0x42a   :  { %v7114_v34 = vcombine.low %v1219_v3, %v1223_v4 }
 0x42b   :  { %2770 = vmatpush1.bf16.msra.mxu0 %v7050_v9  ;;  %v7115_v9 = vcombine.high %v1219_v3, %v1223_v4  ;;  %v1276_v3 = vld [vmem:[#allocation17 + $0x758] sm:$0xff] }
 0x42c   :  { %2852 = vmatpush1.bf16.msra.mxu1 %v7052_v12  ;;  %2771 = vmatprep.subr.bf16.mxu0 %v7059_v14  ;;  %v7117_v12 = vcombine.high %v1220_v5, %v1224_v6  ;;  %v1227_v14 = vld [vmem:[#allocation17 + $0x5d0] sm:$0xff]  ;;  %v1280_v4 = vld [vmem:[#allocation17 + $0x778] sm:$0xff]  ;;  %v7164_v6 = vcombine.low %v1268_v58, %v1272_v59 }
 0x42d   :  { %2853 = vmatprep.subr.bf16.mxu1 %v7061_v15  ;;  %v1231_v15 = vld [vmem:[#allocation17 + $0x5f0] sm:$0xff] }
 0x42f   :  { %2772 = vmatpush1.bf16.msra.mxu0 %v7058_v19  ;;  %v7123_v19 = vcombine.high %v1227_v14, %v1231_v15 }
 0x430   :  { %2854 = vmatpush1.bf16.msra.mxu1 %v7060_v20  ;;  %2782 = vmatprep.subr.bf16.mxu0 %v7067_v21  ;;  %v7125_v20 = vcombine.high %v1228_v16, %v1232_v17  ;;  %v1235_v21 = vld [vmem:[#allocation17 + $0x610] sm:$0xff]  ;;  %v7172_v17 = vcombine.low %v1276_v3, %v1280_v4 }
 0x431   :  { %2864 = vmatprep.subr.bf16.mxu1 %v7069_v22  ;;  %v1239_v22 = vld [vmem:[#allocation17 + $0x630] sm:$0xff] }
 0x432   :  { %2774 = vmatmul.mubr.bf16.vlgmr.msra.gmra.mrb[12].mxu0 %v8636_v53  ;;  %v7131_v27 = vcombine.high %v1235_v21, %v1239_v22 }
 0x433   :  { %2856 = vmatmul.mubr.bf16.vlgmr.msra.gmra.mrb[12].mxu1 %v8636_v53  ;;  %2783 = vmatpush1.bf16.msra.mxu0 %v7066_v25  ;;  %v7084_v53 = vcombine.low %v1188_v51, %v1192_v33  ;;  %v7122_v25 = vcombine.low %v1227_v14, %v1231_v15  ;;  %v7130_v51 = vcombine.low %v1235_v21, %v1239_v22  ;;  %v1284_v14 = vld [vmem:[#allocation17 + $0x798] sm:$0xff] }
 0x434   :  { %2814 = vmatprep.mubr.bf16.mxu0 %v8640_v60  ;;  %2865 = vmatpush1.bf16.msra.mxu1 %v7068_v28  ;;  %v7133_v28 = vcombine.high %v1236_v23, %v1240_v24  ;;  %v7132_v33 = vcombine.low %v1236_v23, %v1240_v24  ;;  %v1288_v15 = vld [vmem:[#allocation17 + $0x7b8] sm:$0xff] }
 0x435   :  { %2896 = vmatprep.mubr.bf16.mxu1 %v8640_v60  ;;  %2784 = vmatprep.subr.bf16.mxu0 %v7075_v29  ;;  %v7090_v60 = vcombine.low %v1195_v39, %v1199_v40  ;;  %v1243_v29 = vld [vmem:[#allocation17 + $0x650] sm:$0xff]  ;;  %v1252_v39 = vld [vmem:[#allocation17 + $0x698] sm:$0xff]  ;;  %v7180_v24 = vcombine.low %v1284_v14, %v1288_v15 }
 0x436   :  { %2866 = vmatprep.subr.bf16.mxu1 %v7077_v32  ;;  %v1248_v32 = vld [vmem:[#allocation17 + $0x678] sm:$0xff]  ;;  %v7138_v41 = vcombine.low %v1243_v29, %v1247_v30 }
 0x437   :  { %2785 = vmatpush1.bf16.msra.mxu0 %v7074_v35  ;;  %v7139_v35 = vcombine.high %v1243_v29, %v1247_v30  ;;  %v1256_v40 = vld [vmem:[#allocation17 + $0x6b8] sm:$0xff]  ;;  %v7140_v42 = vcombine.low %v1244_v31, %v1248_v32 }
 0x438   :  { %2867 = vmatpush1.bf16.msra.mxu1 %v7076_v36  ;;  %2786 = vmatprep.subr.bf16.mxu0 %v7083_v37  ;;  %v7141_v36 = vcombine.high %v1244_v31, %v1248_v32  ;;  %v1251_v37 = vld [vmem:[#allocation17 + $0x690] sm:$0xff]  ;;  %v7148_v54 = vcombine.low %v1252_v39, %v1256_v40  ;;  %v1292_v21 = vld [vmem:[#allocation17 + $0x7d8] sm:$0xff] }
 0x439   :  { %2868 = vmatprep.subr.bf16.mxu1 %v7085_v38  ;;  %v1255_v38 = vld [vmem:[#allocation17 + $0x6b0] sm:$0xff]  ;;  %v1296_v22 = vld [vmem:[#allocation17 + $0x7f8] sm:$0xff] }
 0x43a   :  { %v7146_v52 = vcombine.low %v1251_v37, %v1255_v38  ;;  %v3038_v29 = vld [vmem:[#allocation22 + $0x8] sm:$0xff]  ;;  %v7188_v32 = vcombine.low %v1292_v21, %v1296_v22 }
 0x43b   :  { %2787 = vmatpush1.bf16.msra.mxu0 %v7082_v43  ;;  %v7147_v43 = vcombine.high %v1251_v37, %v1255_v38  ;;  %v3042_v30 = vld [vmem:[#allocation22 + $0x28] sm:$0xff] }
 0x43c   :  { %2869 = vmatpush1.bf16.msra.mxu1 %v7084_v53  ;;  %2788 = vmatprep.subr.bf16.mxu0 %v7091_v44  ;;  %v7149_v53 = vcombine.high %v1252_v39, %v1256_v40  ;;  %v1259_v44 = vld [vmem:[#allocation17 + $0x6d0] sm:$0xff]  ;;  %v3046_v37 = vld [vmem:[#allocation22 + $0x48] sm:$0xff]  ;;  %v7192_v40 = vcombine.low %v3038_v29, %v3042_v30 }
 0x43d   :  { %2870 = vmatprep.subr.bf16.mxu1 %v7093_v45  ;;  %v1263_v45 = vld [vmem:[#allocation17 + $0x6f0] sm:$0xff]  ;;  %v3050_v38 = vld [vmem:[#allocation22 + $0x68] sm:$0xff] }
 0x43e   :  { %v7154_v61 = vcombine.low %v1259_v44, %v1263_v45 }
 0x43f   :  { %2789 = vmatpush1.bf16.msra.mxu0 %v7090_v60  ;;  %v7155_v60 = vcombine.high %v1259_v44, %v1263_v45  ;;  %v3054_v44 = vld [vmem:[#allocation22 + $0x88] sm:$0xff] }
 0x440   :  { %2871 = vmatpush1.bf16.msra.mxu1 %v7092_v55  ;;  %2790 = vmatprep.subr.bf16.mxu0 %v7099_v56  ;;  %v7157_v55 = vcombine.high %v1260_v48, %v1264_v50  ;;  %v1267_v56 = vld [vmem:[#allocation17 + $0x710] sm:$0xff]  ;;  %v3058_v45 = vld [vmem:[#allocation22 + $0xa8] sm:$0xff]  ;;  %v7200_v50 = vcombine.low %v3046_v37, %v3050_v38 }
 0x441   :  { %2872 = vmatprep.subr.bf16.mxu1 %v7101_v57  ;;  %v1271_v57 = vld [vmem:[#allocation17 + $0x730] sm:$0xff] }
 0x442   :  { %v7162_v5 = vcombine.low %v1267_v56, %v1271_v57 }
 0x443   :  { %2791 = vmatpush1.bf16.msra.mxu0 %v7098_v63  ;;  %v7163_v63 = vcombine.high %v1267_v56, %v1271_v57  ;;  %v3062_v56 = vld [vmem:[#allocation22 + $0xc8] sm:$0xff] }
 0x444   :  { %2873 = vmatpush1.bf16.msra.mxu1 %v7100_v0  ;;  %2792 = vmatprep.subr.bf16.mxu0 %v7107_v1  ;;  %v7165_v0 = vcombine.high %v1268_v58, %v1272_v59  ;;  %v1275_v1 = vld [vmem:[#allocation17 + $0x750] sm:$0xff]  ;;  %v3066_v57 = vld [vmem:[#allocation22 + $0xe8] sm:$0xff]  ;;  %v7208_v59 = vcombine.low %v3054_v44, %v3058_v45 }
 0x445   :  { %2874 = vmatprep.subr.bf16.mxu1 %v7109_v2  ;;  %v1279_v2 = vld [vmem:[#allocation17 + $0x770] sm:$0xff] }
 0x446   :  { %v7170_v16 = vcombine.low %v1275_v1, %v1279_v2 }
 0x447   :  { %2793 = vmatpush1.bf16.msra.mxu0 %v7106_v7  ;;  %v7171_v7 = vcombine.high %v1275_v1, %v1279_v2  ;;  %v3074_v1 = vld [vmem:[#allocation22 + $0x128] sm:$0xff] }
 0x448   :  { %2875 = vmatpush1.bf16.msra.mxu1 %v7108_v8  ;;  %2794 = vmatprep.subr.bf16.mxu0 %v7115_v9  ;;  %v7173_v8 = vcombine.high %v1276_v3, %v1280_v4  ;;  %v1283_v9 = vld [vmem:[#allocation17 + $0x790] sm:$0xff]  ;;  %v7216_v3 = vcombine.low %v3062_v56, %v3066_v57 }
 0x449   :  { %2876 = vmatprep.subr.bf16.mxu1 %v7117_v12  ;;  %v1287_v12 = vld [vmem:[#allocation17 + $0x7b0] sm:$0xff] }
 0x44a   :  { %v7178_v23 = vcombine.low %v1283_v9, %v1287_v12 }
 0x44b   :  { %2795 = vmatpush1.bf16.msra.mxu0 %v7114_v34  ;;  %v7179_v34 = vcombine.high %v1283_v9, %v1287_v12  ;;  %v3082_v9 = vld [vmem:[#allocation22 + $0x168] sm:$0xff] }
 0x44c   :  { %2877 = vmatpush1.bf16.msra.mxu1 %v7116_v18  ;;  %2796 = vmatprep.subr.bf16.mxu0 %v7123_v19  ;;  %v7181_v18 = vcombine.high %v1284_v14, %v1288_v15  ;;  %v1291_v19 = vld [vmem:[#allocation17 + $0x7d0] sm:$0xff] }
 0x44d   :  { %2878 = vmatprep.subr.bf16.mxu1 %v7125_v20  ;;  %v1295_v20 = vld [vmem:[#allocation17 + $0x7f0] sm:$0xff] }
 0x44e   :  { %v7186_v31 = vcombine.low %v1291_v19, %v1295_v20 }
 0x44f   :  { %2797 = vmatpush1.bf16.msra.mxu0 %v7122_v25  ;;  %v7187_v25 = vcombine.high %v1291_v19, %v1295_v20  ;;  %v3090_v19 = vld [vmem:[#allocation22 + $0x1a8] sm:$0xff] }
 0x450   :  { %2879 = vmatpush1.bf16.msra.mxu1 %v7124_v26  ;;  %2798 = vmatprep.subr.bf16.mxu0 %v7131_v27  ;;  %v7189_v26 = vcombine.high %v1292_v21, %v1296_v22  ;;  %v3037_v27 = vld [vmem:[#allocation22] sm:$0xff] }
 0x451   :  { %2880 = vmatprep.subr.bf16.mxu1 %v7133_v28  ;;  %v3041_v28 = vld [vmem:[#allocation22 + $0x20] sm:$0xff] }
 0x452   :  { %v7190_v39 = vcombine.low %v3037_v27, %v3041_v28 }
 0x453   :  { %2799 = vmatpush1.bf16.msra.mxu0 %v7130_v51  ;;  %v7191_v51 = vcombine.high %v3037_v27, %v3041_v28  ;;  %v3098_v27 = vld [vmem:[#allocation22 + $0x1e8] sm:$0xff] }
 0x454   :  { %2881 = vmatpush1.bf16.msra.mxu1 %v7132_v33  ;;  %2800 = vmatprep.subr.bf16.mxu0 %v7139_v35  ;;  %v7193_v33 = vcombine.high %v3038_v29, %v3042_v30  ;;  %v3045_v35 = vld [vmem:[#allocation22 + $0x40] sm:$0xff] }
 0x455   :  { %2882 = vmatprep.subr.bf16.mxu1 %v7141_v36  ;;  %v3049_v36 = vld [vmem:[#allocation22 + $0x60] sm:$0xff] }
 0x456   :  { %v7198_v48 = vcombine.low %v3045_v35, %v3049_v36 }
 0x457   :  { %2801 = vmatpush1.bf16.msra.mxu0 %v7138_v41  ;;  %v7199_v41 = vcombine.high %v3045_v35, %v3049_v36  ;;  %v3106_v35 = vld [vmem:[#allocation22 + $0x228] sm:$0xff] }
 0x458   :  { %2883 = vmatpush1.bf16.msra.mxu1 %v7140_v42  ;;  %2802 = vmatprep.subr.bf16.mxu0 %v7147_v43  ;;  %v7201_v42 = vcombine.high %v3046_v37, %v3050_v38  ;;  %v3053_v43 = vld [vmem:[#allocation22 + $0x80] sm:$0xff] }
 0x459   :  { %2884 = vmatprep.subr.bf16.mxu1 %v7149_v53  ;;  %v3057_v53 = vld [vmem:[#allocation22 + $0xa0] sm:$0xff] }
 0x45a   :  { %v7206_v58 = vcombine.low %v3053_v43, %v3057_v53 }
 0x45b   :  { %2803 = vmatpush1.bf16.msra.mxu0 %v7146_v52  ;;  %v7207_v52 = vcombine.high %v3053_v43, %v3057_v53  ;;  %v3114_v43 = vld [vmem:[#allocation22 + $0x268] sm:$0xff] }
 0x45c   :  { %2885 = vmatpush1.bf16.msra.mxu1 %v7148_v54  ;;  %2804 = vmatprep.subr.bf16.mxu0 %v7155_v60  ;;  %v7209_v54 = vcombine.high %v3054_v44, %v3058_v45  ;;  %v3061_v60 = vld [vmem:[#allocation22 + $0xc0] sm:$0xff] }
 0x45d   :  { %2886 = vmatprep.subr.bf16.mxu1 %v7157_v55  ;;  %v3065_v55 = vld [vmem:[#allocation22 + $0xe0] sm:$0xff] }
 0x45e   :  { %v7214_v2 = vcombine.low %v3061_v60, %v3065_v55 }
 0x45f   :  { %2805 = vmatpush1.bf16.msra.mxu0 %v7154_v61  ;;  %v7215_v61 = vcombine.high %v3061_v60, %v3065_v55  ;;  %v3122_v60 = vld [vmem:[#allocation22 + $0x2a8] sm:$0xff] }
 0x460   :  { %2887 = vmatpush1.bf16.msra.mxu1 %v7156_v62  ;;  %2806 = vmatprep.subr.bf16.mxu0 %v7163_v63  ;;  %v3069_v62 = vld [vmem:[#allocation22 + $0x100] sm:$0xff] }
 0x461   :  { %2888 = vmatprep.subr.bf16.mxu1 %v7165_v0  ;;  %v3073_v63 = vld [vmem:[#allocation22 + $0x120] sm:$0xff]  ;;  %v3070_v0 = vld [vmem:[#allocation22 + $0x108] sm:$0xff] }
 0x462   :  { %v7223_v4 = vcombine.high %v3069_v62, %v3073_v63  ;;  %v7222_v12 = vcombine.low %v3069_v62, %v3073_v63  ;;  %v7224_v14 = vcombine.low %v3070_v0, %v3074_v1  ;;  %v3130_v62 = vld [vmem:[#allocation22 + $0x2e8] sm:$0xff] }
 0x463   :  { %2807 = vmatpush1.bf16.msra.mxu0 %v7162_v5  ;;  %v7225_v5 = vcombine.high %v3070_v0, %v3074_v1 }
 0x464   :  { %2889 = vmatpush1.bf16.msra.mxu1 %v7164_v6  ;;  %2808 = vmatprep.subr.bf16.mxu0 %v7171_v7  ;;  %v3077_v6 = vld [vmem:[#allocation22 + $0x140] sm:$0xff] }
 0x465   :  { %2890 = vmatprep.subr.bf16.mxu1 %v7173_v8  ;;  %v3081_v7 = vld [vmem:[#allocation22 + $0x160] sm:$0xff]  ;;  %v3078_v8 = vld [vmem:[#allocation22 + $0x148] sm:$0xff] }
 0x466   :  { %v7231_v15 = vcombine.high %v3077_v6, %v3081_v7  ;;  %v7230_v20 = vcombine.low %v3077_v6, %v3081_v7  ;;  %v7232_v21 = vcombine.low %v3078_v8, %v3082_v9  ;;  %v3138_v6 = vld [vmem:[#allocation22 + $0x328] sm:$0xff] }
 0x467   :  { %2809 = vmatpush1.bf16.msra.mxu0 %v7170_v16  ;;  %v7233_v16 = vcombine.high %v3078_v8, %v3082_v9 }
 0x468   :  { %2891 = vmatpush1.bf16.msra.mxu1 %v7172_v17  ;;  %2810 = vmatprep.subr.bf16.mxu0 %v7179_v34  ;;  %v3085_v17 = vld [vmem:[#allocation22 + $0x180] sm:$0xff] }
 0x469   :  { %2892 = vmatprep.subr.bf16.mxu1 %v7181_v18  ;;  %v3089_v34 = vld [vmem:[#allocation22 + $0x1a0] sm:$0xff]  ;;  %v3086_v18 = vld [vmem:[#allocation22 + $0x188] sm:$0xff] }
 0x46a   :  { %v7239_v22 = vcombine.high %v3085_v17, %v3089_v34  ;;  %v7238_v28 = vcombine.low %v3085_v17, %v3089_v34  ;;  %v7240_v29 = vcombine.low %v3086_v18, %v3090_v19  ;;  %v3146_v17 = vld [vmem:[#allocation22 + $0x368] sm:$0xff] }
 0x46b   :  { %2811 = vmatpush1.bf16.msra.mxu0 %v7178_v23  ;;  %v7241_v23 = vcombine.high %v3086_v18, %v3090_v19 }
 0x46c   :  { %2893 = vmatpush1.bf16.msra.mxu1 %v7180_v24  ;;  %2812 = vmatprep.subr.bf16.mxu0 %v7187_v25  ;;  %v3093_v24 = vld [vmem:[#allocation22 + $0x1c0] sm:$0xff] }
 0x46d   :  { %2894 = vmatprep.subr.bf16.mxu1 %v7189_v26  ;;  %v3097_v25 = vld [vmem:[#allocation22 + $0x1e0] sm:$0xff]  ;;  %v3094_v26 = vld [vmem:[#allocation22 + $0x1c8] sm:$0xff] }
 0x46e   :  { %v7247_v30 = vcombine.high %v3093_v24, %v3097_v25  ;;  %v7246_v36 = vcombine.low %v3093_v24, %v3097_v25  ;;  %v7248_v37 = vcombine.low %v3094_v26, %v3098_v27  ;;  %v3154_v24 = vld [vmem:[#allocation22 + $0x3a8] sm:$0xff] }
 0x46f   :  { %2813 = vmatpush1.bf16.msra.mxu0 %v7186_v31  ;;  %v7249_v31 = vcombine.high %v3094_v26, %v3098_v27 }
 0x470   :  { %2895 = vmatpush1.bf16.msra.mxu1 %v7188_v32  ;;  %6151 = vmatprep.subr.bf16.mxu0 %v7191_v51  ;;  %v3101_v32 = vld [vmem:[#allocation22 + $0x200] sm:$0xff] }
 0x471   :  { %6315 = vmatprep.subr.bf16.mxu1 %v7193_v33  ;;  %v3105_v51 = vld [vmem:[#allocation22 + $0x220] sm:$0xff]  ;;  %v3102_v33 = vld [vmem:[#allocation22 + $0x208] sm:$0xff] }
 0x472   :  { %2815 = vmatmul.mubr.bf16.vlgmr.msra.gmra.mrb[12].mxu0 %v8649_v10  ;;  %v7255_v38 = vcombine.high %v3101_v32, %v3105_v51  ;;  %v7254_v53 = vcombine.low %v3101_v32, %v3105_v51  ;;  %v7256_v44 = vcombine.low %v3102_v33, %v3106_v35  ;;  %v3162_v32 = vld [vmem:[#allocation22 + $0x3e8] sm:$0xff] }
 0x473   :  { %2897 = vmatmul.mubr.bf16.vlgmr.msra.gmra.mrb[12].mxu1 %v8649_v10  ;;  %6152 = vmatpush1.bf16.msra.mxu0 %v7190_v39  ;;  %v7217_v10 = vcombine.high %v3062_v56, %v3066_v57  ;;  %v7257_v39 = vcombine.high %v3102_v33, %v3106_v35 }
 0x474   :  { %6316 = vmatpush1.bf16.msra.mxu1 %v7192_v40  ;;  %6153 = vmatprep.subr.bf16.mxu0 %v7199_v41  ;;  %v3109_v40 = vld [vmem:[#allocation22 + $0x240] sm:$0xff] }
 0x475   :  { %6317 = vmatprep.subr.bf16.mxu1 %v7201_v42  ;;  %v3113_v41 = vld [vmem:[#allocation22 + $0x260] sm:$0xff]  ;;  %v3110_v42 = vld [vmem:[#allocation22 + $0x248] sm:$0xff] }
 0x476   :  { %v7263_v45 = vcombine.high %v3109_v40, %v3113_v41  ;;  %v7262_v55 = vcombine.low %v3109_v40, %v3113_v41  ;;  %v7264_v56 = vcombine.low %v3110_v42, %v3114_v43  ;;  %v8667_v40 = vld [vmem:[#allocation22 + $0x428] sm:$0xff] }
 0x477   :  { %6154 = vmatpush1.bf16.msra.mxu0 %v7198_v48  ;;  %v7265_v48 = vcombine.high %v3110_v42, %v3114_v43 }
 0x478   :  { %6318 = vmatpush1.bf16.msra.mxu1 %v7200_v50  ;;  %6155 = vmatprep.subr.bf16.mxu0 %v7207_v52  ;;  %v3117_v50 = vld [vmem:[#allocation22 + $0x280] sm:$0xff] }
 0x479   :  { %6319 = vmatprep.subr.bf16.mxu1 %v7209_v54  ;;  %v3121_v52 = vld [vmem:[#allocation22 + $0x2a0] sm:$0xff]  ;;  %v3118_v54 = vld [vmem:[#allocation22 + $0x288] sm:$0xff] }
 0x47a   :  { %v7271_v57 = vcombine.high %v3117_v50, %v3121_v52  ;;  %v7270_v63 = vcombine.low %v3117_v50, %v3121_v52  ;;  %v7272_v0 = vcombine.low %v3118_v54, %v3122_v60 }
 0x47b   :  { %6156 = vmatpush1.bf16.msra.mxu0 %v7206_v58  ;;  %v7273_v58 = vcombine.high %v3118_v54, %v3122_v60 }
 0x47c   :  { %6320 = vmatpush1.bf16.msra.mxu1 %v7208_v59  ;;  %6157 = vmatprep.subr.bf16.mxu0 %v7215_v61  ;;  %v3125_v59 = vld [vmem:[#allocation22 + $0x2c0] sm:$0xff] }
 0x47d   :  { %6321 = vmatprep.subr.bf16.mxu1 %v7217_v10  ;;  %v3129_v61 = vld [vmem:[#allocation22 + $0x2e0] sm:$0xff]  ;;  %v3126_v10 = vld [vmem:[#allocation22 + $0x2c8] sm:$0xff] }
 0x47e   :  { %v7279_v1 = vcombine.high %v3125_v59, %v3129_v61  ;;  %v7278_v7 = vcombine.low %v3125_v59, %v3129_v61  ;;  %v7280_v8 = vcombine.low %v3126_v10, %v3130_v62 }
 0x47f   :  { %6158 = vmatpush1.bf16.msra.mxu0 %v7214_v2  ;;  %v7281_v2 = vcombine.high %v3126_v10, %v3130_v62 }
 0x480   :  { %6322 = vmatpush1.bf16.msra.mxu1 %v7216_v3  ;;  %6159 = vmatprep.subr.bf16.mxu0 %v7223_v4  ;;  %v3133_v3 = vld [vmem:[#allocation22 + $0x300] sm:$0xff] }
 0x481   :  { %6323 = vmatprep.subr.bf16.mxu1 %v7225_v5  ;;  %v3137_v4 = vld [vmem:[#allocation22 + $0x320] sm:$0xff]  ;;  %v3134_v5 = vld [vmem:[#allocation22 + $0x308] sm:$0xff] }
 0x482   :  { %v7287_v9 = vcombine.high %v3133_v3, %v3137_v4  ;;  %v7286_v34 = vcombine.low %v3133_v3, %v3137_v4  ;;  %v7288_v18 = vcombine.low %v3134_v5, %v3138_v6 }
 0x483   :  { %6160 = vmatpush1.bf16.msra.mxu0 %v7222_v12  ;;  %v7289_v12 = vcombine.high %v3134_v5, %v3138_v6 }
 0x484   :  { %6324 = vmatpush1.bf16.msra.mxu1 %v7224_v14  ;;  %6161 = vmatprep.subr.bf16.mxu0 %v7231_v15  ;;  %v3141_v14 = vld [vmem:[#allocation22 + $0x340] sm:$0xff] }
 0x485   :  { %6325 = vmatprep.subr.bf16.mxu1 %v7233_v16  ;;  %v3145_v15 = vld [vmem:[#allocation22 + $0x360] sm:$0xff]  ;;  %v3142_v16 = vld [vmem:[#allocation22 + $0x348] sm:$0xff] }
 0x486   :  { %v7295_v19 = vcombine.high %v3141_v14, %v3145_v15  ;;  %v7294_v25 = vcombine.low %v3141_v14, %v3145_v15  ;;  %v7296_v26 = vcombine.low %v3142_v16, %v3146_v17  ;;  %v3177_v15 = vld [vmem:[#allocation22 + $0x460] sm:$0xff] }
 0x487   :  { %6162 = vmatpush1.bf16.msra.mxu0 %v7230_v20  ;;  %v7297_v20 = vcombine.high %v3142_v16, %v3146_v17  ;;  %v3174_v16 = vld [vmem:[#allocation22 + $0x448] sm:$0xff] }
 0x488   :  { %6326 = vmatpush1.bf16.msra.mxu1 %v7232_v21  ;;  %6163 = vmatprep.subr.bf16.mxu0 %v7239_v22  ;;  %v3149_v21 = vld [vmem:[#allocation22 + $0x380] sm:$0xff]  ;;  %v3178_v17 = vld [vmem:[#allocation22 + $0x468] sm:$0xff] }
 0x489   :  { %6327 = vmatprep.subr.bf16.mxu1 %v7241_v23  ;;  %v3153_v22 = vld [vmem:[#allocation22 + $0x3a0] sm:$0xff]  ;;  %v3150_v23 = vld [vmem:[#allocation22 + $0x388] sm:$0xff] }
 0x48a   :  { %v7303_v27 = vcombine.high %v3149_v21, %v3153_v22  ;;  %v7302_v51 = vcombine.low %v3149_v21, %v3153_v22  ;;  %v7304_v33 = vcombine.low %v3150_v23, %v3154_v24  ;;  %v3181_v22 = vld [vmem:[#allocation22 + $0x480] sm:$0xff] }
 0x48b   :  { %6164 = vmatpush1.bf16.msra.mxu0 %v7238_v28  ;;  %v7305_v28 = vcombine.high %v3150_v23, %v3154_v24  ;;  %v7329_v24 = vcombine.high %v3174_v16, %v3178_v17 }
 0x48c   :  { %6328 = vmatpush1.bf16.msra.mxu1 %v7240_v29  ;;  %6165 = vmatprep.subr.bf16.mxu0 %v7247_v30  ;;  %v3157_v29 = vld [vmem:[#allocation22 + $0x3c0] sm:$0xff] }
 0x48d   :  { %6329 = vmatprep.subr.bf16.mxu1 %v7249_v31  ;;  %v3161_v30 = vld [vmem:[#allocation22 + $0x3e0] sm:$0xff]  ;;  %v3158_v31 = vld [vmem:[#allocation22 + $0x3c8] sm:$0xff] }
 0x48e   :  { %v7311_v35 = vcombine.high %v3157_v29, %v3161_v30  ;;  %v7310_v41 = vcombine.low %v3157_v29, %v3161_v30  ;;  %v7312_v42 = vcombine.low %v3158_v31, %v3162_v32  ;;  %v7328_v30 = vcombine.low %v3174_v16, %v3178_v17 }
 0x48f   :  { %6166 = vmatpush1.bf16.msra.mxu0 %v7246_v36  ;;  %v7313_v36 = vcombine.high %v3158_v31, %v3162_v32 }
 0x490   :  { %6330 = vmatpush1.bf16.msra.mxu1 %v7248_v37  ;;  %6167 = vmatprep.subr.bf16.mxu0 %v7255_v38  ;;  %v8661_v37 = vld [vmem:[#allocation22 + $0x400] sm:$0xff] }
 0x491   :  { %6331 = vmatprep.subr.bf16.mxu1 %v7257_v39  ;;  %v8663_v38 = vld [vmem:[#allocation22 + $0x420] sm:$0xff]  ;;  %v8665_v39 = vld [vmem:[#allocation22 + $0x408] sm:$0xff] }
 0x492   :  { %v7319_v43 = vcombine.high %v8661_v37, %v8663_v38 }
 0x493   :  { %6168 = vmatpush1.bf16.msra.mxu0 %v7254_v53  ;;  %v7321_v53 = vcombine.high %v8665_v39, %v8667_v40 }
 0x494   :  { %6332 = vmatpush1.bf16.msra.mxu1 %v7256_v44  ;;  %6169 = vmatprep.subr.bf16.mxu0 %v7263_v45  ;;  %v8673_v44 = vld [vmem:[#allocation19] sm:$0xff]  ;;  %v8675_v45 = vld [vmem:[#allocation20] sm:$0xff] }
 0x495   :  { %6333 = vmatprep.subr.bf16.mxu1 %v7265_v48  ;;  %v2910_v48 = vrot.slane %v8673_v44, %v8597_v47  ;;  %v2914_v50 = vrot.slane %v8673_v44, %v8600_v49  ;;  %v2922_v52 = vrot.slane %v8673_v44, %v8622_v13  ;;  %v2960_v54 = vrot.slane %v8675_v45, %v8597_v47 }
 0x497   :  { %6170 = vmatpush1.bf16.msra.mxu0 %v7262_v55 }
 0x498   :  { %6334 = vmatpush1.bf16.msra.mxu1 %v7264_v56  ;;  %6171 = vmatprep.subr.bf16.mxu0 %v7271_v57  ;;  %v2964_v56 = vrot.slane %v8675_v45, %v8600_v49  ;;  %v2972_v57 = vrot.slane %v8675_v45, %v8622_v13 }
 0x499   :  { %6335 = vmatprep.subr.bf16.mxu1 %v7273_v58 }
 0x49b   :  { %6172 = vmatpush1.bf16.msra.mxu0 %v7270_v63 }
 0x49c   :  { %6336 = vmatpush1.bf16.msra.mxu1 %v7272_v0  ;;  %6173 = vmatprep.subr.bf16.mxu0 %v7279_v1 }
 0x49d   :  { %6337 = vmatprep.subr.bf16.mxu1 %v7281_v2 }
 0x49f   :  { %6174 = vmatpush1.bf16.msra.mxu0 %v7278_v7 }
 0x4a0   :  { %6338 = vmatpush1.bf16.msra.mxu1 %v7280_v8  ;;  %6175 = vmatprep.subr.bf16.mxu0 %v7287_v9 }
 0x4a1   :  { %6339 = vmatprep.subr.bf16.mxu1 %v7289_v12  ;;  %v3173_v12 = vld [vmem:[#allocation22 + $0x440] sm:$0xff] }
 0x4a2   :  { %v7327_v23 = vcombine.high %v3173_v12, %v3177_v15  ;;  %v7326_v29 = vcombine.low %v3173_v12, %v3177_v15  ;;  %v3226_v12 = vld [vmem:[#allocation22 + $0x5e8] sm:$0xff] }
 0x4a3   :  { %6176 = vmatpush1.bf16.msra.mxu0 %v7286_v34 }
 0x4a4   :  { %6340 = vmatpush1.bf16.msra.mxu1 %v7288_v18  ;;  %6177 = vmatprep.subr.bf16.mxu0 %v7295_v19  ;;  %v7318_v19 = vcombine.low %v8661_v37, %v8663_v38 }
 0x4a5   :  { %6341 = vmatprep.subr.bf16.mxu1 %v7297_v20  ;;  %v7320_v20 = vcombine.low %v8665_v39, %v8667_v40 }
 0x4a7   :  { %6178 = vmatpush1.bf16.msra.mxu0 %v7294_v25  ;;  %v3185_v25 = vld [vmem:[#allocation22 + $0x4a0] sm:$0xff] }
 0x4a8   :  { %6342 = vmatpush1.bf16.msra.mxu1 %v7296_v26  ;;  %6179 = vmatprep.subr.bf16.mxu0 %v7303_v27  ;;  %v3182_v26 = vld [vmem:[#allocation22 + $0x488] sm:$0xff]  ;;  %v7335_v31 = vcombine.high %v3181_v22, %v3185_v25  ;;  %v7334_v37 = vcombine.low %v3181_v22, %v3185_v25 }
 0x4a9   :  { %6343 = vmatprep.subr.bf16.mxu1 %v7305_v28  ;;  %v3186_v27 = vld [vmem:[#allocation22 + $0x4a8] sm:$0xff] }
 0x4aa   :  { %v7337_v32 = vcombine.high %v3182_v26, %v3186_v27  ;;  %v7336_v38 = vcombine.low %v3182_v26, %v3186_v27  ;;  %v3234_v22 = vld [vmem:[#allocation22 + $0x628] sm:$0xff]  ;;  %v3237_v27 = vld [vmem:[#allocation22 + $0x640] sm:$0xff] }
 0x4ab   :  { %6180 = vmatpush1.bf16.msra.mxu0 %v7302_v51  ;;  %v3189_v51 = vld [vmem:[#allocation22 + $0x4c0] sm:$0xff] }
 0x4ac   :  { %6344 = vmatpush1.bf16.msra.mxu1 %v7304_v33  ;;  %6181 = vmatprep.subr.bf16.mxu0 %v7311_v35  ;;  %v3193_v33 = vld [vmem:[#allocation22 + $0x4e0] sm:$0xff]  ;;  %v3190_v35 = vld [vmem:[#allocation22 + $0x4c8] sm:$0xff] }
 0x4ad   :  { %6345 = vmatprep.subr.bf16.mxu1 %v7313_v36  ;;  %v3194_v36 = vld [vmem:[#allocation22 + $0x4e8] sm:$0xff]  ;;  %v7343_v39 = vcombine.high %v3189_v51, %v3193_v33 }
 0x4ae   :  { %v7345_v40 = vcombine.high %v3190_v35, %v3194_v36 }
 0x4af   :  { %6182 = vmatpush1.bf16.msra.mxu0 %v7310_v41  ;;  %v3197_v41 = vld [vmem:[#allocation22 + $0x500] sm:$0xff] }
 0x4b0   :  { %6346 = vmatpush1.bf16.msra.mxu1 %v7312_v42  ;;  %6192 = vmatprep.subr.bf16.mxu0 %v7319_v43  ;;  %v3201_v42 = vld [vmem:[#allocation22 + $0x520] sm:$0xff]  ;;  %v3198_v43 = vld [vmem:[#allocation22 + $0x508] sm:$0xff] }
 0x4b1   :  { %6356 = vmatprep.subr.bf16.mxu1 %v7321_v53  ;;  %v3202_v53 = vld [vmem:[#allocation22 + $0x528] sm:$0xff] }
 0x4c5   :  { %v2652_v60 = vpop.f32.mrb[8].mxu0  ;;  %v8685_v55 = vpop.f32.mrb[8].mxu1 }
 0x4c6   :  { %v2947_v58 = vmul.f32 %v2910_v48, %v2652_v60  ;;  %v2654_v59 = vpop.f32.mrb[9].mxu0  ;;  %v2736_v61 = vpop.f32.mrb[9].mxu1  ;;  %v7342_v48 = vcombine.low %v3189_v51, %v3193_v33  ;;  %v3205_v60 = vld [vmem:[#allocation22 + $0x540] sm:$0xff] }
 0x4c7   :  { %v2948_v10 = vmul.f32 %v2914_v50, %v2654_v59  ;;  %v2950_v62 = vmul.f32 %v2922_v52, %v2736_v61  ;;  %v2656_v63 = vpop.f32.mrb[10].mxu0  ;;  %v2738_v0 = vpop.f32.mrb[10].mxu1  ;;  %v7344_v50 = vcombine.low %v3190_v35, %v3194_v36  ;;  %v7351_v52 = vcombine.high %v3197_v41, %v3201_v42  ;;  %v3245_v36 = vld [vmem:[#allocation22 + $0x680] sm:$0xff] }
 0x4c8   :  { %v2997_v1 = vadd.f32 %v2960_v54, %v2947_v58  ;;  %v2657_v2 = vpop.f32.mrb[11].mxu0  ;;  %v2739_v3 = vpop.f32.mrb[11].mxu1  ;;  %v7353_v54 = vcombine.high %v3198_v43, %v3202_v53  ;;  %v3210_v58 = vld [vmem:[#allocation22 + $0x568] sm:$0xff]  ;;  %v7350_v59 = vcombine.low %v3197_v41, %v3201_v42  ;;  %v7352_v61 = vcombine.low %v3198_v43, %v3202_v53  ;;  %v3213_v63 = vld [vmem:[#allocation22 + $0x580] sm:$0xff] }
 0x4c9   :  { %v2998_v4 = vadd.f32 %v2964_v56, %v2948_v10  ;;  %v3000_v5 = vadd.f32 %v2972_v57, %v2950_v62  ;;  %v3209_v56 = vld [vmem:[#allocation22 + $0x560] sm:$0xff]  ;;  %v3206_v57 = vld [vmem:[#allocation22 + $0x548] sm:$0xff] }
 0x4ca   :  { %vm3005_vm10 = vcmp.gt.f32.partialorder %v2997_v1, 0.0  ;;  %v3013_v6 = vmul.f32 0.2, %v2997_v1  ;;  %v7359_v10 = vcombine.high %v3205_v60, %v3209_v56  ;;  %v7361_v62 = vcombine.high %v3206_v57, %v3210_v58  ;;  %v3217_v0 = vld [vmem:[#allocation22 + $0x5a0] sm:$0xff]  ;;  %v3218_v2 = vld [vmem:[#allocation22 + $0x5a8] sm:$0xff] }
 0x4cb   :  { %vm3006_vm11 = vcmp.gt.f32.partialorder %v2998_v4, 0.0  ;;  %v3014_v7 = vmul.f32 0.2, %v2998_v4  ;;  %vm3008_vm12 = vcmp.gt.f32.partialorder %v3000_v5, 0.0  ;;  %v3016_v8 = vmul.f32 0.2, %v3000_v5 }
 0x4cc   :  { %v3021_v9 = vsel %vm3005_vm10, %v2997_v1, %v3013_v6  ;;  %v3214_v1 = vld [vmem:[#allocation22 + $0x588] sm:$0xff]  ;;  %v7358_v3 = vcombine.low %v3205_v60, %v3209_v56  ;;  %v3253_v53 = vld [vmem:[#allocation22 + $0x6c0] sm:$0xff] }
 0x4cd   :  { %v3022_v14 = vsel %vm3006_vm11, %v2998_v4, %v3014_v7  ;;  %v3024_v18 = vsel %vm3008_vm12, %v3000_v5, %v3016_v8  ;;  %v8697_v21 = vpack.c.bf16 %v3021_v9, %v3021_v9  ;;  %v7360_v4 = vcombine.low %v3206_v57, %v3210_v58  ;;  %v3221_v7 = vld [vmem:[#allocation22 + $0x5c0] sm:$0xff]  ;;  %v3222_v9 = vld [vmem:[#allocation22 + $0x5c8] sm:$0xff] }
 0x4ce   :  { %v8691_v34 = vpack.c.bf16 %v3022_v14, %v3022_v14  ;;  %v8701_v28 = vpack.c.bf16 %v3024_v18, %v3024_v18  ;;  %v7367_v5 = vcombine.high %v3213_v63, %v3217_v0  ;;  %v7369_v6 = vcombine.high %v3214_v1, %v3218_v2  ;;  %v3225_v8 = vld [vmem:[#allocation22 + $0x5e0] sm:$0xff] }
 0x4cf   :  { %v7366_v14 = vcombine.low %v3213_v63, %v3217_v0  ;;  %v7368_v15 = vcombine.low %v3214_v1, %v3218_v2  ;;  %v7375_v16 = vcombine.high %v3221_v7, %v3225_v8  ;;  %v7377_v17 = vcombine.high %v3222_v9, %v3226_v12  ;;  %v3229_v18 = vld [vmem:[#allocation22 + $0x600] sm:$0xff] }
 0x4d0   :  { %6183 = vmatprep.mubr.bf16.mxu0 %v8691_v34  ;;  %6347 = vmatprep.mubr.bf16.mxu1 %v8691_v34  ;;  %v3261_v58 = vld [vmem:[#allocation22 + $0x700] sm:$0xff] }
 0x4d1   :  { %6184 = vmatmul.mubr.bf16.vlgmr.msra.gmra.mrb[16].mxu0 %v8697_v21  ;;  %6348 = vmatmul.mubr.bf16.vlgmr.msra.gmra.mrb[16].mxu1 %v8697_v21  ;;  %v3269_v2 = vld [vmem:[#allocation22 + $0x740] sm:$0xff] }
 0x4d2   :  { %6193 = vmatpush1.bf16.msra.mxu0 %v7318_v19  ;;  %6357 = vmatpush1.bf16.msra.mxu1 %v7320_v20  ;;  %v3233_v19 = vld [vmem:[#allocation22 + $0x620] sm:$0xff]  ;;  %v3230_v20 = vld [vmem:[#allocation22 + $0x608] sm:$0xff] }
 0x4d3   :  { %6224 = vmatprep.mubr.bf16.mxu0 %v8701_v28  ;;  %6388 = vmatprep.mubr.bf16.mxu1 %v8701_v28  ;;  %v7383_v25 = vcombine.high %v3229_v18, %v3233_v19  ;;  %v7385_v26 = vcombine.high %v3230_v20, %v3234_v22  ;;  %v7384_v51 = vcombine.low %v3230_v20, %v3234_v22 }
 0x4d4   :  { %6194 = vmatprep.subr.bf16.mxu0 %v7327_v23  ;;  %6358 = vmatprep.subr.bf16.mxu1 %v7329_v24  ;;  %v7374_v23 = vcombine.low %v3221_v7, %v3225_v8  ;;  %v7376_v24 = vcombine.low %v3222_v9, %v3226_v12 }
 0x4d6   :  { %6195 = vmatpush1.bf16.msra.mxu0 %v7326_v29  ;;  %6359 = vmatpush1.bf16.msra.mxu1 %v7328_v30  ;;  %v3241_v29 = vld [vmem:[#allocation22 + $0x660] sm:$0xff]  ;;  %v3238_v30 = vld [vmem:[#allocation22 + $0x648] sm:$0xff] }
 0x4d7   :  { %6196 = vmatprep.subr.bf16.mxu0 %v7335_v31  ;;  %6360 = vmatprep.subr.bf16.mxu1 %v7337_v32  ;;  %v3242_v31 = vld [vmem:[#allocation22 + $0x668] sm:$0xff]  ;;  %v7382_v32 = vcombine.low %v3229_v18, %v3233_v19  ;;  %v7391_v33 = vcombine.high %v3237_v27, %v3241_v29 }
 0x4d8   :  { %v7393_v35 = vcombine.high %v3238_v30, %v3242_v31  ;;  %v7392_v41 = vcombine.low %v3238_v30, %v3242_v31  ;;  %v3278_v18 = vld [vmem:[#allocation22 + $0x788] sm:$0xff] }
 0x4d9   :  { %v3282_v19 = vld [vmem:[#allocation22 + $0x7a8] sm:$0xff] }
 0x4da   :  { %6197 = vmatpush1.bf16.msra.mxu0 %v7334_v37  ;;  %6361 = vmatpush1.bf16.msra.mxu1 %v7336_v38  ;;  %v3249_v37 = vld [vmem:[#allocation22 + $0x6a0] sm:$0xff]  ;;  %v3246_v38 = vld [vmem:[#allocation22 + $0x688] sm:$0xff]  ;;  %v7432_v31 = vcombine.low %v3278_v18, %v3282_v19 }
 0x4db   :  { %6198 = vmatprep.subr.bf16.mxu0 %v7343_v39  ;;  %6362 = vmatprep.subr.bf16.mxu1 %v7345_v40  ;;  %v3250_v39 = vld [vmem:[#allocation22 + $0x6a8] sm:$0xff]  ;;  %v7390_v40 = vcombine.low %v3237_v27, %v3241_v29  ;;  %v7399_v42 = vcombine.high %v3245_v36, %v3249_v37  ;;  %v3289_v27 = vld [vmem:[#allocation22 + $0x7e0] sm:$0xff] }
 0x4dc   :  { %v7401_v43 = vcombine.high %v3246_v38, %v3250_v39  ;;  %v7400_v60 = vcombine.low %v3246_v38, %v3250_v39  ;;  %v3286_v29 = vld [vmem:[#allocation22 + $0x7c8] sm:$0xff] }
 0x4dd   :  { %v3290_v30 = vld [vmem:[#allocation22 + $0x7e8] sm:$0xff] }
 0x4de   :  { %6199 = vmatpush1.bf16.msra.mxu0 %v7342_v48  ;;  %6363 = vmatpush1.bf16.msra.mxu1 %v7344_v50  ;;  %v3257_v48 = vld [vmem:[#allocation22 + $0x6e0] sm:$0xff]  ;;  %v3254_v50 = vld [vmem:[#allocation22 + $0x6c8] sm:$0xff] }
 0x4df   :  { %6200 = vmatprep.subr.bf16.mxu0 %v7351_v52  ;;  %6364 = vmatprep.subr.bf16.mxu1 %v7353_v54  ;;  %v3258_v52 = vld [vmem:[#allocation22 + $0x6e8] sm:$0xff]  ;;  %v7398_v54 = vcombine.low %v3245_v36, %v3249_v37  ;;  %v7407_v56 = vcombine.high %v3253_v53, %v3257_v48  ;;  %v3297_v36 = vld [vmem:[#allocation22 + $0x820] sm:$0xff] }
 0x4e0   :  { %v7409_v57 = vcombine.high %v3254_v50, %v3258_v52  ;;  %v7408_v63 = vcombine.low %v3254_v50, %v3258_v52  ;;  %v3294_v37 = vld [vmem:[#allocation22 + $0x808] sm:$0xff] }
 0x4e1   :  { %v3298_v38 = vld [vmem:[#allocation22 + $0x828] sm:$0xff] }
 0x4e2   :  { %6201 = vmatpush1.bf16.msra.mxu0 %v7350_v59  ;;  %6365 = vmatpush1.bf16.msra.mxu1 %v7352_v61  ;;  %v3265_v59 = vld [vmem:[#allocation22 + $0x720] sm:$0xff]  ;;  %v3262_v61 = vld [vmem:[#allocation22 + $0x708] sm:$0xff] }
 0x4e3   :  { %6202 = vmatprep.subr.bf16.mxu0 %v7359_v10  ;;  %6366 = vmatprep.subr.bf16.mxu1 %v7361_v62  ;;  %v3266_v10 = vld [vmem:[#allocation22 + $0x728] sm:$0xff]  ;;  %v7406_v62 = vcombine.low %v3253_v53, %v3257_v48  ;;  %v7415_v0 = vcombine.high %v3261_v58, %v3265_v59  ;;  %v7414_v7 = vcombine.low %v3261_v58, %v3265_v59  ;;  %v3305_v48 = vld [vmem:[#allocation22 + $0x860] sm:$0xff] }
 0x4e4   :  { %v7417_v1 = vcombine.high %v3262_v61, %v3266_v10  ;;  %v7416_v8 = vcombine.low %v3262_v61, %v3266_v10  ;;  %v3302_v50 = vld [vmem:[#allocation22 + $0x848] sm:$0xff]  ;;  %v3309_v59 = vld [vmem:[#allocation22 + $0x880] sm:$0xff] }
 0x4e5   :  { %v3306_v52 = vld [vmem:[#allocation22 + $0x868] sm:$0xff]  ;;  %v3313_v61 = vld [vmem:[#allocation22 + $0x8a0] sm:$0xff] }
 0x4e6   :  { %6203 = vmatpush1.bf16.msra.mxu0 %v7358_v3  ;;  %6367 = vmatpush1.bf16.msra.mxu1 %v7360_v4  ;;  %v2918_v3 = vrot.slane %v8673_v44, %v8619_v11  ;;  %v3273_v4 = vld [vmem:[#allocation22 + $0x760] sm:$0xff]  ;;  %v7457_v58 = vcombine.high %v3302_v50, %v3306_v52  ;;  %v3310_v10 = vld [vmem:[#allocation22 + $0x888] sm:$0xff] }
 0x4e7   :  { %6204 = vmatprep.subr.bf16.mxu0 %v7367_v5  ;;  %6368 = vmatprep.subr.bf16.mxu1 %v7369_v6  ;;  %v3270_v5 = vld [vmem:[#allocation22 + $0x748] sm:$0xff]  ;;  %v7423_v9 = vcombine.high %v3269_v2, %v3273_v4  ;;  %v7422_v20 = vcombine.low %v3269_v2, %v3273_v4  ;;  %v3321_v4 = vld [vmem:[#allocation22 + $0x8e0] sm:$0xff] }
 0x4e8   :  { %v3274_v6 = vld [vmem:[#allocation22 + $0x768] sm:$0xff] }
 0x4e9   :  { %v7425_v12 = vcombine.high %v3270_v5, %v3274_v6  ;;  %v7424_v22 = vcombine.low %v3270_v5, %v3274_v6  ;;  %v3318_v5 = vld [vmem:[#allocation22 + $0x8c8] sm:$0xff] }
 0x4ea   :  { %6205 = vmatpush1.bf16.msra.mxu0 %v7366_v14  ;;  %6369 = vmatpush1.bf16.msra.mxu1 %v7368_v15  ;;  %v3277_v14 = vld [vmem:[#allocation22 + $0x780] sm:$0xff]  ;;  %v2949_v15 = vmul.f32 %v2918_v3, %v8685_v55  ;;  %v3322_v6 = vld [vmem:[#allocation22 + $0x8e8] sm:$0xff] }
 0x4eb   :  { %6206 = vmatprep.subr.bf16.mxu0 %v7375_v16  ;;  %6370 = vmatprep.subr.bf16.mxu1 %v7377_v17  ;;  %v2968_v16 = vrot.slane %v8675_v45, %v8619_v11  ;;  %v3281_v17 = vld [vmem:[#allocation22 + $0x7a0] sm:$0xff] }
 0x4ec   :  { %v7430_v55 = vcombine.low %v3277_v14, %v3281_v17  ;;  %v3317_v3 = vld [vmem:[#allocation22 + $0x8c0] sm:$0xff] }
 0x4ee   :  { %6207 = vmatpush1.bf16.msra.mxu0 %v7374_v23  ;;  %6371 = vmatpush1.bf16.msra.mxu1 %v7376_v24  ;;  %v7431_v23 = vcombine.high %v3277_v14, %v3281_v17  ;;  %v7433_v24 = vcombine.high %v3278_v18, %v3282_v19  ;;  %v3325_v14 = vld [vmem:[#allocation22 + $0x900] sm:$0xff]  ;;  %v3330_v17 = vld [vmem:[#allocation22 + $0x928] sm:$0xff]  ;;  %v7470_v18 = vcombine.low %v3317_v3, %v3321_v4 }
 0x4ef   :  { %6208 = vmatprep.subr.bf16.mxu0 %v7383_v25  ;;  %6372 = vmatprep.subr.bf16.mxu1 %v7385_v26  ;;  %v3285_v25 = vld [vmem:[#allocation22 + $0x7c0] sm:$0xff]  ;;  %v2999_v26 = vadd.f32 %v2968_v16, %v2949_v15  ;;  %v3326_v16 = vld [vmem:[#allocation22 + $0x908] sm:$0xff]  ;;  %v7472_v19 = vcombine.low %v3318_v5, %v3322_v6 }
 0x4f0   :  { %v7438_v39 = vcombine.low %v3285_v25, %v3289_v27  ;;  %v3329_v15 = vld [vmem:[#allocation22 + $0x920] sm:$0xff] }
 0x4f1   :  { %vm3007_vm13 = vcmp.gt.f32.partialorder %v2999_v26, 0.0 }
 0x4f2   :  { %6209 = vmatpush1.bf16.msra.mxu0 %v7382_v32  ;;  %6373 = vmatpush1.bf16.msra.mxu1 %v7384_v51  ;;  %v7439_v32 = vcombine.high %v3285_v25, %v3289_v27  ;;  %v7441_v51 = vcombine.high %v3286_v29, %v3290_v30  ;;  %v3334_v25 = vld [vmem:[#allocation22 + $0x948] sm:$0xff]  ;;  %v7478_v27 = vcombine.low %v3325_v14, %v3329_v15 }
 0x4f3   :  { %6210 = vmatprep.subr.bf16.mxu0 %v7391_v33  ;;  %6374 = vmatprep.subr.bf16.mxu1 %v7393_v35  ;;  %v3293_v33 = vld [vmem:[#allocation22 + $0x800] sm:$0xff]  ;;  %v3015_v35 = vmul.f32 0.2, %v2999_v26 }
 0x4f5   :  { %v3023_v53 = vsel %vm3007_vm13, %v2999_v26, %v3015_v35  ;;  %v3338_v26 = vld [vmem:[#allocation22 + $0x968] sm:$0xff] }
 0x4f6   :  { %6211 = vmatpush1.bf16.msra.mxu0 %v7390_v40  ;;  %6375 = vmatpush1.bf16.msra.mxu1 %v7392_v41  ;;  %v7440_v40 = vcombine.low %v3286_v29, %v3290_v30  ;;  %v7447_v41 = vcombine.high %v3293_v33, %v3297_v36  ;;  %v7480_v29 = vcombine.low %v3326_v16, %v3330_v17 }
 0x4f7   :  { %6212 = vmatprep.subr.bf16.mxu0 %v7399_v42  ;;  %6376 = vmatprep.subr.bf16.mxu1 %v7401_v43  ;;  %v7449_v42 = vcombine.high %v3294_v37, %v3298_v38  ;;  %v3301_v43 = vld [vmem:[#allocation22 + $0x840] sm:$0xff] }
 0x4fa   :  { %6213 = vmatpush1.bf16.msra.mxu0 %v7398_v54  ;;  %6377 = vmatpush1.bf16.msra.mxu1 %v7400_v60  ;;  %v7446_v54 = vcombine.low %v3293_v33, %v3297_v36  ;;  %v7448_v60 = vcombine.low %v3294_v37, %v3298_v38  ;;  %v3346_v33 = vld [vmem:[#allocation22 + $0x9a8] sm:$0xff]  ;;  %v7488_v36 = vcombine.low %v3334_v25, %v3338_v26 }
 0x4fb   :  { %6214 = vmatprep.subr.bf16.mxu0 %v7407_v56  ;;  %6378 = vmatprep.subr.bf16.mxu1 %v7409_v57  ;;  %v8712_v56 = vpack.c.bf16 %v3023_v53, %v3023_v53  ;;  %v7455_v57 = vcombine.high %v3301_v43, %v3305_v48 }
 0x4fe   :  { %6215 = vmatpush1.bf16.msra.mxu0 %v7406_v62  ;;  %6379 = vmatpush1.bf16.msra.mxu1 %v7408_v63  ;;  %v3314_v62 = vld [vmem:[#allocation22 + $0x8a8] sm:$0xff]  ;;  %v7454_v63 = vcombine.low %v3301_v43, %v3305_v48 }
 0x4ff   :  { %6216 = vmatprep.subr.bf16.mxu0 %v7415_v0  ;;  %6380 = vmatprep.subr.bf16.mxu1 %v7417_v1  ;;  %v7456_v0 = vcombine.low %v3302_v50, %v3306_v52  ;;  %v7463_v1 = vcombine.high %v3309_v59, %v3313_v61  ;;  %v7465_v2 = vcombine.high %v3310_v10, %v3314_v62  ;;  %v3357_v52 = vld [vmem:[#allocation22 + $0xa00] sm:$0xff] }
 0x502   :  { %6217 = vmatpush1.bf16.msra.mxu0 %v7414_v7  ;;  %6381 = vmatpush1.bf16.msra.mxu1 %v7416_v8  ;;  %v7462_v7 = vcombine.low %v3309_v59, %v3313_v61  ;;  %v7464_v8 = vcombine.low %v3310_v10, %v3314_v62  ;;  %v3365_v62 = vld [vmem:[#allocation22 + $0xa40] sm:$0xff] }
 0x503   :  { %6218 = vmatprep.subr.bf16.mxu0 %v7423_v9  ;;  %6382 = vmatprep.subr.bf16.mxu1 %v7425_v12  ;;  %v7471_v9 = vcombine.high %v3317_v3, %v3321_v4  ;;  %v7473_v12 = vcombine.high %v3318_v5, %v3322_v6  ;;  %v3373_v6 = vld [vmem:[#allocation22 + $0xa80] sm:$0xff] }
 0x506   :  { %6219 = vmatpush1.bf16.msra.mxu0 %v7422_v20  ;;  %6383 = vmatpush1.bf16.msra.mxu1 %v7424_v22  ;;  %v7479_v20 = vcombine.high %v3325_v14, %v3329_v15  ;;  %v7481_v22 = vcombine.high %v3326_v16, %v3330_v17  ;;  %v3381_v17 = vld [vmem:[#allocation22 + $0xac0] sm:$0xff] }
 0x507   :  { %6220 = vmatprep.subr.bf16.mxu0 %v7431_v23  ;;  %6384 = vmatprep.subr.bf16.mxu1 %v7433_v24  ;;  %v3333_v23 = vld [vmem:[#allocation22 + $0x940] sm:$0xff] }
 0x508   :  { %v3337_v24 = vld [vmem:[#allocation22 + $0x960] sm:$0xff] }
 0x509   :  { %v7487_v30 = vcombine.high %v3333_v23, %v3337_v24  ;;  %v7486_v35 = vcombine.low %v3333_v23, %v3337_v24 }
 0x50a   :  { %6221 = vmatpush1.bf16.msra.mxu0 %v7430_v55  ;;  %6385 = vmatpush1.bf16.msra.mxu1 %v7432_v31  ;;  %v7489_v55 = vcombine.high %v3334_v25, %v3338_v26  ;;  %v3341_v31 = vld [vmem:[#allocation22 + $0x980] sm:$0xff] }
 0x50b   :  { %6222 = vmatprep.subr.bf16.mxu0 %v7439_v32  ;;  %6386 = vmatprep.subr.bf16.mxu1 %v7441_v51  ;;  %v3345_v32 = vld [vmem:[#allocation22 + $0x9a0] sm:$0xff]  ;;  %v3342_v51 = vld [vmem:[#allocation22 + $0x988] sm:$0xff] }
 0x50c   :  { %v7495_v37 = vcombine.high %v3341_v31, %v3345_v32  ;;  %v7497_v38 = vcombine.high %v3342_v51, %v3346_v33  ;;  %v7494_v43 = vcombine.low %v3341_v31, %v3345_v32  ;;  %v7496_v53 = vcombine.low %v3342_v51, %v3346_v33  ;;  %v3389_v26 = vld [vmem:[#allocation22 + $0xb00] sm:$0xff] }
 0x50d   :  { %v3397_v33 = vld [vmem:[#allocation22 + $0xb40] sm:$0xff] }
 0x50e   :  { %6223 = vmatpush1.bf16.msra.mxu0 %v7438_v39  ;;  %6387 = vmatpush1.bf16.msra.mxu1 %v7440_v40  ;;  %v3349_v39 = vld [vmem:[#allocation22 + $0x9c0] sm:$0xff] }
 0x50f   :  { %6233 = vmatprep.subr.bf16.mxu0 %v7447_v41  ;;  %6397 = vmatprep.subr.bf16.mxu1 %v7449_v42  ;;  %v3353_v40 = vld [vmem:[#allocation22 + $0x9e0] sm:$0xff]  ;;  %v3350_v41 = vld [vmem:[#allocation22 + $0x9c8] sm:$0xff] }
 0x510   :  { %v3354_v42 = vld [vmem:[#allocation22 + $0x9e8] sm:$0xff]  ;;  %v7503_v48 = vcombine.high %v3349_v39, %v3353_v40 }
 0x511   :  { %6225 = vmatmul.mubr.bf16.vlgmr.msra.gmra.mrb[16].mxu0 %v8712_v56  ;;  %6389 = vmatmul.mubr.bf16.vlgmr.msra.gmra.mrb[16].mxu1 %v8712_v56  ;;  %v7505_v50 = vcombine.high %v3350_v41, %v3354_v42  ;;  %v7504_v59 = vcombine.low %v3350_v41, %v3354_v42 }
 0x512   :  { %6234 = vmatpush1.bf16.msra.mxu0 %v7446_v54  ;;  %6398 = vmatpush1.bf16.msra.mxu1 %v7448_v60  ;;  %v3361_v54 = vld [vmem:[#allocation22 + $0xa20] sm:$0xff]  ;;  %v3358_v60 = vld [vmem:[#allocation22 + $0xa08] sm:$0xff] }
 0x513   :  { %6235 = vmatprep.subr.bf16.mxu0 %v7455_v57  ;;  %6399 = vmatprep.subr.bf16.mxu1 %v7457_v58  ;;  %v3362_v57 = vld [vmem:[#allocation22 + $0xa28] sm:$0xff]  ;;  %v7502_v58 = vcombine.low %v3349_v39, %v3353_v40  ;;  %v7511_v61 = vcombine.high %v3357_v52, %v3361_v54  ;;  %v8717_v40 = vsub.s32 4, %v8594_v46 }
 0x514   :  { %v7513_v10 = vcombine.high %v3358_v60, %v3362_v57  ;;  %v7512_v3 = vcombine.low %v3358_v60, %v3362_v57 }
 0x516   :  { %6236 = vmatpush1.bf16.msra.mxu0 %v7454_v63  ;;  %6400 = vmatpush1.bf16.msra.mxu1 %v7456_v0  ;;  %v3369_v63 = vld [vmem:[#allocation22 + $0xa60] sm:$0xff]  ;;  %v3366_v0 = vld [vmem:[#allocation22 + $0xa48] sm:$0xff] }
 0x517   :  { %6237 = vmatprep.subr.bf16.mxu0 %v7463_v1  ;;  %6401 = vmatprep.subr.bf16.mxu1 %v7465_v2  ;;  %v3370_v1 = vld [vmem:[#allocation22 + $0xa68] sm:$0xff]  ;;  %v7510_v2 = vcombine.low %v3357_v52, %v3361_v54  ;;  %v7519_v4 = vcombine.high %v3365_v62, %v3369_v63 }
 0x518   :  { %v7521_v5 = vcombine.high %v3366_v0, %v3370_v1  ;;  %v7520_v14 = vcombine.low %v3366_v0, %v3370_v1  ;;  %v3406_v52 = vld [vmem:[#allocation22 + $0xb88] sm:$0xff]  ;;  %v3417_v1 = vld [vmem:[#allocation22 + $0xbe0] sm:$0xff] }
 0x519   :  { %v3410_v54 = vld [vmem:[#allocation22 + $0xba8] sm:$0xff] }
 0x51a   :  { %6238 = vmatpush1.bf16.msra.mxu0 %v7462_v7  ;;  %6402 = vmatpush1.bf16.msra.mxu1 %v7464_v8  ;;  %v3377_v7 = vld [vmem:[#allocation22 + $0xaa0] sm:$0xff]  ;;  %v3374_v8 = vld [vmem:[#allocation22 + $0xa88] sm:$0xff] }
 0x51b   :  { %6239 = vmatprep.subr.bf16.mxu0 %v7471_v9  ;;  %6403 = vmatprep.subr.bf16.mxu1 %v7473_v12  ;;  %v3378_v9 = vld [vmem:[#allocation22 + $0xaa8] sm:$0xff]  ;;  %v7518_v12 = vcombine.low %v3365_v62, %v3369_v63  ;;  %v7527_v15 = vcombine.high %v3373_v6, %v3377_v7  ;;  %v3413_v62 = vld [vmem:[#allocation22 + $0xbc0] sm:$0xff]  ;;  %v2976_v63 = vrot.slane %v8675_v45, %v8717_v40 }
 0x51c   :  { %v7529_v16 = vcombine.high %v3374_v8, %v3378_v9  ;;  %v7528_v23 = vcombine.low %v3374_v8, %v3378_v9 }
 0x51e   :  { %6240 = vmatpush1.bf16.msra.mxu0 %v7470_v18  ;;  %6404 = vmatpush1.bf16.msra.mxu1 %v7472_v19  ;;  %v3385_v18 = vld [vmem:[#allocation22 + $0xae0] sm:$0xff]  ;;  %v3382_v19 = vld [vmem:[#allocation22 + $0xac8] sm:$0xff] }
 0x51f   :  { %6241 = vmatprep.subr.bf16.mxu0 %v7479_v20  ;;  %6405 = vmatprep.subr.bf16.mxu1 %v7481_v22  ;;  %v3386_v20 = vld [vmem:[#allocation22 + $0xae8] sm:$0xff]  ;;  %v7526_v22 = vcombine.low %v3373_v6, %v3377_v7  ;;  %v7535_v24 = vcombine.high %v3381_v17, %v3385_v18 }
 0x520   :  { %v7537_v25 = vcombine.high %v3382_v19, %v3386_v20  ;;  %v7536_v31 = vcombine.low %v3382_v19, %v3386_v20  ;;  %v3421_v19 = vld [vmem:[#allocation22 + $0xc00] sm:$0xff] }
 0x522   :  { %6242 = vmatpush1.bf16.msra.mxu0 %v7478_v27  ;;  %6406 = vmatpush1.bf16.msra.mxu1 %v7480_v29  ;;  %v3393_v27 = vld [vmem:[#allocation22 + $0xb20] sm:$0xff]  ;;  %v3390_v29 = vld [vmem:[#allocation22 + $0xb08] sm:$0xff] }
 0x523   :  { %6243 = vmatprep.subr.bf16.mxu0 %v7487_v30  ;;  %6407 = vmatprep.subr.bf16.mxu1 %v7489_v55  ;;  %v3394_v30 = vld [vmem:[#allocation22 + $0xb28] sm:$0xff]  ;;  %v7534_v55 = vcombine.low %v3381_v17, %v3385_v18  ;;  %v7543_v32 = vcombine.high %v3389_v26, %v3393_v27  ;;  %v7567_v17 = vcombine.high %v3413_v62, %v3417_v1 }
 0x524   :  { %v7545_v51 = vcombine.high %v3390_v29, %v3394_v30  ;;  %v7544_v39 = vcombine.low %v3390_v29, %v3394_v30  ;;  %v7566_v30 = vcombine.low %v3413_v62, %v3417_v1  ;;  %v3438_v62 = vld [vmem:[#allocation22 + $0xc88] sm:$0xff] }
 0x526   :  { %6244 = vmatpush1.bf16.msra.mxu0 %v7486_v35  ;;  %6408 = vmatpush1.bf16.msra.mxu1 %v7488_v36  ;;  %v3401_v35 = vld [vmem:[#allocation22 + $0xb60] sm:$0xff]  ;;  %v3398_v36 = vld [vmem:[#allocation22 + $0xb48] sm:$0xff] }
 0x527   :  { %6245 = vmatprep.subr.bf16.mxu0 %v7495_v37  ;;  %6409 = vmatprep.subr.bf16.mxu1 %v7497_v38  ;;  %v3402_v37 = vld [vmem:[#allocation22 + $0xb68] sm:$0xff]  ;;  %v7542_v38 = vcombine.low %v3389_v26, %v3393_v27  ;;  %v7551_v41 = vcombine.high %v3397_v33, %v3401_v35  ;;  %v7550_v60 = vcombine.low %v3397_v33, %v3401_v35 }
 0x528   :  { %v7553_v42 = vcombine.high %v3398_v36, %v3402_v37  ;;  %v7552_v57 = vcombine.low %v3398_v36, %v3402_v37  ;;  %v3426_v26 = vld [vmem:[#allocation22 + $0xc28] sm:$0xff] }
 0x52a   :  { %6246 = vmatpush1.bf16.msra.mxu0 %v7494_v43  ;;  %6410 = vmatpush1.bf16.msra.mxu1 %v7496_v53  ;;  %v8720_v43 = vsub.s32 5, %v8594_v46  ;;  %v3405_v53 = vld [vmem:[#allocation22 + $0xb80] sm:$0xff] }
 0x52b   :  { %6247 = vmatprep.subr.bf16.mxu0 %v7503_v48  ;;  %6411 = vmatprep.subr.bf16.mxu1 %v7505_v50  ;;  %v8723_v48 = vsub.s32 7, %v8594_v46  ;;  %v3409_v50 = vld [vmem:[#allocation22 + $0xba0] sm:$0xff] }
 0x52d   :  { %v2938_v0 = vrot.slane %v8673_v44, %v8723_v48  ;;  %v2988_v6 = vrot.slane %v8675_v45, %v8723_v48 }
 0x52e   :  { %6248 = vmatpush1.bf16.msra.mxu0 %v7502_v58  ;;  %6412 = vmatpush1.bf16.msra.mxu1 %v7504_v59  ;;  %v2926_v58 = vrot.slane %v8673_v44, %v8717_v40  ;;  %v2930_v59 = vrot.slane %v8673_v44, %v8720_v43 }
 0x52f   :  { %6249 = vmatprep.subr.bf16.mxu0 %v7511_v61  ;;  %6413 = vmatprep.subr.bf16.mxu1 %v7513_v10  ;;  %v7559_v61 = vcombine.high %v3405_v53, %v3409_v50  ;;  %v7561_v10 = vcombine.high %v3406_v52, %v3410_v54 }
 0x532   :  { %6250 = vmatpush1.bf16.msra.mxu0 %v7510_v2  ;;  %6414 = vmatpush1.bf16.msra.mxu1 %v7512_v3  ;;  %v3414_v2 = vld [vmem:[#allocation22 + $0xbc8] sm:$0xff] }
 0x533   :  { %6251 = vmatprep.subr.bf16.mxu0 %v7519_v4  ;;  %6415 = vmatprep.subr.bf16.mxu1 %v7521_v5  ;;  %v3418_v3 = vld [vmem:[#allocation22 + $0xbe8] sm:$0xff]  ;;  %v2980_v5 = vrot.slane %v8675_v45, %v8720_v43 }
 0x534   :  { %v7569_v18 = vcombine.high %v3414_v2, %v3418_v3 }
 0x536   :  { %6252 = vmatpush1.bf16.msra.mxu0 %v7518_v12  ;;  %6416 = vmatpush1.bf16.msra.mxu1 %v7520_v14  ;;  %v7558_v12 = vcombine.low %v3405_v53, %v3409_v50  ;;  %v7560_v14 = vcombine.low %v3406_v52, %v3410_v54  ;;  %v3430_v53 = vld [vmem:[#allocation22 + $0xc48] sm:$0xff] }
 0x537   :  { %6253 = vmatprep.subr.bf16.mxu0 %v7527_v15  ;;  %6417 = vmatprep.subr.bf16.mxu1 %v7529_v16  ;;  %v3434_v50 = vld [vmem:[#allocation22 + $0xc68] sm:$0xff] }
 0x53a   :  { %6254 = vmatpush1.bf16.msra.mxu0 %v7526_v22  ;;  %6418 = vmatpush1.bf16.msra.mxu1 %v7528_v23 }
 0x53b   :  { %6255 = vmatprep.subr.bf16.mxu0 %v7535_v24  ;;  %6419 = vmatprep.subr.bf16.mxu1 %v7537_v25  ;;  %v3425_v24 = vld [vmem:[#allocation22 + $0xc20] sm:$0xff]  ;;  %v3422_v25 = vld [vmem:[#allocation22 + $0xc08] sm:$0xff] }
 0x53c   :  { %v7575_v33 = vcombine.high %v3421_v19, %v3425_v24  ;;  %v7577_v35 = vcombine.high %v3422_v25, %v3426_v26 }
 0x53e   :  { %6256 = vmatpush1.bf16.msra.mxu0 %v7534_v55  ;;  %6420 = vmatpush1.bf16.msra.mxu1 %v7536_v31 }
 0x53f   :  { %6257 = vmatprep.subr.bf16.mxu0 %v7543_v32  ;;  %6421 = vmatprep.subr.bf16.mxu1 %v7545_v51  ;;  %v7568_v32 = vcombine.low %v3414_v2, %v3418_v3  ;;  %v7584_v2 = vcombine.low %v3430_v53, %v3434_v50 }
 0x542   :  { %6258 = vmatpush1.bf16.msra.mxu0 %v7542_v38  ;;  %6422 = vmatpush1.bf16.msra.mxu1 %v7544_v39  ;;  %v3429_v38 = vld [vmem:[#allocation22 + $0xc40] sm:$0xff] }
 0x543   :  { %6259 = vmatprep.subr.bf16.mxu0 %v7551_v41  ;;  %6423 = vmatprep.subr.bf16.mxu1 %v7553_v42  ;;  %v7574_v41 = vcombine.low %v3421_v19, %v3425_v24  ;;  %v3433_v42 = vld [vmem:[#allocation22 + $0xc60] sm:$0xff]  ;;  %v3458_v19 = vld [vmem:[#allocation22 + $0xd28] sm:$0xff] }
 0x544   :  { %v7582_v1 = vcombine.low %v3429_v38, %v3433_v42  ;;  %v3461_v24 = vld [vmem:[#allocation22 + $0xd40] sm:$0xff] }
 0x545   :  { %v2816_v4 = vpop.f32.mrb[12].mxu0 }
 0x546   :  { %v2951_v7 = vmul.f32 %v2926_v58, %v2816_v4  ;;  %v8737_v8 = vpop.f32.mrb[12].mxu1  ;;  %6260 = vmatpush1.bf16.msra.mxu0 %v7550_v60  ;;  %6424 = vmatpush1.bf16.msra.mxu1 %v7552_v57  ;;  %v2818_v9 = vpop.f32.mrb[13].mxu0  ;;  %v7576_v60 = vcombine.low %v3422_v25, %v3426_v26  ;;  %v3437_v58 = vld [vmem:[#allocation22 + $0xc80] sm:$0xff]  ;;  %v3462_v26 = vld [vmem:[#allocation22 + $0xd48] sm:$0xff] }
 0x547   :  { %v2952_v15 = vmul.f32 %v2930_v59, %v2818_v9  ;;  %v2900_v44 = vpop.f32.mrb[13].mxu1  ;;  %v2820_v16 = vpop.f32.mrb[14].mxu0  ;;  %6261 = vmatprep.subr.bf16.mxu0 %v7559_v61  ;;  %6425 = vmatprep.subr.bf16.mxu1 %v7561_v10  ;;  %v7583_v59 = vcombine.high %v3429_v38, %v3433_v42  ;;  %v7585_v61 = vcombine.high %v3430_v53, %v3434_v50  ;;  %v3441_v10 = vld [vmem:[#allocation22 + $0xca0] sm:$0xff]  ;;  %v3450_v9 = vld [vmem:[#allocation22 + $0xce8] sm:$0xff] }
 0x548   :  { %v3001_v20 = vadd.f32 %v2976_v63, %v2951_v7  ;;  %v2954_v22 = vmul.f32 %v2938_v0, %v2900_v44  ;;  %v2902_v23 = vpop.f32.mrb[14].mxu1  ;;  %v2821_v45 = vpop.f32.mrb[15].mxu0  ;;  %v3442_v63 = vld [vmem:[#allocation22 + $0xca8] sm:$0xff]  ;;  %v7591_v3 = vcombine.high %v3437_v58, %v3441_v10  ;;  %v3453_v16 = vld [vmem:[#allocation22 + $0xd00] sm:$0xff] }
 0x549   :  { %v3002_v27 = vadd.f32 %v2980_v5, %v2952_v15  ;;  %v2903_v29 = vpop.f32.mrb[15].mxu1  ;;  %v7593_v4 = vcombine.high %v3438_v62, %v3442_v63  ;;  %v3445_v5 = vld [vmem:[#allocation22 + $0xcc0] sm:$0xff]  ;;  %v3446_v7 = vld [vmem:[#allocation22 + $0xcc8] sm:$0xff] }
 0x54a   :  { %vm3009_vm14 = vcmp.gt.f32.partialorder %v3001_v20, 0.0  ;;  %v3017_v55 = vmul.f32 0.2, %v3001_v20  ;;  %v3004_v31 = vadd.f32 %v2988_v6, %v2954_v22  ;;  %6262 = vmatpush1.bf16.msra.mxu0 %v7558_v12  ;;  %6426 = vmatpush1.bf16.msra.mxu1 %v7560_v14  ;;  %v3449_v6 = vld [vmem:[#allocation22 + $0xce0] sm:$0xff]  ;;  %v7590_v12 = vcombine.low %v3437_v58, %v3441_v10  ;;  %v3478_v53 = vld [vmem:[#allocation22 + $0xdc8] sm:$0xff] }
 0x54b   :  { %vm3010_vm15 = vcmp.gt.f32.partialorder %v3002_v27, 0.0  ;;  %v3018_v51 = vmul.f32 0.2, %v3002_v27  ;;  %6263 = vmatprep.subr.bf16.mxu0 %v7567_v17  ;;  %6427 = vmatprep.subr.bf16.mxu1 %v7569_v18  ;;  %v7592_v14 = vcombine.low %v3438_v62, %v3442_v63  ;;  %v7599_v15 = vcombine.high %v3445_v5, %v3449_v6  ;;  %v3457_v17 = vld [vmem:[#allocation22 + $0xd20] sm:$0xff]  ;;  %v3454_v18 = vld [vmem:[#allocation22 + $0xd08] sm:$0xff] }
 0x54c   :  { %v3025_v36 = vsel %vm3009_vm14, %v3001_v20, %v3017_v55  ;;  %vm3012_vm0 = vcmp.gt.f32.partialorder %v3004_v31, 0.0  ;;  %v3020_v37 = vmul.f32 0.2, %v3004_v31  ;;  %v7601_v44 = vcombine.high %v3446_v7, %v3450_v9  ;;  %v3465_v25 = vld [vmem:[#allocation22 + $0xd60] sm:$0xff]  ;;  %v3482_v50 = vld [vmem:[#allocation22 + $0xde8] sm:$0xff] }
 0x54d   :  { %v3026_v39 = vsel %vm3010_vm15, %v3002_v27, %v3018_v51  ;;  %v8741_v57 = vpack.c.bf16 %v3025_v36, %v3025_v36  ;;  %v7598_v20 = vcombine.low %v3445_v5, %v3449_v6  ;;  %v7600_v22 = vcombine.low %v3446_v7, %v3450_v9  ;;  %v3466_v27 = vld [vmem:[#allocation22 + $0xd68] sm:$0xff]  ;;  %v3473_v51 = vld [vmem:[#allocation22 + $0xda0] sm:$0xff] }
 0x54e   :  { %v8739_v52 = vpack.c.bf16 %v3026_v39, %v3026_v39  ;;  %v3028_v54 = vsel %vm3012_vm0, %v3004_v31, %v3020_v37  ;;  %6264 = vmatpush1.bf16.msra.mxu0 %v7566_v30  ;;  %6428 = vmatpush1.bf16.msra.mxu1 %v7568_v32  ;;  %v7607_v23 = vcombine.high %v3453_v16, %v3457_v17  ;;  %v3469_v32 = vld [vmem:[#allocation22 + $0xd80] sm:$0xff]  ;;  %v3486_v62 = vld [vmem:[#allocation22 + $0xe08] sm:$0xff] }
 0x54f   :  { %6274 = vmatprep.subr.bf16.mxu0 %v7575_v33  ;;  %6438 = vmatprep.subr.bf16.mxu1 %v7577_v35  ;;  %v8745_v0 = vpack.c.bf16 %v3028_v54, %v3028_v54  ;;  %v7609_v45 = vcombine.high %v3454_v18, %v3458_v19  ;;  %v7606_v29 = vcombine.low %v3453_v16, %v3457_v17  ;;  %v3470_v33 = vld [vmem:[#allocation22 + $0xd88] sm:$0xff]  ;;  %v3481_v42 = vld [vmem:[#allocation22 + $0xde0] sm:$0xff] }
 0x550   :  { %6265 = vmatprep.mubr.bf16.mxu0 %v8739_v52  ;;  %6429 = vmatprep.mubr.bf16.mxu1 %v8739_v52  ;;  %v7608_v30 = vcombine.low %v3454_v18, %v3458_v19  ;;  %v7615_v55 = vcombine.high %v3461_v24, %v3465_v25  ;;  %v7617_v31 = vcombine.high %v3462_v26, %v3466_v27  ;;  %v3474_v35 = vld [vmem:[#allocation22 + $0xda8] sm:$0xff]  ;;  %v3489_v10 = vld [vmem:[#allocation22 + $0xe20] sm:$0xff] }
 0x551   :  { %6266 = vmatmul.mubr.bf16.vlgmr.msra.gmra.mrb[16].mxu0 %v8741_v57  ;;  %6430 = vmatmul.mubr.bf16.vlgmr.msra.gmra.mrb[16].mxu1 %v8741_v57  ;;  %v7614_v36 = vcombine.low %v3461_v24, %v3465_v25  ;;  %v7616_v37 = vcombine.low %v3462_v26, %v3466_v27  ;;  %v7623_v38 = vcombine.high %v3469_v32, %v3473_v51  ;;  %v3490_v63 = vld [vmem:[#allocation22 + $0xe28] sm:$0xff]  ;;  %v3493_v5 = vld [vmem:[#allocation22 + $0xe40] sm:$0xff] }
 0x552   :  { %6275 = vmatpush1.bf16.msra.mxu0 %v7574_v41  ;;  %6439 = vmatpush1.bf16.msra.mxu1 %v7576_v60  ;;  %v7625_v39 = vcombine.high %v3470_v33, %v3474_v35  ;;  %v3477_v41 = vld [vmem:[#allocation22 + $0xdc0] sm:$0xff]  ;;  %v7622_v54 = vcombine.low %v3469_v32, %v3473_v51  ;;  %v7624_v60 = vcombine.low %v3470_v33, %v3474_v35  ;;  %v3494_v7 = vld [vmem:[#allocation22 + $0xe48] sm:$0xff]  ;;  %v8752_v51 = vsub.s32 6, %v8594_v46 }
 0x553   :  { %6306 = vmatprep.mubr.bf16.mxu0 %v8745_v0  ;;  %6470 = vmatprep.mubr.bf16.mxu1 %v8745_v0  ;;  %v7631_v58 = vcombine.high %v3477_v41, %v3481_v42  ;;  %v3497_v6 = vld [vmem:[#allocation22 + $0xe60] sm:$0xff]  ;;  %v3498_v9 = vld [vmem:[#allocation22 + $0xe68] sm:$0xff] }
 0x554   :  { %6276 = vmatprep.subr.bf16.mxu0 %v7583_v59  ;;  %6440 = vmatprep.subr.bf16.mxu1 %v7585_v61  ;;  %v7633_v59 = vcombine.high %v3478_v53, %v3482_v50  ;;  %v3485_v61 = vld [vmem:[#allocation22 + $0xe00] sm:$0xff]  ;;  %v3502_v18 = vld [vmem:[#allocation22 + $0xe88] sm:$0xff] }
 0x555   :  { %v3501_v16 = vld [vmem:[#allocation22 + $0xe80] sm:$0xff]  ;;  %v3506_v19 = vld [vmem:[#allocation22 + $0xea8] sm:$0xff] }
 0x556   :  { %6277 = vmatpush1.bf16.msra.mxu0 %v7582_v1  ;;  %6441 = vmatpush1.bf16.msra.mxu1 %v7584_v2  ;;  %v7630_v1 = vcombine.low %v3477_v41, %v3481_v42  ;;  %v7632_v2 = vcombine.low %v3478_v53, %v3482_v50  ;;  %v3505_v17 = vld [vmem:[#allocation22 + $0xea0] sm:$0xff]  ;;  %v3510_v26 = vld [vmem:[#allocation22 + $0xec8] sm:$0xff]  ;;  %v7969_v53 = vld [vmem:[#allocation19] sm:$0xff] }
 0x557   :  { %6278 = vmatprep.subr.bf16.mxu0 %v7591_v3  ;;  %6442 = vmatprep.subr.bf16.mxu1 %v7593_v4  ;;  %v7639_v3 = vcombine.high %v3485_v61, %v3489_v10  ;;  %v7641_v4 = vcombine.high %v3486_v62, %v3490_v63  ;;  %v3509_v24 = vld [vmem:[#allocation22 + $0xec0] sm:$0xff]  ;;  %v3514_v27 = vld [vmem:[#allocation22 + $0xee8] sm:$0xff]  ;;  %v2934_v50 = vrot.slane %v7969_v53, %v8752_v51  ;;  %v3059_v53 = vld [vmem:[#allocation22 + $0xb0] sm:$0xff] }
 0x558   :  { %v3513_v25 = vld [vmem:[#allocation22 + $0xee0] sm:$0xff]  ;;  %v3518_v35 = vld [vmem:[#allocation22 + $0xf08] sm:$0xff] }
 0x559   :  { %v3517_v32 = vld [vmem:[#allocation22 + $0xf00] sm:$0xff] }
 0x55a   :  { %6279 = vmatpush1.bf16.msra.mxu0 %v7590_v12  ;;  %6443 = vmatpush1.bf16.msra.mxu1 %v7592_v14  ;;  %v7638_v12 = vcombine.low %v3485_v61, %v3489_v10  ;;  %v7640_v14 = vcombine.low %v3486_v62, %v3490_v63  ;;  %v3521_v33 = vld [vmem:[#allocation22 + $0xf20] sm:$0xff]  ;;  %v2953_v63 = vmul.f32 %v2934_v50, %v8737_v8  ;;  %v3056_v50 = vld [vmem:[#allocation22 + $0x98] sm:$0xff] }
 0x55b   :  { %6280 = vmatprep.subr.bf16.mxu0 %v7599_v15  ;;  %6444 = vmatprep.subr.bf16.mxu1 %v7601_v44  ;;  %v7647_v15 = vcombine.high %v3493_v5, %v3497_v6  ;;  %v7649_v44 = vcombine.high %v3494_v7, %v3498_v9  ;;  %v3525_v42 = vld [vmem:[#allocation22 + $0xf40] sm:$0xff]  ;;  %v7670_v46 = vcombine.low %v3517_v32, %v3521_v33 }
 0x55c   :  { %v3533_v62 = vld [vmem:[#allocation22 + $0xf80] sm:$0xff] }
 0x55e   :  { %6281 = vmatpush1.bf16.msra.mxu0 %v7598_v20  ;;  %6445 = vmatpush1.bf16.msra.mxu1 %v7600_v22  ;;  %v7646_v20 = vcombine.low %v3493_v5, %v3497_v6  ;;  %v7648_v22 = vcombine.low %v3494_v7, %v3498_v9  ;;  %v3538_v5 = vld [vmem:[#allocation22 + $0xfa8] sm:$0xff] }
 0x55f   :  { %6282 = vmatprep.subr.bf16.mxu0 %v7607_v23  ;;  %6446 = vmatprep.subr.bf16.mxu1 %v7609_v45  ;;  %v7655_v23 = vcombine.high %v3501_v16, %v3505_v17  ;;  %v7657_v45 = vcombine.high %v3502_v18, %v3506_v19 }
 0x562   :  { %6283 = vmatpush1.bf16.msra.mxu0 %v7606_v29  ;;  %6447 = vmatpush1.bf16.msra.mxu1 %v7608_v30  ;;  %v7654_v29 = vcombine.low %v3501_v16, %v3505_v17  ;;  %v7656_v30 = vcombine.low %v3502_v18, %v3506_v19  ;;  %v3542_v16 = vld [vmem:[#allocation22 + $0xfc8] sm:$0xff] }
 0x563   :  { %6284 = vmatprep.subr.bf16.mxu0 %v7615_v55  ;;  %6448 = vmatprep.subr.bf16.mxu1 %v7617_v31  ;;  %v7663_v55 = vcombine.high %v3509_v24, %v3513_v25  ;;  %v7665_v31 = vcombine.high %v3510_v26, %v3514_v27  ;;  %v3546_v17 = vld [vmem:[#allocation22 + $0xfe8] sm:$0xff] }
 0x566   :  { %6285 = vmatpush1.bf16.msra.mxu0 %v7614_v36  ;;  %6449 = vmatpush1.bf16.msra.mxu1 %v7616_v37  ;;  %v3522_v36 = vld [vmem:[#allocation22 + $0xf28] sm:$0xff]  ;;  %v7662_v37 = vcombine.low %v3509_v24, %v3513_v25  ;;  %v3040_v24 = vld [vmem:[#allocation22 + $0x18] sm:$0xff] }
 0x567   :  { %6286 = vmatprep.subr.bf16.mxu0 %v7623_v38  ;;  %6450 = vmatprep.subr.bf16.mxu1 %v7625_v39  ;;  %v7664_v38 = vcombine.low %v3510_v26, %v3514_v27  ;;  %v7671_v39 = vcombine.high %v3517_v32, %v3521_v33  ;;  %v7673_v41 = vcombine.high %v3518_v35, %v3522_v36  ;;  %v3044_v25 = vld [vmem:[#allocation22 + $0x38] sm:$0xff]  ;;  %v3051_v32 = vld [vmem:[#allocation22 + $0x70] sm:$0xff] }
 0x568   :  { %v7696_v27 = vcombine.low %v3542_v16, %v3546_v17  ;;  %v3048_v33 = vld [vmem:[#allocation22 + $0x58] sm:$0xff] }
 0x56a   :  { %6287 = vmatpush1.bf16.msra.mxu0 %v7622_v54  ;;  %6451 = vmatpush1.bf16.msra.mxu1 %v7624_v60  ;;  %v3529_v54 = vld [vmem:[#allocation22 + $0xf60] sm:$0xff]  ;;  %v3526_v60 = vld [vmem:[#allocation22 + $0xf48] sm:$0xff] }
 0x56b   :  { %6288 = vmatprep.subr.bf16.mxu0 %v7631_v58  ;;  %6452 = vmatprep.subr.bf16.mxu1 %v7633_v59  ;;  %v3530_v58 = vld [vmem:[#allocation22 + $0xf68] sm:$0xff]  ;;  %v7672_v59 = vcombine.low %v3518_v35, %v3522_v36  ;;  %v7679_v61 = vcombine.high %v3525_v42, %v3529_v54  ;;  %v7678_v6 = vcombine.low %v3525_v42, %v3529_v54  ;;  %v3052_v35 = vld [vmem:[#allocation22 + $0x78] sm:$0xff]  ;;  %v3055_v42 = vld [vmem:[#allocation22 + $0x90] sm:$0xff] }
 0x56c   :  { %v7681_v10 = vcombine.high %v3526_v60, %v3530_v58  ;;  %v7680_v7 = vcombine.low %v3526_v60, %v3530_v58  ;;  %v3060_v54 = vld [vmem:[#allocation22 + $0xb8] sm:$0xff]  ;;  %v7204_v58 = vcombine.low %v3048_v33, %v3052_v35 }
 0x56e   :  { %6289 = vmatpush1.bf16.msra.mxu0 %v7630_v1  ;;  %6453 = vmatpush1.bf16.msra.mxu1 %v7632_v2  ;;  %v7970_v1 = vld [vmem:[#allocation20] sm:$0xff] }
 0x56f   :  { %6290 = vmatprep.subr.bf16.mxu0 %v7639_v3  ;;  %6454 = vmatprep.subr.bf16.mxu1 %v7641_v4  ;;  %v2984_v2 = vrot.slane %v7970_v1, %v8752_v51  ;;  %v3537_v3 = vld [vmem:[#allocation22 + $0xfa0] sm:$0xff]  ;;  %v3534_v4 = vld [vmem:[#allocation22 + $0xf88] sm:$0xff]  ;;  %v7210_v1 = vcombine.low %v3055_v42, %v3059_v53 }
 0x570   :  { %v7687_v9 = vcombine.high %v3533_v62, %v3537_v3  ;;  %v7686_v8 = vcombine.low %v3533_v62, %v3537_v3  ;;  %v7688_v18 = vcombine.low %v3534_v4, %v3538_v5  ;;  %v3064_v62 = vld [vmem:[#allocation22 + $0xd8] sm:$0xff] }
 0x572   :  { %6291 = vmatpush1.bf16.msra.mxu0 %v7638_v12  ;;  %6455 = vmatpush1.bf16.msra.mxu1 %v7640_v14  ;;  %v7689_v12 = vcombine.high %v3534_v4, %v3538_v5  ;;  %v3541_v14 = vld [vmem:[#allocation22 + $0xfc0] sm:$0xff]  ;;  %v3071_v5 = vld [vmem:[#allocation22 + $0x110] sm:$0xff] }
 0x573   :  { %6292 = vmatprep.subr.bf16.mxu0 %v7647_v15  ;;  %6456 = vmatprep.subr.bf16.mxu1 %v7649_v44  ;;  %v3003_v15 = vadd.f32 %v2984_v2, %v2953_v63  ;;  %v3545_v44 = vld [vmem:[#allocation22 + $0xfe0] sm:$0xff]  ;;  %v3068_v63 = vld [vmem:[#allocation22 + $0xf8] sm:$0xff]  ;;  %v7212_v2 = vcombine.low %v3056_v50, %v3060_v54 }
 0x574   :  { %v7695_v19 = vcombine.high %v3541_v14, %v3545_v44  ;;  %v7694_v26 = vcombine.low %v3541_v14, %v3545_v44  ;;  %v7221_v4 = vcombine.high %v3064_v62, %v3068_v63  ;;  %v3079_v44 = vld [vmem:[#allocation22 + $0x150] sm:$0xff] }
 0x575   :  { %vm3011_vm1 = vcmp.gt.f32.partialorder %v3003_v15, 0.0 }
 0x576   :  { %6293 = vmatpush1.bf16.msra.mxu0 %v7646_v20  ;;  %6457 = vmatpush1.bf16.msra.mxu1 %v7648_v22  ;;  %v7697_v20 = vcombine.high %v3542_v16, %v3546_v17  ;;  %v3039_v22 = vld [vmem:[#allocation22 + $0x10] sm:$0xff]  ;;  %v3080_v17 = vld [vmem:[#allocation22 + $0x158] sm:$0xff] }
 0x577   :  { %6294 = vmatprep.subr.bf16.mxu0 %v7655_v23  ;;  %6458 = vmatprep.subr.bf16.mxu1 %v7657_v45  ;;  %v3019_v23 = vmul.f32 0.2, %v3003_v15  ;;  %v3043_v45 = vld [vmem:[#allocation22 + $0x30] sm:$0xff] }
 0x578   :  { %v7194_v36 = vcombine.low %v3039_v22, %v3043_v45  ;;  %v3083_v16 = vld [vmem:[#allocation22 + $0x170] sm:$0xff] }
 0x57a   :  { %6295 = vmatpush1.bf16.msra.mxu0 %v7654_v29  ;;  %6459 = vmatpush1.bf16.msra.mxu1 %v7656_v30  ;;  %v7195_v29 = vcombine.high %v3039_v22, %v3043_v45  ;;  %v7197_v30 = vcombine.high %v3040_v24, %v3044_v25  ;;  %v3091_v45 = vld [vmem:[#allocation22 + $0x1b0] sm:$0xff] }
 0x57b   :  { %6296 = vmatprep.subr.bf16.mxu0 %v7663_v55  ;;  %6460 = vmatprep.subr.bf16.mxu1 %v7665_v31  ;;  %v3027_v55 = vsel %vm3011_vm1, %v3003_v15, %v3019_v23  ;;  %v3047_v31 = vld [vmem:[#allocation22 + $0x50] sm:$0xff] }
 0x57c   :  { %v7202_v60 = vcombine.low %v3047_v31, %v3051_v32  ;;  %v3087_v23 = vld [vmem:[#allocation22 + $0x190] sm:$0xff] }
 0x57e   :  { %6297 = vmatpush1.bf16.msra.mxu0 %v7662_v37  ;;  %6461 = vmatpush1.bf16.msra.mxu1 %v7664_v38  ;;  %v8757_v37 = vpack.c.bf16 %v3027_v55, %v3027_v55  ;;  %v7196_v38 = vcombine.low %v3040_v24, %v3044_v25  ;;  %v3088_v24 = vld [vmem:[#allocation22 + $0x198] sm:$0xff]  ;;  %v3095_v55 = vld [vmem:[#allocation22 + $0x1d0] sm:$0xff] }
 0x57f   :  { %6298 = vmatprep.subr.bf16.mxu0 %v7671_v39  ;;  %6462 = vmatprep.subr.bf16.mxu1 %v7673_v41  ;;  %v7203_v39 = vcombine.high %v3047_v31, %v3051_v32  ;;  %v7205_v41 = vcombine.high %v3048_v33, %v3052_v35  ;;  %v3092_v25 = vld [vmem:[#allocation22 + $0x1b8] sm:$0xff]  ;;  %v3099_v31 = vld [vmem:[#allocation22 + $0x1f0] sm:$0xff]  ;;  %v7242_v35 = vcombine.low %v3087_v23, %v3091_v45 }
 0x580   :  { %v3096_v32 = vld [vmem:[#allocation22 + $0x1d8] sm:$0xff] }
 0x581   :  { %v3100_v33 = vld [vmem:[#allocation22 + $0x1f8] sm:$0xff] }
 0x582   :  { %6299 = vmatpush1.bf16.msra.mxu0 %v7670_v46  ;;  %6463 = vmatpush1.bf16.msra.mxu1 %v7672_v59  ;;  %v7211_v46 = vcombine.high %v3055_v42, %v3059_v53  ;;  %v7213_v59 = vcombine.high %v3056_v50, %v3060_v54  ;;  %v3107_v42 = vld [vmem:[#allocation22 + $0x230] sm:$0xff]  ;;  %v3104_v53 = vld [vmem:[#allocation22 + $0x218] sm:$0xff]  ;;  %v7250_v54 = vcombine.low %v3095_v55, %v3099_v31 }
 0x583   :  { %6300 = vmatprep.subr.bf16.mxu0 %v7679_v61  ;;  %6464 = vmatprep.subr.bf16.mxu1 %v7681_v10  ;;  %v3063_v61 = vld [vmem:[#allocation22 + $0xd0] sm:$0xff]  ;;  %v3108_v50 = vld [vmem:[#allocation22 + $0x238] sm:$0xff] }
 0x584   :  { %v3067_v10 = vld [vmem:[#allocation22 + $0xf0] sm:$0xff] }
 0x585   :  { %v7219_v3 = vcombine.high %v3063_v61, %v3067_v10 }
 0x586   :  { %6301 = vmatpush1.bf16.msra.mxu0 %v7678_v6  ;;  %6465 = vmatpush1.bf16.msra.mxu1 %v7680_v7  ;;  %v3075_v6 = vld [vmem:[#allocation22 + $0x130] sm:$0xff]  ;;  %v3076_v7 = vld [vmem:[#allocation22 + $0x138] sm:$0xff] }
 0x587   :  { %6302 = vmatprep.subr.bf16.mxu0 %v7687_v9  ;;  %6466 = vmatprep.subr.bf16.mxu1 %v7689_v12  ;;  %v7218_v9 = vcombine.low %v3063_v61, %v3067_v10  ;;  %v7220_v12 = vcombine.low %v3064_v62, %v3068_v63  ;;  %v7227_v14 = vcombine.high %v3071_v5, %v3075_v6  ;;  %v3115_v61 = vld [vmem:[#allocation22 + $0x270] sm:$0xff]  ;;  %v3112_v10 = vld [vmem:[#allocation22 + $0x258] sm:$0xff] }
 0x588   :  { %v3116_v62 = vld [vmem:[#allocation22 + $0x278] sm:$0xff] }
 0x58a   :  { %6303 = vmatpush1.bf16.msra.mxu0 %v7686_v8  ;;  %6467 = vmatpush1.bf16.msra.mxu1 %v7688_v18  ;;  %v3084_v8 = vld [vmem:[#allocation22 + $0x178] sm:$0xff]  ;;  %v7226_v18 = vcombine.low %v3071_v5, %v3075_v6  ;;  %v3123_v5 = vld [vmem:[#allocation22 + $0x2b0] sm:$0xff] }
 0x58b   :  { %6304 = vmatprep.subr.bf16.mxu0 %v7695_v19  ;;  %6468 = vmatprep.subr.bf16.mxu1 %v7697_v20  ;;  %v7235_v20 = vcombine.high %v3079_v44, %v3083_v16  ;;  %v7237_v22 = vcombine.high %v3080_v17, %v3084_v8  ;;  %v3120_v6 = vld [vmem:[#allocation22 + $0x298] sm:$0xff] }
 0x58e   :  { %6305 = vmatpush1.bf16.msra.mxu0 %v7694_v26  ;;  %6469 = vmatpush1.bf16.msra.mxu1 %v7696_v27  ;;  %v7234_v26 = vcombine.low %v3079_v44, %v3083_v16  ;;  %v7236_v27 = vcombine.low %v3080_v17, %v3084_v8  ;;  %v3131_v44 = vld [vmem:[#allocation22 + $0x2f0] sm:$0xff]  ;;  %v3128_v16 = vld [vmem:[#allocation22 + $0x2d8] sm:$0xff] }
 0x58f   :  { %6479 = vmatprep.subr.bf16.mxu0 %v7195_v29  ;;  %6643 = vmatprep.subr.bf16.mxu1 %v7197_v30  ;;  %v7243_v29 = vcombine.high %v3087_v23, %v3091_v45  ;;  %v7245_v30 = vcombine.high %v3088_v24, %v3092_v25  ;;  %v3132_v17 = vld [vmem:[#allocation22 + $0x2f8] sm:$0xff]  ;;  %v3139_v23 = vld [vmem:[#allocation22 + $0x330] sm:$0xff] }
 0x590   :  { %v3136_v45 = vld [vmem:[#allocation22 + $0x318] sm:$0xff] }
 0x591   :  { %6307 = vmatmul.mubr.bf16.vlgmr.msra.gmra.mrb[16].mxu0 %v8757_v37  ;;  %6471 = vmatmul.mubr.bf16.vlgmr.msra.gmra.mrb[16].mxu1 %v8757_v37 }
 0x592   :  { %6480 = vmatpush1.bf16.msra.mxu0 %v7194_v36  ;;  %6511 = vmatprep.mubr.bf16.mxu0 %v8691_v34  ;;  %v7244_v36 = vcombine.low %v3088_v24, %v3092_v25  ;;  %v3140_v24 = vld [vmem:[#allocation22 + $0x338] sm:$0xff] }
 0x593   :  { %6644 = vmatpush1.bf16.msra.mxu1 %v7196_v38  ;;  %6675 = vmatprep.mubr.bf16.mxu1 %v8691_v34  ;;  %v3072_v34 = vld [vmem:[#allocation22 + $0x118] sm:$0xff]  ;;  %v7251_v38 = vcombine.high %v3095_v55, %v3099_v31  ;;  %v3147_v55 = vld [vmem:[#allocation22 + $0x370] sm:$0xff] }
 0x594   :  { %6481 = vmatprep.subr.bf16.mxu0 %v7203_v39  ;;  %6645 = vmatprep.subr.bf16.mxu1 %v7205_v41  ;;  %v7229_v15 = vcombine.high %v3072_v34, %v3076_v7  ;;  %v7228_v19 = vcombine.low %v3072_v34, %v3076_v7  ;;  %v7253_v39 = vcombine.high %v3096_v32, %v3100_v33  ;;  %v3103_v41 = vld [vmem:[#allocation22 + $0x210] sm:$0xff]  ;;  %v3124_v34 = vld [vmem:[#allocation22 + $0x2b8] sm:$0xff] }
 0x595   :  { %v7258_v63 = vcombine.low %v3103_v41, %v3107_v42  ;;  %v3144_v31 = vld [vmem:[#allocation22 + $0x358] sm:$0xff] }
 0x596   :  { %6482 = vmatpush1.bf16.msra.mxu0 %v7202_v60  ;;  %v7252_v60 = vcombine.low %v3096_v32, %v3100_v33  ;;  %v3148_v32 = vld [vmem:[#allocation22 + $0x378] sm:$0xff] }
 0x597   :  { %6646 = vmatpush1.bf16.msra.mxu1 %v7204_v58  ;;  %6483 = vmatprep.subr.bf16.mxu0 %v7211_v46  ;;  %v7259_v58 = vcombine.high %v3103_v41, %v3107_v42  ;;  %v7261_v46 = vcombine.high %v3104_v53, %v3108_v50  ;;  %v3155_v41 = vld [vmem:[#allocation22 + $0x3b0] sm:$0xff]  ;;  %v3152_v42 = vld [vmem:[#allocation22 + $0x398] sm:$0xff] }
 0x598   :  { %6647 = vmatprep.subr.bf16.mxu1 %v7213_v59  ;;  %v3111_v59 = vld [vmem:[#allocation22 + $0x250] sm:$0xff] }
 0x599   :  { %v7266_v7 = vcombine.low %v3111_v59, %v3115_v61 }
 0x59a   :  { %6484 = vmatpush1.bf16.msra.mxu0 %v7210_v1  ;;  %v7260_v1 = vcombine.low %v3104_v53, %v3108_v50  ;;  %v3156_v53 = vld [vmem:[#allocation22 + $0x3b8] sm:$0xff] }
 0x59b   :  { %6648 = vmatpush1.bf16.msra.mxu1 %v7212_v2  ;;  %6485 = vmatprep.subr.bf16.mxu0 %v7219_v3  ;;  %v7267_v2 = vcombine.high %v3111_v59, %v3115_v61  ;;  %v7269_v3 = vcombine.high %v3112_v10, %v3116_v62  ;;  %v3163_v59 = vld [vmem:[#allocation22 + $0x3f0] sm:$0xff]  ;;  %v3160_v61 = vld [vmem:[#allocation22 + $0x3d8] sm:$0xff] }
 0x59c   :  { %6649 = vmatprep.subr.bf16.mxu1 %v7221_v4  ;;  %v3119_v4 = vld [vmem:[#allocation22 + $0x290] sm:$0xff] }
 0x59d   :  { %v7274_v8 = vcombine.low %v3119_v4, %v3123_v5 }
 0x59e   :  { %6486 = vmatpush1.bf16.msra.mxu0 %v7218_v9  ;;  %v7268_v9 = vcombine.low %v3112_v10, %v3116_v62  ;;  %v3164_v10 = vld [vmem:[#allocation22 + $0x3f8] sm:$0xff] }
 0x59f   :  { %6650 = vmatpush1.bf16.msra.mxu1 %v7220_v12  ;;  %6487 = vmatprep.subr.bf16.mxu0 %v7227_v14  ;;  %v7275_v12 = vcombine.high %v3119_v4, %v3123_v5  ;;  %v7277_v14 = vcombine.high %v3120_v6, %v3124_v34  ;;  %v3171_v4 = vld [vmem:[#allocation22 + $0x430] sm:$0xff]  ;;  %v3168_v5 = vld [vmem:[#allocation22 + $0x418] sm:$0xff] }
 0x5a0   :  { %6651 = vmatprep.subr.bf16.mxu1 %v7229_v15  ;;  %v3127_v15 = vld [vmem:[#allocation22 + $0x2d0] sm:$0xff] }
 0x5a1   :  { %v7282_v25 = vcombine.low %v3127_v15, %v3131_v44 }
 0x5a2   :  { %6488 = vmatpush1.bf16.msra.mxu0 %v7226_v18  ;;  %v7276_v18 = vcombine.low %v3120_v6, %v3124_v34  ;;  %v3172_v6 = vld [vmem:[#allocation22 + $0x438] sm:$0xff] }
 0x5a3   :  { %6652 = vmatpush1.bf16.msra.mxu1 %v7228_v19  ;;  %6489 = vmatprep.subr.bf16.mxu0 %v7235_v20  ;;  %v7283_v19 = vcombine.high %v3127_v15, %v3131_v44  ;;  %v7285_v20 = vcombine.high %v3128_v16, %v3132_v17  ;;  %v3179_v15 = vld [vmem:[#allocation22 + $0x470] sm:$0xff] }
 0x5a4   :  { %6653 = vmatprep.subr.bf16.mxu1 %v7237_v22  ;;  %v3135_v22 = vld [vmem:[#allocation22 + $0x310] sm:$0xff] }
 0x5a5   :  { %v7290_v33 = vcombine.low %v3135_v22, %v3139_v23 }
 0x5a6   :  { %6490 = vmatpush1.bf16.msra.mxu0 %v7234_v26  ;;  %v7284_v26 = vcombine.low %v3128_v16, %v3132_v17  ;;  %v3176_v16 = vld [vmem:[#allocation22 + $0x458] sm:$0xff] }
 0x5a7   :  { %6654 = vmatpush1.bf16.msra.mxu1 %v7236_v27  ;;  %6491 = vmatprep.subr.bf16.mxu0 %v7243_v29  ;;  %v7291_v27 = vcombine.high %v3135_v22, %v3139_v23  ;;  %v7293_v29 = vcombine.high %v3136_v45, %v3140_v24  ;;  %v3180_v17 = vld [vmem:[#allocation22 + $0x478] sm:$0xff] }
 0x5a8   :  { %6655 = vmatprep.subr.bf16.mxu1 %v7245_v30  ;;  %v3143_v30 = vld [vmem:[#allocation22 + $0x350] sm:$0xff]  ;;  %v7333_v22 = vcombine.high %v3176_v16, %v3180_v17  ;;  %v3184_v23 = vld [vmem:[#allocation22 + $0x498] sm:$0xff] }
 0x5a9   :  { %v7298_v50 = vcombine.low %v3143_v30, %v3147_v55 }
 0x5aa   :  { %6492 = vmatpush1.bf16.msra.mxu0 %v7242_v35  ;;  %v7292_v35 = vcombine.low %v3136_v45, %v3140_v24  ;;  %v3188_v45 = vld [vmem:[#allocation22 + $0x4b8] sm:$0xff] }
 0x5ab   :  { %6656 = vmatpush1.bf16.msra.mxu1 %v7244_v36  ;;  %6493 = vmatprep.subr.bf16.mxu0 %v7251_v38  ;;  %v7299_v36 = vcombine.high %v3143_v30, %v3147_v55  ;;  %v7301_v38 = vcombine.high %v3144_v31, %v3148_v32  ;;  %v3195_v30 = vld [vmem:[#allocation22 + $0x4f0] sm:$0xff]  ;;  %v3192_v55 = vld [vmem:[#allocation22 + $0x4d8] sm:$0xff] }
 0x5ac   :  { %6657 = vmatprep.subr.bf16.mxu1 %v7253_v39  ;;  %v3151_v39 = vld [vmem:[#allocation22 + $0x390] sm:$0xff] }
 0x5ad   :  { %v7306_v62 = vcombine.low %v3151_v39, %v3155_v41 }
 0x5ae   :  { %6494 = vmatpush1.bf16.msra.mxu0 %v7250_v54  ;;  %v7300_v54 = vcombine.low %v3144_v31, %v3148_v32  ;;  %v3196_v31 = vld [vmem:[#allocation22 + $0x4f8] sm:$0xff] }
 0x5af   :  { %6658 = vmatpush1.bf16.msra.mxu1 %v7252_v60  ;;  %6495 = vmatprep.subr.bf16.mxu0 %v7259_v58  ;;  %v7307_v60 = vcombine.high %v3151_v39, %v3155_v41  ;;  %v7309_v58 = vcombine.high %v3152_v42, %v3156_v53  ;;  %v3200_v39 = vld [vmem:[#allocation22 + $0x518] sm:$0xff] }
 0x5b0   :  { %6659 = vmatprep.subr.bf16.mxu1 %v7261_v46  ;;  %v3159_v46 = vld [vmem:[#allocation22 + $0x3d0] sm:$0xff]  ;;  %v3204_v41 = vld [vmem:[#allocation22 + $0x538] sm:$0xff] }
 0x5b1   :  { %v7314_v34 = vcombine.low %v3159_v46, %v3163_v59 }
 0x5b2   :  { %6496 = vmatpush1.bf16.msra.mxu0 %v7258_v63  ;;  %v7308_v63 = vcombine.low %v3152_v42, %v3156_v53  ;;  %v7348_v42 = vcombine.low %v3192_v55, %v3196_v31 }
 0x5b3   :  { %6660 = vmatpush1.bf16.msra.mxu1 %v7260_v1  ;;  %6497 = vmatprep.subr.bf16.mxu0 %v7267_v2  ;;  %v7315_v1 = vcombine.high %v3159_v46, %v3163_v59  ;;  %v7317_v2 = vcombine.high %v3160_v61, %v3164_v10  ;;  %v3212_v46 = vld [vmem:[#allocation22 + $0x578] sm:$0xff] }
 0x5b4   :  { %6661 = vmatprep.subr.bf16.mxu1 %v7269_v3  ;;  %v3167_v3 = vld [vmem:[#allocation22 + $0x410] sm:$0xff] }
 0x5b5   :  { %v7322_v44 = vcombine.low %v3167_v3, %v3171_v4 }
 0x5b6   :  { %6498 = vmatpush1.bf16.msra.mxu0 %v7266_v7  ;;  %v7316_v7 = vcombine.low %v3160_v61, %v3164_v10  ;;  %v7356_v61 = vcombine.low %v3200_v39, %v3204_v41 }
 0x5b7   :  { %6662 = vmatpush1.bf16.msra.mxu1 %v7268_v9  ;;  %6499 = vmatprep.subr.bf16.mxu0 %v7275_v12  ;;  %v7323_v9 = vcombine.high %v3167_v3, %v3171_v4  ;;  %v7325_v12 = vcombine.high %v3168_v5, %v3172_v6  ;;  %v3220_v3 = vld [vmem:[#allocation22 + $0x5b8] sm:$0xff] }
 0x5b8   :  { %6663 = vmatprep.subr.bf16.mxu1 %v7277_v14  ;;  %v3175_v14 = vld [vmem:[#allocation22 + $0x450] sm:$0xff] }
 0x5b9   :  { %v7330_v24 = vcombine.low %v3175_v14, %v3179_v15 }
 0x5ba   :  { %6500 = vmatpush1.bf16.msra.mxu0 %v7274_v8  ;;  %v7324_v8 = vcombine.low %v3168_v5, %v3172_v6 }
 0x5bb   :  { %6664 = vmatpush1.bf16.msra.mxu1 %v7276_v18  ;;  %6501 = vmatprep.subr.bf16.mxu0 %v7283_v19  ;;  %v7331_v18 = vcombine.high %v3175_v14, %v3179_v15  ;;  %v3183_v19 = vld [vmem:[#allocation22 + $0x490] sm:$0xff]  ;;  %v3228_v14 = vld [vmem:[#allocation22 + $0x5f8] sm:$0xff] }
 0x5bc   :  { %6665 = vmatprep.subr.bf16.mxu1 %v7285_v20  ;;  %v3187_v20 = vld [vmem:[#allocation22 + $0x4b0] sm:$0xff] }
 0x5bd   :  { %v7338_v32 = vcombine.low %v3183_v19, %v3187_v20 }
 0x5be   :  { %6502 = vmatpush1.bf16.msra.mxu0 %v7282_v25  ;;  %v7332_v25 = vcombine.low %v3176_v16, %v3180_v17 }
 0x5bf   :  { %6666 = vmatpush1.bf16.msra.mxu1 %v7284_v26  ;;  %6503 = vmatprep.subr.bf16.mxu0 %v7291_v27  ;;  %v7339_v26 = vcombine.high %v3183_v19, %v3187_v20  ;;  %v7341_v27 = vcombine.high %v3184_v23, %v3188_v45  ;;  %v3232_v19 = vld [vmem:[#allocation22 + $0x618] sm:$0xff] }
 0x5c0   :  { %6667 = vmatprep.subr.bf16.mxu1 %v7293_v29  ;;  %v3191_v29 = vld [vmem:[#allocation22 + $0x4d0] sm:$0xff]  ;;  %v3236_v20 = vld [vmem:[#allocation22 + $0x638] sm:$0xff] }
 0x5c2   :  { %6504 = vmatpush1.bf16.msra.mxu0 %v7290_v33  ;;  %v7347_v33 = vcombine.high %v3191_v29, %v3195_v30 }
 0x5c3   :  { %6668 = vmatpush1.bf16.msra.mxu1 %v7292_v35  ;;  %6505 = vmatprep.subr.bf16.mxu0 %v7299_v36  ;;  %v7349_v35 = vcombine.high %v3192_v55, %v3196_v31  ;;  %v3199_v36 = vld [vmem:[#allocation22 + $0x510] sm:$0xff]  ;;  %v7388_v55 = vcombine.low %v3232_v19, %v3236_v20 }
 0x5c4   :  { %6669 = vmatprep.subr.bf16.mxu1 %v7301_v38  ;;  %v3203_v38 = vld [vmem:[#allocation22 + $0x530] sm:$0xff] }
 0x5c5   :  { %v7355_v53 = vcombine.high %v3199_v36, %v3203_v38  ;;  %v7354_v59 = vcombine.low %v3199_v36, %v3203_v38  ;;  %v3252_v36 = vld [vmem:[#allocation22 + $0x6b8] sm:$0xff] }
 0x5c6   :  { %6506 = vmatpush1.bf16.msra.mxu0 %v7298_v50  ;;  %v7357_v50 = vcombine.high %v3200_v39, %v3204_v41 }
 0x5c7   :  { %6670 = vmatpush1.bf16.msra.mxu1 %v7300_v54  ;;  %6507 = vmatprep.subr.bf16.mxu0 %v7307_v60  ;;  %v3207_v54 = vld [vmem:[#allocation22 + $0x550] sm:$0xff] }
 0x5c8   :  { %6671 = vmatprep.subr.bf16.mxu1 %v7309_v58  ;;  %v3211_v60 = vld [vmem:[#allocation22 + $0x570] sm:$0xff]  ;;  %v3208_v58 = vld [vmem:[#allocation22 + $0x558] sm:$0xff] }
 0x5c9   :  { %v7363_v10 = vcombine.high %v3207_v54, %v3211_v60  ;;  %v7362_v4 = vcombine.low %v3207_v54, %v3211_v60  ;;  %v7364_v5 = vcombine.low %v3208_v58, %v3212_v46  ;;  %v3260_v54 = vld [vmem:[#allocation22 + $0x6f8] sm:$0xff] }
 0x5ca   :  { %6508 = vmatpush1.bf16.msra.mxu0 %v7306_v62  ;;  %v7365_v62 = vcombine.high %v3208_v58, %v3212_v46 }
 0x5cb   :  { %6672 = vmatpush1.bf16.msra.mxu1 %v7308_v63  ;;  %6509 = vmatprep.subr.bf16.mxu0 %v7315_v1  ;;  %v3215_v63 = vld [vmem:[#allocation22 + $0x590] sm:$0xff] }
 0x5cc   :  { %6673 = vmatprep.subr.bf16.mxu1 %v7317_v2  ;;  %v3219_v1 = vld [vmem:[#allocation22 + $0x5b0] sm:$0xff]  ;;  %v3216_v2 = vld [vmem:[#allocation22 + $0x598] sm:$0xff] }
 0x5cd   :  { %v7371_v6 = vcombine.high %v3215_v63, %v3219_v1  ;;  %v7370_v15 = vcombine.low %v3215_v63, %v3219_v1  ;;  %v3268_v63 = vld [vmem:[#allocation22 + $0x738] sm:$0xff] }
 0x5ce   :  { %6510 = vmatpush1.bf16.msra.mxu0 %v7314_v34  ;;  %v7373_v34 = vcombine.high %v3216_v2, %v3220_v3 }
 0x5cf   :  { %6674 = vmatpush1.bf16.msra.mxu1 %v7316_v7  ;;  %6520 = vmatprep.subr.bf16.mxu0 %v7323_v9  ;;  %v3223_v7 = vld [vmem:[#allocation22 + $0x5d0] sm:$0xff] }
 0x5d0   :  { %6684 = vmatprep.subr.bf16.mxu1 %v7325_v12  ;;  %v3227_v9 = vld [vmem:[#allocation22 + $0x5f0] sm:$0xff]  ;;  %v3224_v12 = vld [vmem:[#allocation22 + $0x5d8] sm:$0xff] }
 0x5d1   :  { %6512 = vmatmul.mubr.bf16.vlgmr.msra.gmra.mrb[20].mxu0 %v8697_v21  ;;  %v7379_v16 = vcombine.high %v3223_v7, %v3227_v9  ;;  %v7381_v17 = vcombine.high %v3224_v12, %v3228_v14 }
 0x5d2   :  { %6676 = vmatmul.mubr.bf16.vlgmr.msra.gmra.mrb[20].mxu1 %v8697_v21  ;;  %6521 = vmatpush1.bf16.msra.mxu0 %v7322_v44  ;;  %v7340_v21 = vcombine.low %v3184_v23, %v3188_v45  ;;  %v7372_v44 = vcombine.low %v3216_v2, %v3220_v3  ;;  %v7380_v23 = vcombine.low %v3224_v12, %v3228_v14 }
 0x5d3   :  { %6552 = vmatprep.mubr.bf16.mxu0 %v8701_v28  ;;  %6685 = vmatpush1.bf16.msra.mxu1 %v7324_v8  ;;  %v3231_v8 = vld [vmem:[#allocation22 + $0x610] sm:$0xff] }
 0x5d4   :  { %6716 = vmatprep.mubr.bf16.mxu1 %v8701_v28  ;;  %6522 = vmatprep.subr.bf16.mxu0 %v7331_v18  ;;  %v7346_v28 = vcombine.low %v3191_v29, %v3195_v30  ;;  %v3235_v18 = vld [vmem:[#allocation22 + $0x630] sm:$0xff]  ;;  %v3244_v29 = vld [vmem:[#allocation22 + $0x678] sm:$0xff] }
 0x5d5   :  { %6686 = vmatprep.subr.bf16.mxu1 %v7333_v22  ;;  %v7378_v22 = vcombine.low %v3223_v7, %v3227_v9  ;;  %v7387_v45 = vcombine.high %v3231_v8, %v3235_v18  ;;  %v7386_v30 = vcombine.low %v3231_v8, %v3235_v18  ;;  %v3276_v7 = vld [vmem:[#allocation22 + $0x778] sm:$0xff] }
 0x5d6   :  { %6523 = vmatpush1.bf16.msra.mxu0 %v7330_v24  ;;  %v7389_v24 = vcombine.high %v3232_v19, %v3236_v20  ;;  %v3284_v8 = vld [vmem:[#allocation22 + $0x7b8] sm:$0xff] }
 0x5d7   :  { %6687 = vmatpush1.bf16.msra.mxu1 %v7332_v25  ;;  %6524 = vmatprep.subr.bf16.mxu0 %v7339_v26  ;;  %v3239_v25 = vld [vmem:[#allocation22 + $0x650] sm:$0xff] }
 0x5d8   :  { %6688 = vmatprep.subr.bf16.mxu1 %v7341_v27  ;;  %v3243_v26 = vld [vmem:[#allocation22 + $0x670] sm:$0xff]  ;;  %v3240_v27 = vld [vmem:[#allocation22 + $0x658] sm:$0xff] }
 0x5d9   :  { %v7395_v31 = vcombine.high %v3239_v25, %v3243_v26  ;;  %v7394_v38 = vcombine.low %v3239_v25, %v3243_v26  ;;  %v7396_v39 = vcombine.low %v3240_v27, %v3244_v29  ;;  %v3292_v25 = vld [vmem:[#allocation22 + $0x7f8] sm:$0xff] }
 0x5da   :  { %6525 = vmatpush1.bf16.msra.mxu0 %v7338_v32  ;;  %v7397_v32 = vcombine.high %v3240_v27, %v3244_v29 }
 0x5db   :  { %6689 = vmatpush1.bf16.msra.mxu1 %v7340_v21  ;;  %6526 = vmatprep.subr.bf16.mxu0 %v7347_v33  ;;  %v3247_v21 = vld [vmem:[#allocation22 + $0x690] sm:$0xff] }
 0x5dc   :  { %6690 = vmatprep.subr.bf16.mxu1 %v7349_v35  ;;  %v3251_v33 = vld [vmem:[#allocation22 + $0x6b0] sm:$0xff]  ;;  %v3248_v35 = vld [vmem:[#allocation22 + $0x698] sm:$0xff] }
 0x5dd   :  { %v7403_v41 = vcombine.high %v3247_v21, %v3251_v33  ;;  %v7402_v60 = vcombine.low %v3247_v21, %v3251_v33  ;;  %v7404_v58 = vcombine.low %v3248_v35, %v3252_v36  ;;  %v3300_v21 = vld [vmem:[#allocation22 + $0x838] sm:$0xff] }
 0x5de   :  { %6527 = vmatpush1.bf16.msra.mxu0 %v7346_v28  ;;  %v7405_v28 = vcombine.high %v3248_v35, %v3252_v36 }
 0x5df   :  { %6691 = vmatpush1.bf16.msra.mxu1 %v7348_v42  ;;  %6528 = vmatprep.subr.bf16.mxu0 %v7355_v53  ;;  %v3255_v42 = vld [vmem:[#allocation22 + $0x6d0] sm:$0xff] }
 0x5e0   :  { %6692 = vmatprep.subr.bf16.mxu1 %v7357_v50  ;;  %v3259_v53 = vld [vmem:[#allocation22 + $0x6f0] sm:$0xff]  ;;  %v3256_v50 = vld [vmem:[#allocation22 + $0x6d8] sm:$0xff] }
 0x5e1   :  { %v7411_v46 = vcombine.high %v3255_v42, %v3259_v53  ;;  %v7410_v1 = vcombine.low %v3255_v42, %v3259_v53  ;;  %v7412_v2 = vcombine.low %v3256_v50, %v3260_v54  ;;  %v3304_v42 = vld [vmem:[#allocation22 + $0x858] sm:$0xff] }
 0x5e2   :  { %6529 = vmatpush1.bf16.msra.mxu0 %v7354_v59  ;;  %v7413_v59 = vcombine.high %v3256_v50, %v3260_v54  ;;  %v3308_v53 = vld [vmem:[#allocation22 + $0x878] sm:$0xff] }
 0x5e3   :  { %6693 = vmatpush1.bf16.msra.mxu1 %v7356_v61  ;;  %6530 = vmatprep.subr.bf16.mxu0 %v7363_v10  ;;  %v3263_v61 = vld [vmem:[#allocation22 + $0x710] sm:$0xff] }
 0x5e4   :  { %6694 = vmatprep.subr.bf16.mxu1 %v7365_v62  ;;  %v3267_v10 = vld [vmem:[#allocation22 + $0x730] sm:$0xff]  ;;  %v3264_v62 = vld [vmem:[#allocation22 + $0x718] sm:$0xff] }
 0x5e5   :  { %v7419_v3 = vcombine.high %v3263_v61, %v3267_v10  ;;  %v7418_v9 = vcombine.low %v3263_v61, %v3267_v10  ;;  %v7420_v12 = vcombine.low %v3264_v62, %v3268_v63  ;;  %v3316_v61 = vld [vmem:[#allocation22 + $0x8b8] sm:$0xff] }
 0x5e6   :  { %6531 = vmatpush1.bf16.msra.mxu0 %v7362_v4  ;;  %v7421_v4 = vcombine.high %v3264_v62, %v3268_v63  ;;  %v7460_v62 = vcombine.low %v3304_v42, %v3308_v53 }
 0x5e7   :  { %6695 = vmatpush1.bf16.msra.mxu1 %v7364_v5  ;;  %6532 = vmatprep.subr.bf16.mxu0 %v7371_v6  ;;  %v3271_v5 = vld [vmem:[#allocation22 + $0x750] sm:$0xff] }
 0x5e8   :  { %6696 = vmatprep.subr.bf16.mxu1 %v7373_v34  ;;  %v3275_v6 = vld [vmem:[#allocation22 + $0x770] sm:$0xff]  ;;  %v3272_v34 = vld [vmem:[#allocation22 + $0x758] sm:$0xff] }
 0x5e9   :  { %v7427_v14 = vcombine.high %v3271_v5, %v3275_v6  ;;  %v7426_v18 = vcombine.low %v3271_v5, %v3275_v6  ;;  %v7428_v19 = vcombine.low %v3272_v34, %v3276_v7  ;;  %v3324_v5 = vld [vmem:[#allocation22 + $0x8f8] sm:$0xff] }
 0x5ea   :  { %6533 = vmatpush1.bf16.msra.mxu0 %v7370_v15  ;;  %v7429_v15 = vcombine.high %v3272_v34, %v3276_v7 }
 0x5eb   :  { %6697 = vmatpush1.bf16.msra.mxu1 %v7372_v44  ;;  %6534 = vmatprep.subr.bf16.mxu0 %v7379_v16  ;;  %v3279_v44 = vld [vmem:[#allocation22 + $0x790] sm:$0xff] }
 0x5ec   :  { %6698 = vmatprep.subr.bf16.mxu1 %v7381_v17  ;;  %v3283_v16 = vld [vmem:[#allocation22 + $0x7b0] sm:$0xff]  ;;  %v3280_v17 = vld [vmem:[#allocation22 + $0x798] sm:$0xff] }
 0x5ed   :  { %v7435_v20 = vcombine.high %v3279_v44, %v3283_v16  ;;  %v7434_v26 = vcombine.low %v3279_v44, %v3283_v16  ;;  %v7436_v27 = vcombine.low %v3280_v17, %v3284_v8 }
 0x5ee   :  { %6535 = vmatpush1.bf16.msra.mxu0 %v7378_v22  ;;  %v7437_v22 = vcombine.high %v3280_v17, %v3284_v8  ;;  %v3335_v8 = vld [vmem:[#allocation22 + $0x950] sm:$0xff] }
 0x5ef   :  { %6699 = vmatpush1.bf16.msra.mxu1 %v7380_v23  ;;  %6536 = vmatprep.subr.bf16.mxu0 %v7387_v45  ;;  %v3287_v23 = vld [vmem:[#allocation22 + $0x7d0] sm:$0xff] }
 0x5f0   :  { %6700 = vmatprep.subr.bf16.mxu1 %v7389_v24  ;;  %v3291_v45 = vld [vmem:[#allocation22 + $0x7f0] sm:$0xff]  ;;  %v3288_v24 = vld [vmem:[#allocation22 + $0x7d8] sm:$0xff] }
 0x5f1   :  { %v7443_v29 = vcombine.high %v3287_v23, %v3291_v45  ;;  %v7442_v33 = vcombine.low %v3287_v23, %v3291_v45  ;;  %v7444_v35 = vcombine.low %v3288_v24, %v3292_v25 }
 0x5f2   :  { %6537 = vmatpush1.bf16.msra.mxu0 %v7386_v30  ;;  %v7445_v30 = vcombine.high %v3288_v24, %v3292_v25  ;;  %v3343_v25 = vld [vmem:[#allocation22 + $0x990] sm:$0xff] }
 0x5f3   :  { %6701 = vmatpush1.bf16.msra.mxu1 %v7388_v55  ;;  %6538 = vmatprep.subr.bf16.mxu0 %v7395_v31  ;;  %v3295_v55 = vld [vmem:[#allocation22 + $0x810] sm:$0xff] }
 0x5f4   :  { %6702 = vmatprep.subr.bf16.mxu1 %v7397_v32  ;;  %v3299_v31 = vld [vmem:[#allocation22 + $0x830] sm:$0xff]  ;;  %v3296_v32 = vld [vmem:[#allocation22 + $0x818] sm:$0xff] }
 0x5f5   :  { %v7451_v36 = vcombine.high %v3295_v55, %v3299_v31  ;;  %v7452_v50 = vcombine.low %v3296_v32, %v3300_v21 }
 0x5f6   :  { %6539 = vmatpush1.bf16.msra.mxu0 %v7394_v38  ;;  %v7453_v38 = vcombine.high %v3296_v32, %v3300_v21  ;;  %v3351_v21 = vld [vmem:[#allocation22 + $0x9d0] sm:$0xff] }
 0x5f7   :  { %6703 = vmatpush1.bf16.msra.mxu1 %v7396_v39  ;;  %6540 = vmatprep.subr.bf16.mxu0 %v7403_v41  ;;  %v3303_v39 = vld [vmem:[#allocation22 + $0x850] sm:$0xff] }
 0x5f8   :  { %6704 = vmatprep.subr.bf16.mxu1 %v7405_v28  ;;  %v3307_v41 = vld [vmem:[#allocation22 + $0x870] sm:$0xff]  ;;  %v7450_v28 = vcombine.low %v3295_v55, %v3299_v31 }
 0x5f9   :  { %v7459_v54 = vcombine.high %v3303_v39, %v3307_v41  ;;  %v7458_v10 = vcombine.low %v3303_v39, %v3307_v41 }
 0x5fa   :  { %6541 = vmatpush1.bf16.msra.mxu0 %v7402_v60  ;;  %v3311_v60 = vld [vmem:[#allocation22 + $0x890] sm:$0xff] }
 0x5fb   :  { %6705 = vmatpush1.bf16.msra.mxu1 %v7404_v58  ;;  %6542 = vmatprep.subr.bf16.mxu0 %v7411_v46  ;;  %v3315_v58 = vld [vmem:[#allocation22 + $0x8b0] sm:$0xff]  ;;  %v7461_v46 = vcombine.high %v3304_v42, %v3308_v53 }
 0x5fc   :  { %6706 = vmatprep.subr.bf16.mxu1 %v7413_v59  ;;  %v3312_v59 = vld [vmem:[#allocation22 + $0x898] sm:$0xff]  ;;  %v7467_v63 = vcombine.high %v3311_v60, %v3315_v58  ;;  %v7466_v6 = vcombine.low %v3311_v60, %v3315_v58  ;;  %v3359_v42 = vld [vmem:[#allocation22 + $0xa10] sm:$0xff] }
 0x5fd   :  { %v3363_v53 = vld [vmem:[#allocation22 + $0xa30] sm:$0xff] }
 0x5fe   :  { %6543 = vmatpush1.bf16.msra.mxu0 %v7410_v1  ;;  %v7469_v1 = vcombine.high %v3312_v59, %v3316_v61 }
 0x5ff   :  { %6707 = vmatpush1.bf16.msra.mxu1 %v7412_v2  ;;  %6544 = vmatprep.subr.bf16.mxu0 %v7419_v3  ;;  %v3319_v2 = vld [vmem:[#allocation22 + $0x8d0] sm:$0xff] }
 0x600   :  { %6708 = vmatprep.subr.bf16.mxu1 %v7421_v4  ;;  %v3323_v3 = vld [vmem:[#allocation22 + $0x8f0] sm:$0xff]  ;;  %v3320_v4 = vld [vmem:[#allocation22 + $0x8d8] sm:$0xff] }
 0x601   :  { %v7475_v34 = vcombine.high %v3319_v2, %v3323_v3  ;;  %v7477_v7 = vcombine.high %v3320_v4, %v3324_v5  ;;  %v7476_v44 = vcombine.low %v3320_v4, %v3324_v5  ;;  %v3375_v5 = vld [vmem:[#allocation22 + $0xa90] sm:$0xff] }
 0x602   :  { %6545 = vmatpush1.bf16.msra.mxu0 %v7418_v9  ;;  %v3327_v9 = vld [vmem:[#allocation22 + $0x910] sm:$0xff] }
 0x603   :  { %6709 = vmatpush1.bf16.msra.mxu1 %v7420_v12  ;;  %6546 = vmatprep.subr.bf16.mxu0 %v7427_v14  ;;  %v3331_v12 = vld [vmem:[#allocation22 + $0x930] sm:$0xff]  ;;  %v3328_v14 = vld [vmem:[#allocation22 + $0x918] sm:$0xff] }
 0x604   :  { %6710 = vmatprep.subr.bf16.mxu1 %v7429_v15  ;;  %v3332_v15 = vld [vmem:[#allocation22 + $0x938] sm:$0xff]  ;;  %v7483_v16 = vcombine.high %v3327_v9, %v3331_v12 }
 0x605   :  { %v7485_v17 = vcombine.high %v3328_v14, %v3332_v15  ;;  %v7484_v23 = vcombine.low %v3328_v14, %v3332_v15  ;;  %v3383_v15 = vld [vmem:[#allocation22 + $0xad0] sm:$0xff] }
 0x606   :  { %6547 = vmatpush1.bf16.msra.mxu0 %v7426_v18  ;;  %v3339_v18 = vld [vmem:[#allocation22 + $0x970] sm:$0xff] }
 0x607   :  { %6711 = vmatpush1.bf16.msra.mxu1 %v7428_v19  ;;  %6548 = vmatprep.subr.bf16.mxu0 %v7435_v20  ;;  %v3336_v19 = vld [vmem:[#allocation22 + $0x958] sm:$0xff]  ;;  %v7491_v45 = vcombine.high %v3335_v8, %v3339_v18 }
 0x608   :  { %6712 = vmatprep.subr.bf16.mxu1 %v7437_v22  ;;  %v3340_v20 = vld [vmem:[#allocation22 + $0x978] sm:$0xff]  ;;  %v7482_v22 = vcombine.low %v3327_v9, %v3331_v12 }
 0x609   :  { %v7493_v24 = vcombine.high %v3336_v19, %v3340_v20  ;;  %v7492_v55 = vcombine.low %v3336_v19, %v3340_v20  ;;  %v3391_v20 = vld [vmem:[#allocation22 + $0xb10] sm:$0xff] }
 0x60a   :  { %6549 = vmatpush1.bf16.msra.mxu0 %v7434_v26  ;;  %v3347_v26 = vld [vmem:[#allocation22 + $0x9b0] sm:$0xff] }
 0x60b   :  { %6713 = vmatpush1.bf16.msra.mxu1 %v7436_v27  ;;  %6550 = vmatprep.subr.bf16.mxu0 %v7443_v29  ;;  %v3344_v27 = vld [vmem:[#allocation22 + $0x998] sm:$0xff]  ;;  %v7499_v31 = vcombine.high %v3343_v25, %v3347_v26 }
 0x60c   :  { %6714 = vmatprep.subr.bf16.mxu1 %v7445_v30  ;;  %v3348_v29 = vld [vmem:[#allocation22 + $0x9b8] sm:$0xff]  ;;  %v7490_v30 = vcombine.low %v3335_v8, %v3339_v18 }
 0x60d   :  { %v7501_v32 = vcombine.high %v3344_v27, %v3348_v29  ;;  %v7500_v39 = vcombine.low %v3344_v27, %v3348_v29  ;;  %v3399_v29 = vld [vmem:[#allocation22 + $0xb50] sm:$0xff] }
 0x60e   :  { %6551 = vmatpush1.bf16.msra.mxu0 %v7442_v33  ;;  %v3355_v33 = vld [vmem:[#allocation22 + $0x9f0] sm:$0xff] }
 0x60f   :  { %6715 = vmatpush1.bf16.msra.mxu1 %v7444_v35  ;;  %6561 = vmatprep.subr.bf16.mxu0 %v7451_v36  ;;  %v3352_v35 = vld [vmem:[#allocation22 + $0x9d8] sm:$0xff]  ;;  %v7507_v41 = vcombine.high %v3351_v21, %v3355_v33  ;;  %v7506_v60 = vcombine.low %v3351_v21, %v3355_v33 }
 0x610   :  { %6725 = vmatprep.subr.bf16.mxu1 %v7453_v38  ;;  %v3356_v36 = vld [vmem:[#allocation22 + $0x9f8] sm:$0xff]  ;;  %v7498_v38 = vcombine.low %v3343_v25, %v3347_v26 }
 0x611   :  { %6553 = vmatmul.mubr.bf16.vlgmr.msra.gmra.mrb[20].mxu0 %v8712_v56  ;;  %v7508_v58 = vcombine.low %v3352_v35, %v3356_v36 }
 0x612   :  { %6717 = vmatmul.mubr.bf16.vlgmr.msra.gmra.mrb[20].mxu1 %v8712_v56  ;;  %6562 = vmatpush1.bf16.msra.mxu0 %v7450_v28  ;;  %v7468_v56 = vcombine.low %v3312_v59, %v3316_v61  ;;  %v7509_v28 = vcombine.high %v3352_v35, %v3356_v36  ;;  %v3367_v61 = vld [vmem:[#allocation22 + $0xa50] sm:$0xff] }
 0x613   :  { %6593 = vmatprep.mubr.bf16.mxu0 %v8739_v52  ;;  %6726 = vmatpush1.bf16.msra.mxu1 %v7452_v50  ;;  %v3360_v50 = vld [vmem:[#allocation22 + $0xa18] sm:$0xff]  ;;  %v3407_v36 = vld [vmem:[#allocation22 + $0xb90] sm:$0xff] }
 0x614   :  { %6757 = vmatprep.mubr.bf16.mxu1 %v8739_v52  ;;  %6563 = vmatprep.subr.bf16.mxu0 %v7459_v54  ;;  %v7474_v52 = vcombine.low %v3319_v2, %v3323_v3  ;;  %v3364_v54 = vld [vmem:[#allocation22 + $0xa38] sm:$0xff] }
 0x615   :  { %6727 = vmatprep.subr.bf16.mxu1 %v7461_v46  ;;  %v7515_v46 = vcombine.high %v3359_v42, %v3363_v53  ;;  %v7517_v59 = vcombine.high %v3360_v50, %v3364_v54  ;;  %v7516_v2 = vcombine.low %v3360_v50, %v3364_v54  ;;  %v3415_v54 = vld [vmem:[#allocation22 + $0xbd0] sm:$0xff] }
 0x616   :  { %6564 = vmatpush1.bf16.msra.mxu0 %v7458_v10  ;;  %v3371_v10 = vld [vmem:[#allocation22 + $0xa70] sm:$0xff] }
 0x617   :  { %6728 = vmatpush1.bf16.msra.mxu1 %v7460_v62  ;;  %6565 = vmatprep.subr.bf16.mxu0 %v7467_v63  ;;  %v3368_v62 = vld [vmem:[#allocation22 + $0xa58] sm:$0xff]  ;;  %v7523_v3 = vcombine.high %v3367_v61, %v3371_v10 }
 0x618   :  { %6729 = vmatprep.subr.bf16.mxu1 %v7469_v1  ;;  %v3372_v63 = vld [vmem:[#allocation22 + $0xa78] sm:$0xff]  ;;  %v7514_v1 = vcombine.low %v3359_v42, %v3363_v53 }
 0x619   :  { %v7525_v4 = vcombine.high %v3368_v62, %v3372_v63  ;;  %v7524_v9 = vcombine.low %v3368_v62, %v3372_v63  ;;  %v3423_v63 = vld [vmem:[#allocation22 + $0xc10] sm:$0xff] }
 0x61a   :  { %6566 = vmatpush1.bf16.msra.mxu0 %v7466_v6  ;;  %v3379_v6 = vld [vmem:[#allocation22 + $0xab0] sm:$0xff] }
 0x61b   :  { %6730 = vmatpush1.bf16.msra.mxu1 %v7468_v56  ;;  %6567 = vmatprep.subr.bf16.mxu0 %v7475_v34  ;;  %v3376_v56 = vld [vmem:[#allocation22 + $0xa98] sm:$0xff]  ;;  %v7531_v12 = vcombine.high %v3375_v5, %v3379_v6 }
 0x61c   :  { %6731 = vmatprep.subr.bf16.mxu1 %v7477_v7  ;;  %v3380_v34 = vld [vmem:[#allocation22 + $0xab8] sm:$0xff]  ;;  %v7522_v7 = vcombine.low %v3367_v61, %v3371_v10 }
 0x61d   :  { %v7533_v14 = vcombine.high %v3376_v56, %v3380_v34  ;;  %v7532_v8 = vcombine.low %v3376_v56, %v3380_v34  ;;  %v3431_v34 = vld [vmem:[#allocation22 + $0xc50] sm:$0xff] }
 0x61e   :  { %6568 = vmatpush1.bf16.msra.mxu0 %v7474_v52  ;;  %v3387_v52 = vld [vmem:[#allocation22 + $0xaf0] sm:$0xff] }
 0x61f   :  { %6732 = vmatpush1.bf16.msra.mxu1 %v7476_v44  ;;  %6569 = vmatprep.subr.bf16.mxu0 %v7483_v16  ;;  %v3384_v44 = vld [vmem:[#allocation22 + $0xad8] sm:$0xff]  ;;  %v7539_v18 = vcombine.high %v3383_v15, %v3387_v52 }
 0x620   :  { %6733 = vmatprep.subr.bf16.mxu1 %v7485_v17  ;;  %v3388_v16 = vld [vmem:[#allocation22 + $0xaf8] sm:$0xff]  ;;  %v7530_v17 = vcombine.low %v3375_v5, %v3379_v6 }
 0x621   :  { %v7541_v19 = vcombine.high %v3384_v44, %v3388_v16  ;;  %v7540_v25 = vcombine.low %v3384_v44, %v3388_v16  ;;  %v3439_v44 = vld [vmem:[#allocation22 + $0xc90] sm:$0xff] }
 0x622   :  { %6570 = vmatpush1.bf16.msra.mxu0 %v7482_v22  ;;  %v3395_v22 = vld [vmem:[#allocation22 + $0xb30] sm:$0xff] }
 0x623   :  { %6734 = vmatpush1.bf16.msra.mxu1 %v7484_v23  ;;  %6571 = vmatprep.subr.bf16.mxu0 %v7491_v45  ;;  %v3392_v23 = vld [vmem:[#allocation22 + $0xb18] sm:$0xff]  ;;  %v7547_v26 = vcombine.high %v3391_v20, %v3395_v22  ;;  %v3443_v16 = vld [vmem:[#allocation22 + $0xcb0] sm:$0xff] }
 0x624   :  { %6735 = vmatprep.subr.bf16.mxu1 %v7493_v24  ;;  %v3396_v45 = vld [vmem:[#allocation22 + $0xb38] sm:$0xff]  ;;  %v7538_v24 = vcombine.low %v3383_v15, %v3387_v52 }
 0x625   :  { %v7549_v27 = vcombine.high %v3392_v23, %v3396_v45  ;;  %v7548_v21 = vcombine.low %v3392_v23, %v3396_v45  ;;  %v3447_v45 = vld [vmem:[#allocation22 + $0xcd0] sm:$0xff] }
 0x626   :  { %6572 = vmatpush1.bf16.msra.mxu0 %v7490_v30  ;;  %v3403_v30 = vld [vmem:[#allocation22 + $0xb70] sm:$0xff] }
 0x627   :  { %6736 = vmatpush1.bf16.msra.mxu1 %v7492_v55  ;;  %6573 = vmatprep.subr.bf16.mxu0 %v7499_v31  ;;  %v3400_v55 = vld [vmem:[#allocation22 + $0xb58] sm:$0xff]  ;;  %v7555_v33 = vcombine.high %v3399_v29, %v3403_v30 }
 0x628   :  { %6737 = vmatprep.subr.bf16.mxu1 %v7501_v32  ;;  %v3404_v31 = vld [vmem:[#allocation22 + $0xb78] sm:$0xff]  ;;  %v7546_v32 = vcombine.low %v3391_v20, %v3395_v22  ;;  %v7595_v22 = vcombine.high %v3439_v44, %v3443_v16 }
 0x629   :  { %v7557_v35 = vcombine.high %v3400_v55, %v3404_v31  ;;  %v7556_v42 = vcombine.low %v3400_v55, %v3404_v31  ;;  %v3455_v55 = vld [vmem:[#allocation22 + $0xd10] sm:$0xff] }
 0x62a   :  { %6574 = vmatpush1.bf16.msra.mxu0 %v7498_v38  ;;  %v3411_v38 = vld [vmem:[#allocation22 + $0xbb0] sm:$0xff] }
 0x62b   :  { %6738 = vmatpush1.bf16.msra.mxu1 %v7500_v39  ;;  %6575 = vmatprep.subr.bf16.mxu0 %v7507_v41  ;;  %v3408_v39 = vld [vmem:[#allocation22 + $0xb98] sm:$0xff]  ;;  %v7563_v53 = vcombine.high %v3407_v36, %v3411_v38  ;;  %v3459_v31 = vld [vmem:[#allocation22 + $0xd30] sm:$0xff] }
 0x62c   :  { %6739 = vmatprep.subr.bf16.mxu1 %v7509_v28  ;;  %v3412_v41 = vld [vmem:[#allocation22 + $0xbb8] sm:$0xff]  ;;  %v7554_v28 = vcombine.low %v3399_v29, %v3403_v30 }
 0x62d   :  { %v7565_v50 = vcombine.high %v3408_v39, %v3412_v41  ;;  %v7564_v61 = vcombine.low %v3408_v39, %v3412_v41  ;;  %v3467_v39 = vld [vmem:[#allocation22 + $0xd70] sm:$0xff]  ;;  %v3464_v41 = vld [vmem:[#allocation22 + $0xd58] sm:$0xff] }
 0x62e   :  { %6576 = vmatpush1.bf16.msra.mxu0 %v7506_v60  ;;  %v3419_v60 = vld [vmem:[#allocation22 + $0xbf0] sm:$0xff] }
 0x62f   :  { %6740 = vmatpush1.bf16.msra.mxu1 %v7508_v58  ;;  %6577 = vmatprep.subr.bf16.mxu0 %v7515_v46  ;;  %v3416_v58 = vld [vmem:[#allocation22 + $0xbd8] sm:$0xff]  ;;  %v7571_v10 = vcombine.high %v3415_v54, %v3419_v60 }
 0x630   :  { %6741 = vmatprep.subr.bf16.mxu1 %v7517_v59  ;;  %v3420_v46 = vld [vmem:[#allocation22 + $0xbf8] sm:$0xff]  ;;  %v7562_v59 = vcombine.low %v3407_v36, %v3411_v38  ;;  %v3463_v38 = vld [vmem:[#allocation22 + $0xd50] sm:$0xff] }
 0x631   :  { %v7573_v62 = vcombine.high %v3416_v58, %v3420_v46  ;;  %v7572_v5 = vcombine.low %v3416_v58, %v3420_v46  ;;  %v3471_v58 = vld [vmem:[#allocation22 + $0xd90] sm:$0xff] }
 0x632   :  { %6578 = vmatpush1.bf16.msra.mxu0 %v7514_v1  ;;  %v3427_v1 = vld [vmem:[#allocation22 + $0xc30] sm:$0xff] }
 0x633   :  { %6742 = vmatpush1.bf16.msra.mxu1 %v7516_v2  ;;  %6579 = vmatprep.subr.bf16.mxu0 %v7523_v3  ;;  %v3424_v2 = vld [vmem:[#allocation22 + $0xc18] sm:$0xff]  ;;  %v7579_v6 = vcombine.high %v3423_v63, %v3427_v1  ;;  %v3475_v46 = vld [vmem:[#allocation22 + $0xdb0] sm:$0xff] }
 0x634   :  { %6743 = vmatprep.subr.bf16.mxu1 %v7525_v4  ;;  %v3428_v3 = vld [vmem:[#allocation22 + $0xc38] sm:$0xff]  ;;  %v7570_v4 = vcombine.low %v3415_v54, %v3419_v60  ;;  %v7619_v54 = vcombine.high %v3463_v38, %v3467_v39 }
 0x635   :  { %v7581_v56 = vcombine.high %v3424_v2, %v3428_v3  ;;  %v7580_v15 = vcombine.low %v3424_v2, %v3428_v3  ;;  %v7618_v2 = vcombine.low %v3463_v38, %v3467_v39  ;;  %v3504_v39 = vld [vmem:[#allocation22 + $0xe98] sm:$0xff] }
 0x636   :  { %6580 = vmatpush1.bf16.msra.mxu0 %v7522_v7  ;;  %v3435_v7 = vld [vmem:[#allocation22 + $0xc70] sm:$0xff] }
 0x637   :  { %6744 = vmatpush1.bf16.msra.mxu1 %v7524_v9  ;;  %6581 = vmatprep.subr.bf16.mxu0 %v7531_v12  ;;  %v7578_v9 = vcombine.low %v3423_v63, %v3427_v1  ;;  %v3432_v12 = vld [vmem:[#allocation22 + $0xc58] sm:$0xff]  ;;  %v7587_v52 = vcombine.high %v3431_v34, %v3435_v7 }
 0x638   :  { %6745 = vmatprep.subr.bf16.mxu1 %v7533_v14  ;;  %v3436_v14 = vld [vmem:[#allocation22 + $0xc78] sm:$0xff] }
 0x639   :  { %v7588_v20 = vcombine.low %v3432_v12, %v3436_v14 }
 0x63a   :  { %6582 = vmatpush1.bf16.msra.mxu0 %v7530_v17  ;;  %v7589_v17 = vcombine.high %v3432_v12, %v3436_v14  ;;  %v3480_v14 = vld [vmem:[#allocation22 + $0xdd8] sm:$0xff] }
 0x63b   :  { %6746 = vmatpush1.bf16.msra.mxu1 %v7532_v8  ;;  %6583 = vmatprep.subr.bf16.mxu0 %v7539_v18  ;;  %v3440_v8 = vld [vmem:[#allocation22 + $0xc98] sm:$0xff] }
 0x63c   :  { %6747 = vmatprep.subr.bf16.mxu1 %v7541_v19  ;;  %v3444_v18 = vld [vmem:[#allocation22 + $0xcb8] sm:$0xff]  ;;  %v7586_v19 = vcombine.low %v3431_v34, %v3435_v7 }
 0x63d   :  { %v7597_v23 = vcombine.high %v3440_v8, %v3444_v18 }
 0x63e   :  { %6584 = vmatpush1.bf16.msra.mxu0 %v7538_v24  ;;  %v3451_v24 = vld [vmem:[#allocation22 + $0xcf0] sm:$0xff] }
 0x63f   :  { %6748 = vmatpush1.bf16.msra.mxu1 %v7540_v25  ;;  %6585 = vmatprep.subr.bf16.mxu0 %v7547_v26  ;;  %v3448_v25 = vld [vmem:[#allocation22 + $0xcd8] sm:$0xff]  ;;  %v7603_v29 = vcombine.high %v3447_v45, %v3451_v24 }
 0x640   :  { %6749 = vmatprep.subr.bf16.mxu1 %v7549_v27  ;;  %v3452_v26 = vld [vmem:[#allocation22 + $0xcf8] sm:$0xff]  ;;  %v7594_v27 = vcombine.low %v3439_v44, %v3443_v16  ;;  %v7626_v16 = vcombine.low %v3471_v58, %v3475_v46 }
 0x641   :  { %v7605_v30 = vcombine.high %v3448_v25, %v3452_v26 }
 0x642   :  { %6586 = vmatpush1.bf16.msra.mxu0 %v7546_v32  ;;  %v3456_v32 = vld [vmem:[#allocation22 + $0xd18] sm:$0xff] }
 0x643   :  { %6750 = vmatpush1.bf16.msra.mxu1 %v7548_v21  ;;  %6587 = vmatprep.subr.bf16.mxu0 %v7555_v33  ;;  %v3460_v21 = vld [vmem:[#allocation22 + $0xd38] sm:$0xff]  ;;  %v7604_v33 = vcombine.low %v3448_v25, %v3452_v26 }
 0x644   :  { %6751 = vmatprep.subr.bf16.mxu1 %v7557_v35  ;;  %v7611_v35 = vcombine.high %v3455_v55, %v3459_v31  ;;  %v7613_v36 = vcombine.high %v3456_v32, %v3460_v21 }
 0x646   :  { %6588 = vmatpush1.bf16.msra.mxu0 %v7554_v28  ;;  %v3468_v28 = vld [vmem:[#allocation22 + $0xd78] sm:$0xff] }
 0x647   :  { %6752 = vmatpush1.bf16.msra.mxu1 %v7556_v42  ;;  %6589 = vmatprep.subr.bf16.mxu0 %v7563_v53  ;;  %v7610_v42 = vcombine.low %v3455_v55, %v3459_v31  ;;  %v8775_v53 = vld [vmem:[#allocation23] sm:$0xff]  ;;  %v7621_v60 = vcombine.high %v3464_v41, %v3468_v28  ;;  %v7620_v3 = vcombine.low %v3464_v41, %v3468_v28  ;;  %v3496_v55 = vld [vmem:[#allocation22 + $0xe58] sm:$0xff] }
 0x648   :  { %6753 = vmatprep.subr.bf16.mxu1 %v7565_v50  ;;  %v7612_v50 = vcombine.low %v3456_v32, %v3460_v21  ;;  %v3558_v63 = vrot.slane %v8775_v53, %v8600_v49  ;;  %v3566_v1 = vrot.slane %v8775_v53, %v8622_v13  ;;  %v3484_v49 = vld [vmem:[#allocation22 + $0xdf8] sm:$0xff] }
 0x649   :  { %v7636_v26 = vcombine.low %v3480_v14, %v3484_v49  ;;  %v3500_v31 = vld [vmem:[#allocation22 + $0xe78] sm:$0xff] }
 0x64a   :  { %6590 = vmatpush1.bf16.msra.mxu0 %v7562_v59  ;;  %v3554_v59 = vrot.slane %v8775_v53, %v8597_v47  ;;  %v3508_v41 = vld [vmem:[#allocation22 + $0xeb8] sm:$0xff] }
 0x64b   :  { %6754 = vmatpush1.bf16.msra.mxu1 %v7564_v61  ;;  %6591 = vmatprep.subr.bf16.mxu0 %v7571_v10  ;;  %v3562_v61 = vrot.slane %v8775_v53, %v8619_v11  ;;  %v3472_v10 = vld [vmem:[#allocation22 + $0xd98] sm:$0xff]  ;;  %v3483_v11 = vld [vmem:[#allocation22 + $0xdf0] sm:$0xff] }
 0x64c   :  { %6755 = vmatprep.subr.bf16.mxu1 %v7573_v62  ;;  %v3476_v62 = vld [vmem:[#allocation22 + $0xdb8] sm:$0xff] }
 0x64d   :  { %v7629_v47 = vcombine.high %v3472_v10, %v3476_v62 }
 0x64e   :  { %6592 = vmatpush1.bf16.msra.mxu0 %v7570_v4  ;;  %v7627_v4 = vcombine.high %v3471_v58, %v3475_v46  ;;  %v7661_v46 = vcombine.high %v3504_v39, %v3508_v41 }
 0x64f   :  { %6756 = vmatpush1.bf16.msra.mxu1 %v7572_v5  ;;  %6602 = vmatprep.subr.bf16.mxu0 %v7579_v6 }
 0x650   :  { %6766 = vmatprep.subr.bf16.mxu1 %v7581_v56  ;;  %v3479_v56 = vld [vmem:[#allocation22 + $0xdd0] sm:$0xff] }
 0x651   :  { %6594 = vmatmul.mubr.bf16.vlgmr.msra.gmra.mrb[20].mxu0 %v8741_v57  ;;  %v7634_v25 = vcombine.low %v3479_v56, %v3483_v11 }
 0x652   :  { %6758 = vmatmul.mubr.bf16.vlgmr.msra.gmra.mrb[20].mxu1 %v8741_v57  ;;  %6603 = vmatpush1.bf16.msra.mxu0 %v7578_v9  ;;  %v7596_v57 = vcombine.low %v3440_v8, %v3444_v18  ;;  %v7628_v18 = vcombine.low %v3472_v10, %v3476_v62  ;;  %v3512_v10 = vld [vmem:[#allocation22 + $0xed8] sm:$0xff] }
 0x653   :  { %6634 = vmatprep.mubr.bf16.mxu0 %v8745_v0  ;;  %6767 = vmatpush1.bf16.msra.mxu1 %v7580_v15  ;;  %v3516_v62 = vld [vmem:[#allocation22 + $0xef8] sm:$0xff] }
 0x654   :  { %6798 = vmatprep.mubr.bf16.mxu1 %v8745_v0  ;;  %6604 = vmatprep.subr.bf16.mxu0 %v7587_v52  ;;  %v7602_v0 = vcombine.low %v3447_v45, %v3451_v24  ;;  %v3488_v45 = vld [vmem:[#allocation22 + $0xe18] sm:$0xff] }
 0x655   :  { %6768 = vmatprep.subr.bf16.mxu1 %v7589_v17  ;;  %v3492_v24 = vld [vmem:[#allocation22 + $0xe38] sm:$0xff] }
 0x656   :  { %6605 = vmatpush1.bf16.msra.mxu0 %v7586_v19  ;;  %v7635_v19 = vcombine.high %v3479_v56, %v3483_v11  ;;  %v7644_v21 = vcombine.low %v3488_v45, %v3492_v24  ;;  %v7668_v11 = vcombine.low %v3512_v10, %v3516_v62 }
 0x657   :  { %6769 = vmatpush1.bf16.msra.mxu1 %v7588_v20  ;;  %6606 = vmatprep.subr.bf16.mxu0 %v7595_v22  ;;  %v7637_v20 = vcombine.high %v3480_v14, %v3484_v49  ;;  %v3487_v22 = vld [vmem:[#allocation22 + $0xe10] sm:$0xff]  ;;  %v3528_v14 = vld [vmem:[#allocation22 + $0xf58] sm:$0xff] }
 0x658   :  { %6770 = vmatprep.subr.bf16.mxu1 %v7597_v23  ;;  %v3491_v23 = vld [vmem:[#allocation22 + $0xe30] sm:$0xff]  ;;  %v3532_v49 = vld [vmem:[#allocation22 + $0xf78] sm:$0xff] }
 0x659   :  { %v7642_v32 = vcombine.low %v3487_v22, %v3491_v23 }
 0x65a   :  { %6607 = vmatpush1.bf16.msra.mxu0 %v7594_v27  ;;  %v7643_v27 = vcombine.high %v3487_v22, %v3491_v23 }
 0x65b   :  { %6771 = vmatpush1.bf16.msra.mxu1 %v7596_v57  ;;  %6608 = vmatprep.subr.bf16.mxu0 %v7603_v29  ;;  %v7645_v57 = vcombine.high %v3488_v45, %v3492_v24  ;;  %v3495_v29 = vld [vmem:[#allocation22 + $0xe50] sm:$0xff] }
 0x65c   :  { %6772 = vmatprep.subr.bf16.mxu1 %v7605_v30  ;;  %v3499_v30 = vld [vmem:[#allocation22 + $0xe70] sm:$0xff] }
 0x65d   :  { %v3543_v45 = vld [vmem:[#allocation22 + $0xfd0] sm:$0xff] }
 0x65e   :  { %6609 = vmatpush1.bf16.msra.mxu0 %v7602_v0  ;;  %v7651_v0 = vcombine.high %v3495_v29, %v3499_v30  ;;  %v3547_v24 = vld [vmem:[#allocation22 + $0xff0] sm:$0xff] }
 0x65f   :  { %6773 = vmatpush1.bf16.msra.mxu1 %v7604_v33  ;;  %6610 = vmatprep.subr.bf16.mxu0 %v7611_v35  ;;  %v7653_v33 = vcombine.high %v3496_v55, %v3500_v31  ;;  %v3503_v35 = vld [vmem:[#allocation22 + $0xe90] sm:$0xff] }
 0x660   :  { %6774 = vmatprep.subr.bf16.mxu1 %v7613_v36  ;;  %v3507_v36 = vld [vmem:[#allocation22 + $0xeb0] sm:$0xff] }
 0x662   :  { %6611 = vmatpush1.bf16.msra.mxu0 %v7610_v42  ;;  %v7650_v42 = vcombine.low %v3495_v29, %v3499_v30  ;;  %v7699_v29 = vcombine.high %v3543_v45, %v3547_v24 }
 0x663   :  { %6775 = vmatpush1.bf16.msra.mxu1 %v7612_v50  ;;  %6612 = vmatprep.subr.bf16.mxu0 %v7619_v54  ;;  %v7652_v54 = vcombine.low %v3496_v55, %v3500_v31  ;;  %v7698_v55 = vcombine.low %v3543_v45, %v3547_v24 }
 0x664   :  { %v6308_v5 = vpop.f32.mrb[16].mxu0  ;;  %v6472_v6 = vpop.f32.mrb[16].mxu1  ;;  %6776 = vmatprep.subr.bf16.mxu1 %v7621_v60  ;;  %v7659_v60 = vcombine.high %v3503_v35, %v3507_v36 }
 0x665   :  { %v7728_v34 = vadd.f32 %v6308_v5, %v3554_v59  ;;  %v7730_v7 = vadd.f32 %v6472_v6, %v3562_v61  ;;  %v6310_v9 = vpop.f32.mrb[17].mxu0  ;;  %v6474_v12 = vpop.f32.mrb[17].mxu1  ;;  %v3511_v59 = vld [vmem:[#allocation22 + $0xed0] sm:$0xff]  ;;  %v3520_v6 = vld [vmem:[#allocation22 + $0xf18] sm:$0xff] }
 0x666   :  { %v7729_v15 = vadd.f32 %v6310_v9, %v3558_v63  ;;  %v7731_v52 = vadd.f32 %v6474_v12, %v3566_v1  ;;  %v6312_v13 = vpop.f32.mrb[18].mxu0  ;;  %v6476_v44 = vpop.f32.mrb[18].mxu1  ;;  %6613 = vmatpush1.bf16.msra.mxu0 %v7618_v2  ;;  %v3515_v61 = vld [vmem:[#allocation22 + $0xef0] sm:$0xff]  ;;  %v7658_v63 = vcombine.low %v3503_v35, %v3507_v36  ;;  %v7660_v1 = vcombine.low %v3504_v39, %v3508_v41 }
 0x667   :  { %7953 = vtanh.f32 %v7728_v34  ;;  %6777 = vmatpush1.bf16.msra.mxu1 %v7620_v3  ;;  %v6313_v17 = vpop.f32.mrb[19].mxu0  ;;  %v6477_v8 = vpop.f32.mrb[19].mxu1  ;;  %6614 = vmatprep.subr.bf16.mxu0 %v7627_v4  ;;  %v7667_v2 = vcombine.high %v3511_v59, %v3515_v61  ;;  %v7669_v3 = vcombine.high %v3512_v10, %v3516_v62  ;;  %v3519_v4 = vld [vmem:[#allocation22 + $0xf10] sm:$0xff]  ;;  %v7666_v56 = vcombine.low %v3511_v59, %v3515_v61 }
 0x668   :  { %7955 = vtanh.f32 %v7730_v7  ;;  %6778 = vmatprep.subr.bf16.mxu1 %v7629_v47  ;;  %v3523_v5 = vld [vmem:[#allocation22 + $0xf30] sm:$0xff]  ;;  %v3524_v47 = vld [vmem:[#allocation22 + $0xf38] sm:$0xff]  ;;  %v7685_v44 = vcombine.high %v3528_v14, %v3532_v49 }
 0x669   :  { %7957 = vtanh.f32 %v7729_v15  ;;  %v7675_v34 = vcombine.high %v3519_v4, %v3523_v5  ;;  %v7677_v7 = vcombine.high %v3520_v6, %v3524_v47  ;;  %v3527_v9 = vld [vmem:[#allocation22 + $0xf50] sm:$0xff]  ;;  %v7674_v15 = vcombine.low %v3519_v4, %v3523_v5  ;;  %v3536_v8 = vld [vmem:[#allocation22 + $0xf98] sm:$0xff] }
 0x66a   :  { %7959 = vtanh.f32 %v7731_v52  ;;  %6615 = vmatpush1.bf16.msra.mxu0 %v7626_v16  ;;  %v3531_v12 = vld [vmem:[#allocation22 + $0xf70] sm:$0xff]  ;;  %v7676_v52 = vcombine.low %v3520_v6, %v3524_v47 }
 0x66b   :  { %6779 = vmatpush1.bf16.msra.mxu1 %v7628_v18  ;;  %6616 = vmatprep.subr.bf16.mxu0 %v7635_v19  ;;  %v7683_v13 = vcombine.high %v3527_v9, %v3531_v12  ;;  %v3535_v16 = vld [vmem:[#allocation22 + $0xf90] sm:$0xff]  ;;  %v3540_v18 = vld [vmem:[#allocation22 + $0xfb8] sm:$0xff]  ;;  %v7682_v19 = vcombine.low %v3527_v9, %v3531_v12 }
 0x66c   :  { %6780 = vmatprep.subr.bf16.mxu1 %v7637_v20  ;;  %v3539_v17 = vld [vmem:[#allocation22 + $0xfb0] sm:$0xff]  ;;  %v7684_v20 = vcombine.low %v3528_v14, %v3532_v49  ;;  %v7693_v23 = vcombine.high %v3536_v8, %v3540_v18 }
 0x66d   :  { %v7691_v22 = vcombine.high %v3535_v16, %v3539_v17 }
 0x66e   :  { %6617 = vmatpush1.bf16.msra.mxu0 %v7634_v25  ;;  %v3544_v25 = vld [vmem:[#allocation22 + $0xfd8] sm:$0xff] }
 0x66f   :  { %6781 = vmatpush1.bf16.msra.mxu1 %v7636_v26  ;;  %6618 = vmatprep.subr.bf16.mxu0 %v7643_v27  ;;  %v3548_v26 = vld [vmem:[#allocation22 + $0xff8] sm:$0xff]  ;;  %v7690_v27 = vcombine.low %v3535_v16, %v3539_v17 }
 0x670   :  { %6782 = vmatprep.subr.bf16.mxu1 %v7645_v57  ;;  %v7692_v57 = vcombine.low %v3536_v8, %v3540_v18  ;;  %v7701_v30 = vcombine.high %v3544_v25, %v3548_v26  ;;  %v7700_v31 = vcombine.low %v3544_v25, %v3548_v26 }
 0x671   :  { %v7954_v38 = vpop.eup %7953 }
 0x672   :  { %v7956_v28 = vpop.eup %7955  ;;  %6815 = vst [vmem:[#allocation25] sm:$0xff] %v7954_v38  ;;  %6619 = vmatpush1.bf16.msra.mxu0 %v7642_v32  ;;  %v3570_v32 = vrot.slane %v8775_v53, %v8717_v40 }
 0x673   :  { %v7958_v50 = vpop.eup %7957  ;;  %6817 = vst [vmem:[#allocation25 + $0x10] sm:$0xff] %v7956_v28  ;;  %6783 = vmatpush1.bf16.msra.mxu1 %v7644_v21  ;;  %6620 = vmatprep.subr.bf16.mxu0 %v7651_v0  ;;  %v3578_v21 = vrot.slane %v8775_v53, %v8752_v51  ;;  %v3574_v0 = vrot.slane %v8775_v53, %v8720_v43 }
 0x674   :  { %v7960_v58 = vpop.eup %7959  ;;  %6816 = vst [vmem:[#allocation25 + $0x8] sm:$0xff] %v7958_v50  ;;  %6784 = vmatprep.subr.bf16.mxu1 %v7653_v33  ;;  %v3582_v33 = vrot.slane %v8775_v53, %v8723_v48 }
 0x675   :  { %6818 = vst [vmem:[#allocation25 + $0x18] sm:$0xff] %v7960_v58 }
 0x676   :  { %6621 = vmatpush1.bf16.msra.mxu0 %v7650_v42 }
 0x677   :  { %6785 = vmatpush1.bf16.msra.mxu1 %v7652_v54  ;;  %6622 = vmatprep.subr.bf16.mxu0 %v7659_v60 }
 0x678   :  { %6786 = vmatprep.subr.bf16.mxu1 %v7661_v46 }
 0x67a   :  { %6623 = vmatpush1.bf16.msra.mxu0 %v7658_v63 }
 0x67b   :  { %6787 = vmatpush1.bf16.msra.mxu1 %v7660_v1  ;;  %6624 = vmatprep.subr.bf16.mxu0 %v7667_v2 }
 0x67c   :  { %6788 = vmatprep.subr.bf16.mxu1 %v7669_v3 }
 0x67e   :  { %6625 = vmatpush1.bf16.msra.mxu0 %v7666_v56 }
 0x67f   :  { %6789 = vmatpush1.bf16.msra.mxu1 %v7668_v11  ;;  %6626 = vmatprep.subr.bf16.mxu0 %v7675_v34 }
 0x680   :  { %6790 = vmatprep.subr.bf16.mxu1 %v7677_v7 }
 0x682   :  { %6627 = vmatpush1.bf16.msra.mxu0 %v7674_v15 }
 0x683   :  { %6791 = vmatpush1.bf16.msra.mxu1 %v7676_v52  ;;  %6628 = vmatprep.subr.bf16.mxu0 %v7683_v13 }
 0x684   :  { %6792 = vmatprep.subr.bf16.mxu1 %v7685_v44 }
 0x686   :  { %6629 = vmatpush1.bf16.msra.mxu0 %v7682_v19 }
 0x687   :  { %6793 = vmatpush1.bf16.msra.mxu1 %v7684_v20  ;;  %6630 = vmatprep.subr.bf16.mxu0 %v7691_v22 }
 0x688   :  { %6794 = vmatprep.subr.bf16.mxu1 %v7693_v23 }
 0x68a   :  { %6631 = vmatpush1.bf16.msra.mxu0 %v7690_v27 }
 0x68b   :  { %6795 = vmatpush1.bf16.msra.mxu1 %v7692_v57  ;;  %6632 = vmatprep.subr.bf16.mxu0 %v7699_v29 }
 0x68c   :  { %6796 = vmatprep.subr.bf16.mxu1 %v7701_v30 }
 0x68e   :  { %6633 = vmatpush1.bf16.msra.mxu0 %v7698_v55 }
 0x68f   :  { %6797 = vmatpush1.bf16.msra.mxu1 %v7700_v31 }
 0x691   :  { %6635 = vmatmul.mubr.bf16.vlgmr.msra.gmra.mrb[20].mxu0 %v8757_v37 }
 0x692   :  { %6799 = vmatmul.mubr.bf16.vlgmr.msra.gmra.mrb[20].mxu1 %v8757_v37 }
 0x764   :  { %v6636_v35 = vpop.f32.mrb[20].mxu0 }
 0x765   :  { %v7732_v36 = vadd.f32 %v6636_v35, %v3570_v32  ;;  %v6800_v38 = vpop.f32.mrb[20].mxu1  ;;  %v6638_v39 = vpop.f32.mrb[21].mxu0 }
 0x766   :  { %v7734_v41 = vadd.f32 %v6800_v38, %v3578_v21  ;;  %v7733_v28 = vadd.f32 %v6638_v39, %v3574_v0  ;;  %v6802_v42 = vpop.f32.mrb[21].mxu1  ;;  %v6640_v37 = vpop.f32.mrb[22].mxu0 }
 0x767   :  { %7961 = vtanh.f32 %v7732_v36  ;;  %v7735_v50 = vadd.f32 %v6802_v42, %v3582_v33  ;;  %v6804_v40 = vpop.f32.mrb[22].mxu1  ;;  %v6641_v54 = vpop.f32.mrb[23].mxu0 }
 0x768   :  { %7963 = vtanh.f32 %v7734_v41  ;;  %v6805_v51 = vpop.f32.mrb[23].mxu1 }
 0x769   :  { %7965 = vtanh.f32 %v7733_v28 }
 0x76a   :  { %7967 = vtanh.f32 %v7735_v50 }
 0x771   :  { %v7962_v43 = vpop.eup %7961 }
 0x772   :  { %v7964_v48 = vpop.eup %7963  ;;  %6819 = vst [vmem:[#allocation25 + $0x20] sm:$0xff] %v7962_v43 }
 0x773   :  { %v7966_v53 = vpop.eup %7965  ;;  %6821 = vst [vmem:[#allocation25 + $0x30] sm:$0xff] %v7964_v48 }
 0x774   :  { %v7968_v60 = vpop.eup %7967  ;;  %6820 = vst [vmem:[#allocation25 + $0x28] sm:$0xff] %v7966_v53 }
 0x775   :  { %6822 = vst [vmem:[#allocation25 + $0x38] sm:$0xff] %v7968_v60 }
 0x776   :  { %8290 = shalt.err (!%p8287_p4)
}
 0x777   :  { %s8291_s22 = scalar_lea.hbm %s8821_s14, 1024 }
 0x778   :  { %p8292_p5 = scmp.ne.s32.totalorder %s8821_s14, %s8291_s22  ;;  %p8295_p6 = scmp.lt.u32.totalorder %s8291_s22, %s8821_s14 }
 0x77a   :  { %p8297_p7 = pnand %p8295_p6, %p8292_p5 }
 0x77c   :  { %8300 = shalt.err (!%p8297_p7)
}
 0x77d   :  { %6832 = dma.vmem_to_hbm [thread:$0]  %s6830_s27, 1024, %s8821_s14, [#allocation4]  }
 0x77e   :  { %8317 = dma.done.wait [#allocation4], 1024  }
 0x77f   :  { %8318 = vsyncadd [#allocation4], 4294966272 }
 0x780   :  { %6836 = vsyncpa [#allocation3], 1 }
 0x781   :  { %6837 = vsyncpa [#allocation6], 1 }
 0x782   :  { %6838 = vsyncpa [#allocation9], 1 }
 0x783   :  { %6839 = vsyncpa [#allocation12], 1 }
 0x784   :  { %6840 = vsyncpa [#allocation15], 1 }
 0x785   :  { %6841 = vsyncpa [#allocation18], 1 }
 0x786   :  { %6842 = vsyncpa [#allocation21], 1 }
 0x787   :  { %6843 = vsyncpa [#allocation24], 1 }
 0x788   :  { %6844 = vsyncpa [#allocation4], 1 }

</bundles_post_ra>
